<compile_context>
chip_gen: v5e
topology: v5e:2x2
jax: 0.10.0
libtpu: 0.0.40
codegen_flags: <defaults>
</compile_context>

<pallas_src>
import jax
import jax.numpy as jnp
import numpy as np
from jax import lax
from jax.experimental import pallas as pl
from jax.experimental.pallas import tpu as pltpu


def _round_up(x, m):
    return ((x + m - 1) // m) * m


def _const_spec(shape):
    """Grid-invariant input; single-buffered when pipeline_mode is available."""
    imap = lambda n, b, _s=len(shape): (0,) * _s
    try:
        return pl.BlockSpec(shape, imap, pipeline_mode=pl.Buffered(1))
    except (AttributeError, TypeError):
        return pl.BlockSpec(shape, imap)


def double_conv(x_nchw, params, *, band_rows=8):
    """(3x3 conv -> BN(eval) -> ReLU) x 2.  x_nchw: (N, Cin, H, W) float32.

    band_rows: spatial row-band size. Tune per chip: 4-8 on v7x (64 MiB VMEM),
    16-32 on v5e/v6e (128 MiB) to amortize the 4-row halo.
    """
    (w1, cb1, g1, be1, m1, v1,
     w2, cb2, g2, be2, m2, v2) = params
    eps = 1e-5

    N, Cin, H, W = x_nchw.shape
    Cout = w1.shape[-1]

    TH = min(band_rows, H)
    assert H % TH == 0, "H must be divisible by band_rows"
    nb = H // TH

    Wp2 = _round_up(W + 2, 8)          # padded row width (sublane aligned)
    Cin_p = _round_up(Cin, 128)
    Cout_p = _round_up(Cout, 128)
    R1 = (TH + 2) * Wp2                # conv1 extended-output rows per band
    R2 = TH * Wp2                      # conv2 output rows per band
    WLEN = (TH + 4) * Wp2 + 8          # flattened halo-window rows (DMA'd)
    Lp = (H + 4) * Wp2 + 8             # flattened padded-image rows per sample
    CH = max(1, 256 // Wp2)            # image rows per M-chunk (fused epilogue)

    # ---- fold conv bias + BatchNorm (eval mode) into per-channel scale/bias ----
    s1 = g1 / jnp.sqrt(v1 + eps)
    b1 = be1 + s1 * (cb1 - m1)
    s2 = g2 / jnp.sqrt(v2 + eps)
    b2 = be2 + s2 * (cb2 - m2)
    padc = lambda v: jnp.pad(v, (0, Cout_p - Cout))
    sb1 = jnp.stack([padc(s1), padc(b1)]).astype(jnp.float32)   # (2, Cout_p)
    sb2 = jnp.stack([padc(s2), padc(b2)]).astype(jnp.float32)

    # ---- weights -> per-tap matmul form (9, C_p, Cout_p), bf16 ----
    w1m = jnp.pad(w1, ((0, 0), (0, 0), (0, Cin_p - Cin), (0, Cout_p - Cout)))
    w1m = w1m.reshape(9, Cin_p, Cout_p).astype(jnp.bfloat16)
    w2m = jnp.pad(w2, ((0, 0), (0, 0), (0, Cout_p - Cout), (0, Cout_p - Cout)))
    w2m = w2m.reshape(9, Cout_p, Cout_p).astype(jnp.bfloat16)

    # ---- input: NCHW -> NHWC, zero halo/pad, flatten rows, bf16 (ONE copy in HBM,
    #      no overlapping-band gather; halo windows are DMA'd in-kernel) ----
    xp = jnp.transpose(x_nchw, (0, 2, 3, 1))
    xp = jnp.pad(xp, ((0, 0), (2, 2), (1, Wp2 - 1 - W), (0, Cin_p - Cin)))
    xp = xp.reshape(N, (H + 4) * Wp2, Cin_p)
    xp = jnp.pad(xp, ((0, 0), (0, 8), (0, 0))).astype(jnp.bfloat16)   # (N, Lp, Cin_p)

    def kernel(x_hbm, w1_ref, w2_ref, sb1_ref, sb2_ref, o_ref, xwin, mid, sem):
        n = pl.program_id(0)
        b = pl.program_id(1)
        slot = b & 1

        # ---- manual double-buffered halo-window DMA (HBM -> VMEM) ----
        def start_fetch(bb, sl):
            pltpu.make_async_copy(
                x_hbm.at[n, pl.ds(bb * (TH * Wp2), WLEN), :],
                xwin.at[sl], sem.at[sl]).start()

        @pl.when(b == 0)
        def _():
            start_fetch(0, 0)                     # prime this image's first band

        @pl.when(b + 1 < nb)
        def _():
            start_fetch(b + 1, 1 - slot)          # prefetch next band (overlaps compute)

        pltpu.make_async_copy(                     # wait for this band's window
            x_hbm.at[n, pl.ds(0, WLEN), :], xwin.at[slot], sem.at[slot]).wait()

        s1v = sb1_ref[0:1, :]
        b1v = sb1_ref[1:2, :]
        s2v = sb2_ref[0:1, :]
        b2v = sb2_ref[1:2, :]
        # interior-column keep mask (division free): within each Wp2-row, flat
        # position c corresponds to an in-image column iff c < W.
        keep = lax.broadcasted_iota(jnp.int32, (Wp2, Cout_p), 0) < W

        # ---- conv1 -> BN -> ReLU -> column zero-ring, chunked over band rows ----
        # Each chunk: 9 accumulating K=Cin_p dots straight from the window (no
        # im2col patch), fused epilogue, one aligned bf16 store into `mid`.
        for rs in range(0, TH + 2, CH):
            ri = min(CH, TH + 2 - rs)
            r0 = rs * Wp2
            nr = ri * Wp2
            acc = jnp.zeros((nr, Cout_p), jnp.float32)
            for dh in range(3):
                for dw in range(3):
                    acc = acc + jnp.dot(
                        xwin[slot, pl.ds(r0 + dh * Wp2 + dw, nr), :],
                        w1_ref[dh * 3 + dw],
                        preferred_element_type=jnp.float32)
            y = jnp.maximum(acc * s1v + b1v, 0.0).reshape(ri, Wp2, Cout_p)
            y = jnp.where(keep, y, 0.0)
            mid[16 + r0:16 + r0 + nr, :] = y.reshape(nr, Cout_p).astype(jnp.bfloat16)

        # halo zero rows needed by conv2's first/last taps
        mid[8:16, :] = jnp.zeros((8, Cout_p), jnp.bfloat16)
        mid[16 + R1:24 + R1, :] = jnp.zeros((8, Cout_p), jnp.bfloat16)

        # image top / bottom zero ring (contiguous row ranges -> no mask array)
        @pl.when(b == 0)
        def _():
            mid[16:16 + Wp2 - 1, :] = jnp.zeros((Wp2 - 1, Cout_p), jnp.bfloat16)

        @pl.when(b == nb - 1)
        def _():
            mid[16 + (TH + 1) * Wp2 - 1:16 + R1, :] = \
                jnp.zeros((Wp2 + 1, Cout_p), jnp.bfloat16)

        # ---- conv2 -> BN -> ReLU, chunked, fused bf16 store ----
        for rs in range(0, TH, CH):
            ri = min(CH, TH - rs)
            r0 = rs * Wp2
            nr = ri * Wp2
            acc = jnp.zeros((nr, Cout_p), jnp.float32)
            for dh in range(3):
                for dw in range(3):
                    acc = acc + jnp.dot(
                        mid[pl.ds(15 + r0 + dh * Wp2 + dw, nr), :],
                        w2_ref[dh * 3 + dw],
                        preferred_element_type=jnp.float32)
            y = jnp.maximum(acc * s2v + b2v, 0.0)
            o_ref[0, 0, r0:r0 + nr, :] = y.astype(o_ref.dtype)

    # ---- honest VMEM budget (includes f32 accumulator temporaries) ----
    est = (2 * WLEN * Cin_p * 2                       # input window double buffer
           + (R1 + 24) * Cout_p * 2                   # conv1->conv2 intermediate
           + 9 * (Cin_p + Cout_p) * Cout_p * 2        # weights (single buffered)
           + 2 * 2 * Cout_p * 4                       # scale/bias
           + 2 * R2 * Cout_p * 2                      # bf16 output block (x2 buffers)
           + 2 * CH * Wp2 * Cout_p * 4)               # f32 acc + epilogue temporaries
    try:
        vmem_cap = pltpu.get_tpu_info().vmem_capacity_bytes
    except Exception:
        vmem_cap = 64 << 20
    vmem_limit = int(min(max(est + (16 << 20), 32 << 20), vmem_cap))

    grid_spec = pltpu.PrefetchScalarGridSpec(
        num_scalar_prefetch=0,
        grid=(N, nb),
        in_specs=[
            pl.BlockSpec(memory_space=pl.ANY),        # raw HBM; manual halo DMA
            _const_spec((9, Cin_p, Cout_p)),
            _const_spec((9, Cout_p, Cout_p)),
            _const_spec((2, Cout_p)),
            _const_spec((2, Cout_p)),
        ],
        out_specs=pl.BlockSpec((1, 1, R2, Cout_p), lambda n, b: (n, b, 0, 0)),
        scratch_shapes=[
            pltpu.VMEM((2, WLEN, Cin_p), jnp.bfloat16),   # halo window double buffer
            pltpu.VMEM((R1 + 24, Cout_p), jnp.bfloat16),  # conv1 output (+zero halo)
            pltpu.SemaphoreType.DMA((2,)),
        ],
    )

    out_ext = pl.pallas_call(
        kernel,
        out_shape=jax.ShapeDtypeStruct((N, nb, R2, Cout_p), jnp.bfloat16),
        grid_spec=grid_spec,
        compiler_params=pltpu.CompilerParams(
            # band axis is "arbitrary": the manual double-buffer carries state
            # across bands; the batch axis stays "parallel" for megacore.
            dimension_semantics=("parallel", "arbitrary"),
            vmem_limit_bytes=vmem_limit),
    )(xp, w1m, w2m, sb1, sb2)

    # strip wrap/pad columns + channel padding; return NCHW f32 to match the
    # PyTorch module.  TODO(synk): let the consumer take NHWC/bf16 directly to
    # skip this relayout pass.
    out = out_ext.reshape(N, nb, TH, Wp2, Cout_p)[:, :, :, :W, :Cout]
    out = out.reshape(N, H, W, Cout).astype(jnp.float32)
    return jnp.transpose(out, (0, 3, 1, 2))


def ref_double_conv(x_nchw, params):
    """Pure-JAX reference (eval-mode BN), mirrors the PyTorch module."""
    (w1, cb1, g1, be1, m1, v1,
     w2, cb2, g2, be2, m2, v2) = params
    eps = 1e-5
    dn = ('NHWC', 'HWIO', 'NHWC')
    x = jnp.transpose(x_nchw, (0, 2, 3, 1))
    y = jax.lax.conv_general_dilated(x, w1, (1, 1), 'SAME',
                                     dimension_numbers=dn,
                                     precision=jax.lax.Precision.HIGHEST) + cb1
    y = g1 * (y - m1) / jnp.sqrt(v1 + eps) + be1
    y = jnp.maximum(y, 0.0)
    z = jax.lax.conv_general_dilated(y, w2, (1, 1), 'SAME',
                                     dimension_numbers=dn,
                                     precision=jax.lax.Precision.HIGHEST) + cb2
    z = g2 * (z - m2) / jnp.sqrt(v2 + eps) + be2
    z = jnp.maximum(z, 0.0)
    return jnp.transpose(z, (0, 3, 1, 2))


def make_params(key, in_ch, out_ch):
    ks = jax.random.split(key, 12)
    # conv weights stored directly in HWIO layout (deterministic synthetic init)
    w1 = jax.random.normal(ks[0], (3, 3, in_ch, out_ch), jnp.float32) * 0.1
    cb1 = jax.random.normal(ks[1], (out_ch,), jnp.float32) * 0.05
    g1 = 1.0 + 0.1 * jax.random.normal(ks[2], (out_ch,), jnp.float32)
    be1 = 0.1 * jax.random.normal(ks[3], (out_ch,), jnp.float32)
    m1 = 0.05 * jax.random.normal(ks[4], (out_ch,), jnp.float32)
    v1 = 1.0 + 0.1 * jax.random.uniform(ks[5], (out_ch,), jnp.float32)
    w2 = jax.random.normal(ks[6], (3, 3, out_ch, out_ch), jnp.float32) * 0.1
    cb2 = jax.random.normal(ks[7], (out_ch,), jnp.float32) * 0.05
    g2 = 1.0 + 0.1 * jax.random.normal(ks[8], (out_ch,), jnp.float32)
    be2 = 0.1 * jax.random.normal(ks[9], (out_ch,), jnp.float32)
    m2 = 0.05 * jax.random.normal(ks[10], (out_ch,), jnp.float32)
    v2 = 1.0 + 0.1 * jax.random.uniform(ks[11], (out_ch,), jnp.float32)
    return (w1, cb1, g1, be1, m1, v1, w2, cb2, g2, be2, m2, v2)


if __name__ == "__main__":
    key = jax.random.PRNGKey(0)
    k_x, k_p = jax.random.split(key)

    N, Cin, Cout, H, W = 2, 4, 8, 16, 16
    x = jax.random.normal(k_x, (N, Cin, H, W), jnp.float32)
    params = make_params(k_p, Cin, Cout)

    out = jax.block_until_ready(double_conv(x, params, band_rows=8))
    ref = jax.block_until_ready(ref_double_conv(x, params))

    assert out.shape == (N, Cout, H, W)
    # bf16 inputs/weights/intermediate/output with f32 MXU accumulation ->
    # loose tolerance vs the f32 reference (inference-grade precision).
    np.testing.assert_allclose(np.asarray(out), np.asarray(ref),
                               rtol=2.5e-2, atol=2.5e-2)
    print("KERNEL_OK")
</pallas_src>

<mosaic_0001>
module attributes {stable_mosaic.version = 11 : i64} {
  func.func @kernel(%arg0: i32, %arg1: i32, %arg2: memref<2x488x128xbf16, #tpu.memory_space<any>>, %arg3: memref<9x128x128xbf16, #tpu.memory_space<vmem>>, %arg4: memref<9x128x128xbf16, #tpu.memory_space<vmem>>, %arg5: memref<2x128xf32, #tpu.memory_space<vmem>>, %arg6: memref<2x128xf32, #tpu.memory_space<vmem>>, %arg7: memref<1x1x192x128xbf16, #tpu.memory_space<vmem>>, %arg8: memref<2x296x128xbf16, #tpu.memory_space<vmem>>, %arg9: memref<264x128xbf16, #tpu.memory_space<vmem>>, %arg10: memref<2x!tpu.dma_semaphore, #tpu.memory_space<semaphore_mem>>) attributes {dimension_semantics = [#tpu.dimension_semantics<parallel>, #tpu.dimension_semantics<arbitrary>], iteration_bounds = array<i64: 2, 2>, scalar_prefetch = 0 : i64, scratch_operands = 3 : i64, tpu.core_type = #tpu.core_type<tc>, window_params = [{}, {pipeline_mode = #tpu.pipeline_mode<synchronous>, transform_indices = @transform_1, window_bounds = array<i64: 9, 128, 128>}, {pipeline_mode = #tpu.pipeline_mode<synchronous>, transform_indices = @transform_2, window_bounds = array<i64: 9, 128, 128>}, {pipeline_mode = #tpu.pipeline_mode<synchronous>, transform_indices = @transform_3, window_bounds = array<i64: 2, 128>}, {pipeline_mode = #tpu.pipeline_mode<synchronous>, transform_indices = @transform_4, window_bounds = array<i64: 2, 128>}, {transform_indices = @transform_5, window_bounds = array<i64: 1, 1, 192, 128>}]} {
    %c1_i32 = arith.constant 1 : i32
    %0 = arith.andi %arg1, %c1_i32 : i32
    %c0_i32 = arith.constant 0 : i32
    %1 = arith.cmpi eq, %arg1, %c0_i32 : i32
    %2 = arith.extui %1 : i1 to i32
    %c0_i32_0 = arith.constant 0 : i32
    %3 = arith.cmpi ne, %2, %c0_i32_0 : i32
    scf.if %3 {
      %c0_i32_118 = arith.constant 0 : i32
      %c0_i32_119 = arith.constant 0 : i32
      %c0_i32_120 = arith.constant 0 : i32
      %c0_i32_121 = arith.constant 0 : i32
      %165 = tpu.memref_slice %arg2[%arg0, %c0_i32_120, %c0_i32_121] : memref<2x488x128xbf16, #tpu.memory_space<any>> -> memref<1x296x128xbf16, #tpu.memory_space<any>>
      %166 = tpu.memref_squeeze %165 : memref<1x296x128xbf16, #tpu.memory_space<any>> -> memref<296x128xbf16, #tpu.memory_space<any>>
      %c0_i32_122 = arith.constant 0 : i32
      %c0_i32_123 = arith.constant 0 : i32
      %167 = tpu.memref_slice %arg8[%c0_i32_118, %c0_i32_122, %c0_i32_123] : memref<2x296x128xbf16, #tpu.memory_space<vmem>> -> memref<1x296x128xbf16, #tpu.memory_space<vmem>>
      %168 = tpu.memref_squeeze %167 : memref<1x296x128xbf16, #tpu.memory_space<vmem>> -> memref<296x128xbf16, #tpu.memory_space<vmem>>
      %169 = tpu.memref_slice %arg10[%c0_i32_119] : memref<2x!tpu.dma_semaphore, #tpu.memory_space<semaphore_mem>> -> memref<1x!tpu.dma_semaphore, #tpu.memory_space<semaphore_mem>>
      %170 = tpu.memref_squeeze %169 : memref<1x!tpu.dma_semaphore, #tpu.memory_space<semaphore_mem>> -> memref<!tpu.dma_semaphore, #tpu.memory_space<semaphore_mem>>
      tpu.enqueue_dma source(%166 : memref<296x128xbf16, #tpu.memory_space<any>>) target(%168 : memref<296x128xbf16, #tpu.memory_space<vmem>>) target_semaphore(%170 : memref<!tpu.dma_semaphore, #tpu.memory_space<semaphore_mem>>)
    } else {
    }
    %c1_i32_1 = arith.constant 1 : i32
    %4 = arith.addi %arg1, %c1_i32_1 : i32
    %c2_i32 = arith.constant 2 : i32
    %5 = arith.cmpi slt, %4, %c2_i32 : i32
    %6 = arith.extui %5 : i1 to i32
    %c0_i32_2 = arith.constant 0 : i32
    %7 = arith.cmpi ne, %6, %c0_i32_2 : i32
    scf.if %7 {
      %c1_i32_118 = arith.constant 1 : i32
      %165 = arith.addi %arg1, %c1_i32_118 : i32
      %c1_i32_119 = arith.constant 1 : i32
      %166 = arith.subi %c1_i32_119, %0 : i32
      %c192_i32 = arith.constant 192 : i32
      %167 = arith.muli %165, %c192_i32 : i32
      %c0_i32_120 = arith.constant 0 : i32
      %168 = tpu.memref_slice %arg2[%arg0, %167, %c0_i32_120] : memref<2x488x128xbf16, #tpu.memory_space<any>> -> memref<1x296x128xbf16, #tpu.memory_space<any>>
      %169 = tpu.memref_squeeze %168 : memref<1x296x128xbf16, #tpu.memory_space<any>> -> memref<296x128xbf16, #tpu.memory_space<any>>
      %c0_i32_121 = arith.constant 0 : i32
      %c0_i32_122 = arith.constant 0 : i32
      %170 = tpu.memref_slice %arg8[%166, %c0_i32_121, %c0_i32_122] : memref<2x296x128xbf16, #tpu.memory_space<vmem>> -> memref<1x296x128xbf16, #tpu.memory_space<vmem>>
      %171 = tpu.memref_squeeze %170 : memref<1x296x128xbf16, #tpu.memory_space<vmem>> -> memref<296x128xbf16, #tpu.memory_space<vmem>>
      %172 = tpu.memref_slice %arg10[%166] : memref<2x!tpu.dma_semaphore, #tpu.memory_space<semaphore_mem>> -> memref<1x!tpu.dma_semaphore, #tpu.memory_space<semaphore_mem>>
      %173 = tpu.memref_squeeze %172 : memref<1x!tpu.dma_semaphore, #tpu.memory_space<semaphore_mem>> -> memref<!tpu.dma_semaphore, #tpu.memory_space<semaphore_mem>>
      tpu.enqueue_dma source(%169 : memref<296x128xbf16, #tpu.memory_space<any>>) target(%171 : memref<296x128xbf16, #tpu.memory_space<vmem>>) target_semaphore(%173 : memref<!tpu.dma_semaphore, #tpu.memory_space<semaphore_mem>>)
    } else {
    }
    %c0_i32_3 = arith.constant 0 : i32
    %c0_i32_4 = arith.constant 0 : i32
    %8 = tpu.memref_slice %arg2[%arg0, %c0_i32_3, %c0_i32_4] : memref<2x488x128xbf16, #tpu.memory_space<any>> -> memref<1x296x128xbf16, #tpu.memory_space<any>>
    %9 = tpu.memref_squeeze %8 : memref<1x296x128xbf16, #tpu.memory_space<any>> -> memref<296x128xbf16, #tpu.memory_space<any>>
    %c0_i32_5 = arith.constant 0 : i32
    %c0_i32_6 = arith.constant 0 : i32
    %10 = tpu.memref_slice %arg8[%0, %c0_i32_5, %c0_i32_6] : memref<2x296x128xbf16, #tpu.memory_space<vmem>> -> memref<1x296x128xbf16, #tpu.memory_space<vmem>>
    %11 = tpu.memref_squeeze %10 : memref<1x296x128xbf16, #tpu.memory_space<vmem>> -> memref<296x128xbf16, #tpu.memory_space<vmem>>
    %12 = tpu.memref_slice %arg10[%0] : memref<2x!tpu.dma_semaphore, #tpu.memory_space<semaphore_mem>> -> memref<1x!tpu.dma_semaphore, #tpu.memory_space<semaphore_mem>>
    %13 = tpu.memref_squeeze %12 : memref<1x!tpu.dma_semaphore, #tpu.memory_space<semaphore_mem>> -> memref<!tpu.dma_semaphore, #tpu.memory_space<semaphore_mem>>
    tpu.wait_dma2 semaphore(%13 : memref<!tpu.dma_semaphore, #tpu.memory_space<semaphore_mem>>) src(%9 : memref<296x128xbf16, #tpu.memory_space<any>>) dst(%11 : memref<296x128xbf16, #tpu.memory_space<vmem>>)
    %c0 = arith.constant 0 : index
    %c0_7 = arith.constant 0 : index
    %14 = vector.load %arg5[%c0, %c0_7] : memref<2x128xf32, #tpu.memory_space<vmem>>, vector<1x128xf32>
    %c1 = arith.constant 1 : index
    %c0_8 = arith.constant 0 : index
    %15 = vector.load %arg5[%c1, %c0_8] : memref<2x128xf32, #tpu.memory_space<vmem>>, vector<1x128xf32>
    %c0_9 = arith.constant 0 : index
    %c0_10 = arith.constant 0 : index
    %16 = vector.load %arg6[%c0_9, %c0_10] : memref<2x128xf32, #tpu.memory_space<vmem>>, vector<1x128xf32>
    %c1_11 = arith.constant 1 : index
    %c0_12 = arith.constant 0 : index
    %17 = vector.load %arg6[%c1_11, %c0_12] : memref<2x128xf32, #tpu.memory_space<vmem>>, vector<1x128xf32>
    %18 = tpu.iota {dimensions = array<i32: 0>} : vector<24x128xi32>
    %c16_i32 = arith.constant 16 : i32
    %19 = vector.broadcast %c16_i32 : i32 to vector<24x128xi32>
    %20 = arith.cmpi slt, %18, %19 : vector<24x128xi32>
    %cst = arith.constant 0.000000e+00 : f32
    %21 = vector.broadcast %cst : f32 to vector<240x128xf32>
    %22 = arith.index_cast %0 : i32 to index
    %c0_13 = arith.constant 0 : index
    %c0_14 = arith.constant 0 : index
    %23 = vector.load %arg8[%22, %c0_13, %c0_14] : memref<2x296x128xbf16, #tpu.memory_space<vmem>>, vector<1x240x128xbf16>
    %24 = vector.shape_cast %23 : vector<1x240x128xbf16> to vector<240x128xbf16>
    %c0_15 = arith.constant 0 : index
    %c0_16 = arith.constant 0 : index
    %c0_17 = arith.constant 0 : index
    %25 = vector.load %arg3[%c0_15, %c0_16, %c0_17] : memref<9x128x128xbf16, #tpu.memory_space<vmem>>, vector<1x128x128xbf16>
    %26 = vector.shape_cast %25 : vector<1x128x128xbf16> to vector<128x128xbf16>
    %cst_18 = arith.constant dense<0.000000e+00> : vector<240x128xf32>
    %27 = tpu.matmul %24, %26, %cst_18 {dimension_numbers = #tpu.dot_dimension_numbers<[1], [0], [0], [1], [0, 0, 1, 1], [], []>} : vector<240x128xbf16>, vector<128x128xbf16>, vector<240x128xf32> -> vector<240x128xf32>
    %28 = arith.addf %21, %27 : vector<240x128xf32>
    %29 = arith.index_cast %0 : i32 to index
    %c1_19 = arith.constant 1 : index
    %c0_20 = arith.constant 0 : index
    %30 = vector.load %arg8[%29, %c1_19, %c0_20] : memref<2x296x128xbf16, #tpu.memory_space<vmem>>, vector<1x240x128xbf16>
    %31 = vector.shape_cast %30 : vector<1x240x128xbf16> to vector<240x128xbf16>
    %c1_21 = arith.constant 1 : index
    %c0_22 = arith.constant 0 : index
    %c0_23 = arith.constant 0 : index
    %32 = vector.load %arg3[%c1_21, %c0_22, %c0_23] : memref<9x128x128xbf16, #tpu.memory_space<vmem>>, vector<1x128x128xbf16>
    %33 = vector.shape_cast %32 : vector<1x128x128xbf16> to vector<128x128xbf16>
    %cst_24 = arith.constant dense<0.000000e+00> : vector<240x128xf32>
    %34 = tpu.matmul %31, %33, %cst_24 {dimension_numbers = #tpu.dot_dimension_numbers<[1], [0], [0], [1], [0, 0, 1, 1], [], []>} : vector<240x128xbf16>, vector<128x128xbf16>, vector<240x128xf32> -> vector<240x128xf32>
    %35 = arith.addf %28, %34 : vector<240x128xf32>
    %36 = arith.index_cast %0 : i32 to index
    %c2 = arith.constant 2 : index
    %c0_25 = arith.constant 0 : index
    %37 = vector.load %arg8[%36, %c2, %c0_25] : memref<2x296x128xbf16, #tpu.memory_space<vmem>>, vector<1x240x128xbf16>
    %38 = vector.shape_cast %37 : vector<1x240x128xbf16> to vector<240x128xbf16>
    %c2_26 = arith.constant 2 : index
    %c0_27 = arith.constant 0 : index
    %c0_28 = arith.constant 0 : index
    %39 = vector.load %arg3[%c2_26, %c0_27, %c0_28] : memref<9x128x128xbf16, #tpu.memory_space<vmem>>, vector<1x128x128xbf16>
    %40 = vector.shape_cast %39 : vector<1x128x128xbf16> to vector<128x128xbf16>
    %cst_29 = arith.constant dense<0.000000e+00> : vector<240x128xf32>
    %41 = tpu.matmul %38, %40, %cst_29 {dimension_numbers = #tpu.dot_dimension_numbers<[1], [0], [0], [1], [0, 0, 1, 1], [], []>} : vector<240x128xbf16>, vector<128x128xbf16>, vector<240x128xf32> -> vector<240x128xf32>
    %42 = arith.addf %35, %41 : vector<240x128xf32>
    %43 = arith.index_cast %0 : i32 to index
    %c24 = arith.constant 24 : index
    %c0_30 = arith.constant 0 : index
    %44 = vector.load %arg8[%43, %c24, %c0_30] : memref<2x296x128xbf16, #tpu.memory_space<vmem>>, vector<1x240x128xbf16>
    %45 = vector.shape_cast %44 : vector<1x240x128xbf16> to vector<240x128xbf16>
    %c3 = arith.constant 3 : index
    %c0_31 = arith.constant 0 : index
    %c0_32 = arith.constant 0 : index
    %46 = vector.load %arg3[%c3, %c0_31, %c0_32] : memref<9x128x128xbf16, #tpu.memory_space<vmem>>, vector<1x128x128xbf16>
    %47 = vector.shape_cast %46 : vector<1x128x128xbf16> to vector<128x128xbf16>
    %cst_33 = arith.constant dense<0.000000e+00> : vector<240x128xf32>
    %48 = tpu.matmul %45, %47, %cst_33 {dimension_numbers = #tpu.dot_dimension_numbers<[1], [0], [0], [1], [0, 0, 1, 1], [], []>} : vector<240x128xbf16>, vector<128x128xbf16>, vector<240x128xf32> -> vector<240x128xf32>
    %49 = arith.addf %42, %48 : vector<240x128xf32>
    %50 = arith.index_cast %0 : i32 to index
    %c25 = arith.constant 25 : index
    %c0_34 = arith.constant 0 : index
    %51 = vector.load %arg8[%50, %c25, %c0_34] : memref<2x296x128xbf16, #tpu.memory_space<vmem>>, vector<1x240x128xbf16>
    %52 = vector.shape_cast %51 : vector<1x240x128xbf16> to vector<240x128xbf16>
    %c4 = arith.constant 4 : index
    %c0_35 = arith.constant 0 : index
    %c0_36 = arith.constant 0 : index
    %53 = vector.load %arg3[%c4, %c0_35, %c0_36] : memref<9x128x128xbf16, #tpu.memory_space<vmem>>, vector<1x128x128xbf16>
    %54 = vector.shape_cast %53 : vector<1x128x128xbf16> to vector<128x128xbf16>
    %cst_37 = arith.constant dense<0.000000e+00> : vector<240x128xf32>
    %55 = tpu.matmul %52, %54, %cst_37 {dimension_numbers = #tpu.dot_dimension_numbers<[1], [0], [0], [1], [0, 0, 1, 1], [], []>} : vector<240x128xbf16>, vector<128x128xbf16>, vector<240x128xf32> -> vector<240x128xf32>
    %56 = arith.addf %49, %55 : vector<240x128xf32>
    %57 = arith.index_cast %0 : i32 to index
    %c26 = arith.constant 26 : index
    %c0_38 = arith.constant 0 : index
    %58 = vector.load %arg8[%57, %c26, %c0_38] : memref<2x296x128xbf16, #tpu.memory_space<vmem>>, vector<1x240x128xbf16>
    %59 = vector.shape_cast %58 : vector<1x240x128xbf16> to vector<240x128xbf16>
    %c5 = arith.constant 5 : index
    %c0_39 = arith.constant 0 : index
    %c0_40 = arith.constant 0 : index
    %60 = vector.load %arg3[%c5, %c0_39, %c0_40] : memref<9x128x128xbf16, #tpu.memory_space<vmem>>, vector<1x128x128xbf16>
    %61 = vector.shape_cast %60 : vector<1x128x128xbf16> to vector<128x128xbf16>
    %cst_41 = arith.constant dense<0.000000e+00> : vector<240x128xf32>
    %62 = tpu.matmul %59, %61, %cst_41 {dimension_numbers = #tpu.dot_dimension_numbers<[1], [0], [0], [1], [0, 0, 1, 1], [], []>} : vector<240x128xbf16>, vector<128x128xbf16>, vector<240x128xf32> -> vector<240x128xf32>
    %63 = arith.addf %56, %62 : vector<240x128xf32>
    %64 = arith.index_cast %0 : i32 to index
    %c48 = arith.constant 48 : index
    %c0_42 = arith.constant 0 : index
    %65 = vector.load %arg8[%64, %c48, %c0_42] : memref<2x296x128xbf16, #tpu.memory_space<vmem>>, vector<1x240x128xbf16>
    %66 = vector.shape_cast %65 : vector<1x240x128xbf16> to vector<240x128xbf16>
    %c6 = arith.constant 6 : index
    %c0_43 = arith.constant 0 : index
    %c0_44 = arith.constant 0 : index
    %67 = vector.load %arg3[%c6, %c0_43, %c0_44] : memref<9x128x128xbf16, #tpu.memory_space<vmem>>, vector<1x128x128xbf16>
    %68 = vector.shape_cast %67 : vector<1x128x128xbf16> to vector<128x128xbf16>
    %cst_45 = arith.constant dense<0.000000e+00> : vector<240x128xf32>
    %69 = tpu.matmul %66, %68, %cst_45 {dimension_numbers = #tpu.dot_dimension_numbers<[1], [0], [0], [1], [0, 0, 1, 1], [], []>} : vector<240x128xbf16>, vector<128x128xbf16>, vector<240x128xf32> -> vector<240x128xf32>
    %70 = arith.addf %63, %69 : vector<240x128xf32>
    %71 = arith.index_cast %0 : i32 to index
    %c49 = arith.constant 49 : index
    %c0_46 = arith.constant 0 : index
    %72 = vector.load %arg8[%71, %c49, %c0_46] : memref<2x296x128xbf16, #tpu.memory_space<vmem>>, vector<1x240x128xbf16>
    %73 = vector.shape_cast %72 : vector<1x240x128xbf16> to vector<240x128xbf16>
    %c7 = arith.constant 7 : index
    %c0_47 = arith.constant 0 : index
    %c0_48 = arith.constant 0 : index
    %74 = vector.load %arg3[%c7, %c0_47, %c0_48] : memref<9x128x128xbf16, #tpu.memory_space<vmem>>, vector<1x128x128xbf16>
    %75 = vector.shape_cast %74 : vector<1x128x128xbf16> to vector<128x128xbf16>
    %cst_49 = arith.constant dense<0.000000e+00> : vector<240x128xf32>
    %76 = tpu.matmul %73, %75, %cst_49 {dimension_numbers = #tpu.dot_dimension_numbers<[1], [0], [0], [1], [0, 0, 1, 1], [], []>} : vector<240x128xbf16>, vector<128x128xbf16>, vector<240x128xf32> -> vector<240x128xf32>
    %77 = arith.addf %70, %76 : vector<240x128xf32>
    %78 = arith.index_cast %0 : i32 to index
    %c50 = arith.constant 50 : index
    %c0_50 = arith.constant 0 : index
    %79 = vector.load %arg8[%78, %c50, %c0_50] : memref<2x296x128xbf16, #tpu.memory_space<vmem>>, vector<1x240x128xbf16>
    %80 = vector.shape_cast %79 : vector<1x240x128xbf16> to vector<240x128xbf16>
    %c8 = arith.constant 8 : index
    %c0_51 = arith.constant 0 : index
    %c0_52 = arith.constant 0 : index
    %81 = vector.load %arg3[%c8, %c0_51, %c0_52] : memref<9x128x128xbf16, #tpu.memory_space<vmem>>, vector<1x128x128xbf16>
    %82 = vector.shape_cast %81 : vector<1x128x128xbf16> to vector<128x128xbf16>
    %cst_53 = arith.constant dense<0.000000e+00> : vector<240x128xf32>
    %83 = tpu.matmul %80, %82, %cst_53 {dimension_numbers = #tpu.dot_dimension_numbers<[1], [0], [0], [1], [0, 0, 1, 1], [], []>} : vector<240x128xbf16>, vector<128x128xbf16>, vector<240x128xf32> -> vector<240x128xf32>
    %84 = arith.addf %77, %83 : vector<240x128xf32>
    %85 = vector.broadcast %14 : vector<1x128xf32> to vector<240x128xf32>
    %86 = arith.mulf %84, %85 : vector<240x128xf32>
    %87 = vector.broadcast %15 : vector<1x128xf32> to vector<240x128xf32>
    %88 = arith.addf %86, %87 : vector<240x128xf32>
    %cst_54 = arith.constant 0.000000e+00 : f32
    %89 = vector.broadcast %cst_54 : f32 to vector<240x128xf32>
    %90 = arith.maximumf %88, %89 : vector<240x128xf32>
    %91 = vector.shape_cast %90 : vector<240x128xf32> to vector<10x24x128xf32>
    %cst_55 = arith.constant 0.000000e+00 : f32
    %92 = vector.shape_cast %20 : vector<24x128xi1> to vector<1x24x128xi1>
    %93 = vector.broadcast %92 : vector<1x24x128xi1> to vector<10x24x128xi1>
    %94 = vector.broadcast %cst_55 : f32 to vector<10x24x128xf32>
    %95 = arith.select %93, %91, %94 : vector<10x24x128xi1>, vector<10x24x128xf32>
    %96 = vector.shape_cast %95 : vector<10x24x128xf32> to vector<240x128xf32>
    %97 = arith.truncf %96 : vector<240x128xf32> to vector<240x128xbf16>
    %c16 = arith.constant 16 : index
    %c0_56 = arith.constant 0 : index
    %98 = vector.load %arg9[%c16, %c0_56] : memref<264x128xbf16, #tpu.memory_space<vmem>>, vector<240x128xbf16>
    tpu.vector_store %arg9[%c16, %c0_56], %97 {strides = array<i32>} : memref<264x128xbf16, #tpu.memory_space<vmem>>, vector<240x128xbf16>,
    %cst_57 = arith.constant 0.000000e+00 : bf16
    %99 = vector.broadcast %cst_57 : bf16 to vector<8x128xbf16>
    %c8_58 = arith.constant 8 : index
    %c0_59 = arith.constant 0 : index
    %100 = vector.load %arg9[%c8_58, %c0_59] : memref<264x128xbf16, #tpu.memory_space<vmem>>, vector<8x128xbf16>
    tpu.vector_store %arg9[%c8_58, %c0_59], %99 {strides = array<i32>} : memref<264x128xbf16, #tpu.memory_space<vmem>>, vector<8x128xbf16>,
    %cst_60 = arith.constant 0.000000e+00 : bf16
    %101 = vector.broadcast %cst_60 : bf16 to vector<8x128xbf16>
    %c256 = arith.constant 256 : index
    %c0_61 = arith.constant 0 : index
    %102 = vector.load %arg9[%c256, %c0_61] : memref<264x128xbf16, #tpu.memory_space<vmem>>, vector<8x128xbf16>
    tpu.vector_store %arg9[%c256, %c0_61], %101 {strides = array<i32>} : memref<264x128xbf16, #tpu.memory_space<vmem>>, vector<8x128xbf16>,
    %c0_i32_62 = arith.constant 0 : i32
    %103 = arith.cmpi eq, %arg1, %c0_i32_62 : i32
    %104 = arith.extui %103 : i1 to i32
    %c0_i32_63 = arith.constant 0 : i32
    %105 = arith.cmpi ne, %104, %c0_i32_63 : i32
    scf.if %105 {
      %cst_118 = arith.constant 0.000000e+00 : bf16
      %165 = vector.broadcast %cst_118 : bf16 to vector<23x128xbf16>
      %c16_119 = arith.constant 16 : index
      %c0_120 = arith.constant 0 : index
      %166 = vector.load %arg9[%c16_119, %c0_120] : memref<264x128xbf16, #tpu.memory_space<vmem>>, vector<23x128xbf16>
      tpu.vector_store %arg9[%c16_119, %c0_120], %165 {strides = array<i32>} : memref<264x128xbf16, #tpu.memory_space<vmem>>, vector<23x128xbf16>,
    } else {
    }
    %c1_i32_64 = arith.constant 1 : i32
    %106 = arith.cmpi eq, %arg1, %c1_i32_64 : i32
    %107 = arith.extui %106 : i1 to i32
    %c0_i32_65 = arith.constant 0 : i32
    %108 = arith.cmpi ne, %107, %c0_i32_65 : i32
    scf.if %108 {
      %cst_118 = arith.constant 0.000000e+00 : bf16
      %165 = vector.broadcast %cst_118 : bf16 to vector<25x128xbf16>
      %c231 = arith.constant 231 : index
      %c0_119 = arith.constant 0 : index
      %166 = vector.load %arg9[%c231, %c0_119] : memref<264x128xbf16, #tpu.memory_space<vmem>>, vector<25x128xbf16>
      tpu.vector_store %arg9[%c231, %c0_119], %165 {strides = array<i32>} : memref<264x128xbf16, #tpu.memory_space<vmem>>, vector<25x128xbf16>,
    } else {
    }
    %cst_66 = arith.constant 0.000000e+00 : f32
    %109 = vector.broadcast %cst_66 : f32 to vector<192x128xf32>
    %c15 = arith.constant 15 : index
    %c0_67 = arith.constant 0 : index
    %110 = vector.load %arg9[%c15, %c0_67] : memref<264x128xbf16, #tpu.memory_space<vmem>>, vector<192x128xbf16>
    %c0_68 = arith.constant 0 : index
    %c0_69 = arith.constant 0 : index
    %c0_70 = arith.constant 0 : index
    %111 = vector.load %arg4[%c0_68, %c0_69, %c0_70] : memref<9x128x128xbf16, #tpu.memory_space<vmem>>, vector<1x128x128xbf16>
    %112 = vector.shape_cast %111 : vector<1x128x128xbf16> to vector<128x128xbf16>
    %cst_71 = arith.constant dense<0.000000e+00> : vector<192x128xf32>
    %113 = tpu.matmul %110, %112, %cst_71 {dimension_numbers = #tpu.dot_dimension_numbers<[1], [0], [0], [1], [0, 0, 1, 1], [], []>} : vector<192x128xbf16>, vector<128x128xbf16>, vector<192x128xf32> -> vector<192x128xf32>
    %114 = arith.addf %109, %113 : vector<192x128xf32>
    %c16_72 = arith.constant 16 : index
    %c0_73 = arith.constant 0 : index
    %115 = vector.load %arg9[%c16_72, %c0_73] : memref<264x128xbf16, #tpu.memory_space<vmem>>, vector<192x128xbf16>
    %c1_74 = arith.constant 1 : index
    %c0_75 = arith.constant 0 : index
    %c0_76 = arith.constant 0 : index
    %116 = vector.load %arg4[%c1_74, %c0_75, %c0_76] : memref<9x128x128xbf16, #tpu.memory_space<vmem>>, vector<1x128x128xbf16>
    %117 = vector.shape_cast %116 : vector<1x128x128xbf16> to vector<128x128xbf16>
    %cst_77 = arith.constant dense<0.000000e+00> : vector<192x128xf32>
    %118 = tpu.matmul %115, %117, %cst_77 {dimension_numbers = #tpu.dot_dimension_numbers<[1], [0], [0], [1], [0, 0, 1, 1], [], []>} : vector<192x128xbf16>, vector<128x128xbf16>, vector<192x128xf32> -> vector<192x128xf32>
    %119 = arith.addf %114, %118 : vector<192x128xf32>
    %c17 = arith.constant 17 : index
    %c0_78 = arith.constant 0 : index
    %120 = vector.load %arg9[%c17, %c0_78] : memref<264x128xbf16, #tpu.memory_space<vmem>>, vector<192x128xbf16>
    %c2_79 = arith.constant 2 : index
    %c0_80 = arith.constant 0 : index
    %c0_81 = arith.constant 0 : index
    %121 = vector.load %arg4[%c2_79, %c0_80, %c0_81] : memref<9x128x128xbf16, #tpu.memory_space<vmem>>, vector<1x128x128xbf16>
    %122 = vector.shape_cast %121 : vector<1x128x128xbf16> to vector<128x128xbf16>
    %cst_82 = arith.constant dense<0.000000e+00> : vector<192x128xf32>
    %123 = tpu.matmul %120, %122, %cst_82 {dimension_numbers = #tpu.dot_dimension_numbers<[1], [0], [0], [1], [0, 0, 1, 1], [], []>} : vector<192x128xbf16>, vector<128x128xbf16>, vector<192x128xf32> -> vector<192x128xf32>
    %124 = arith.addf %119, %123 : vector<192x128xf32>
    %c39 = arith.constant 39 : index
    %c0_83 = arith.constant 0 : index
    %125 = vector.load %arg9[%c39, %c0_83] : memref<264x128xbf16, #tpu.memory_space<vmem>>, vector<192x128xbf16>
    %c3_84 = arith.constant 3 : index
    %c0_85 = arith.constant 0 : index
    %c0_86 = arith.constant 0 : index
    %126 = vector.load %arg4[%c3_84, %c0_85, %c0_86] : memref<9x128x128xbf16, #tpu.memory_space<vmem>>, vector<1x128x128xbf16>
    %127 = vector.shape_cast %126 : vector<1x128x128xbf16> to vector<128x128xbf16>
    %cst_87 = arith.constant dense<0.000000e+00> : vector<192x128xf32>
    %128 = tpu.matmul %125, %127, %cst_87 {dimension_numbers = #tpu.dot_dimension_numbers<[1], [0], [0], [1], [0, 0, 1, 1], [], []>} : vector<192x128xbf16>, vector<128x128xbf16>, vector<192x128xf32> -> vector<192x128xf32>
    %129 = arith.addf %124, %128 : vector<192x128xf32>
    %c40 = arith.constant 40 : index
    %c0_88 = arith.constant 0 : index
    %130 = vector.load %arg9[%c40, %c0_88] : memref<264x128xbf16, #tpu.memory_space<vmem>>, vector<192x128xbf16>
    %c4_89 = arith.constant 4 : index
    %c0_90 = arith.constant 0 : index
    %c0_91 = arith.constant 0 : index
    %131 = vector.load %arg4[%c4_89, %c0_90, %c0_91] : memref<9x128x128xbf16, #tpu.memory_space<vmem>>, vector<1x128x128xbf16>
    %132 = vector.shape_cast %131 : vector<1x128x128xbf16> to vector<128x128xbf16>
    %cst_92 = arith.constant dense<0.000000e+00> : vector<192x128xf32>
    %133 = tpu.matmul %130, %132, %cst_92 {dimension_numbers = #tpu.dot_dimension_numbers<[1], [0], [0], [1], [0, 0, 1, 1], [], []>} : vector<192x128xbf16>, vector<128x128xbf16>, vector<192x128xf32> -> vector<192x128xf32>
    %134 = arith.addf %129, %133 : vector<192x128xf32>
    %c41 = arith.constant 41 : index
    %c0_93 = arith.constant 0 : index
    %135 = vector.load %arg9[%c41, %c0_93] : memref<264x128xbf16, #tpu.memory_space<vmem>>, vector<192x128xbf16>
    %c5_94 = arith.constant 5 : index
    %c0_95 = arith.constant 0 : index
    %c0_96 = arith.constant 0 : index
    %136 = vector.load %arg4[%c5_94, %c0_95, %c0_96] : memref<9x128x128xbf16, #tpu.memory_space<vmem>>, vector<1x128x128xbf16>
    %137 = vector.shape_cast %136 : vector<1x128x128xbf16> to vector<128x128xbf16>
    %cst_97 = arith.constant dense<0.000000e+00> : vector<192x128xf32>
    %138 = tpu.matmul %135, %137, %cst_97 {dimension_numbers = #tpu.dot_dimension_numbers<[1], [0], [0], [1], [0, 0, 1, 1], [], []>} : vector<192x128xbf16>, vector<128x128xbf16>, vector<192x128xf32> -> vector<192x128xf32>
    %139 = arith.addf %134, %138 : vector<192x128xf32>
    %c63 = arith.constant 63 : index
    %c0_98 = arith.constant 0 : index
    %140 = vector.load %arg9[%c63, %c0_98] : memref<264x128xbf16, #tpu.memory_space<vmem>>, vector<192x128xbf16>
    %c6_99 = arith.constant 6 : index
    %c0_100 = arith.constant 0 : index
    %c0_101 = arith.constant 0 : index
    %141 = vector.load %arg4[%c6_99, %c0_100, %c0_101] : memref<9x128x128xbf16, #tpu.memory_space<vmem>>, vector<1x128x128xbf16>
    %142 = vector.shape_cast %141 : vector<1x128x128xbf16> to vector<128x128xbf16>
    %cst_102 = arith.constant dense<0.000000e+00> : vector<192x128xf32>
    %143 = tpu.matmul %140, %142, %cst_102 {dimension_numbers = #tpu.dot_dimension_numbers<[1], [0], [0], [1], [0, 0, 1, 1], [], []>} : vector<192x128xbf16>, vector<128x128xbf16>, vector<192x128xf32> -> vector<192x128xf32>
    %144 = arith.addf %139, %143 : vector<192x128xf32>
    %c64 = arith.constant 64 : index
    %c0_103 = arith.constant 0 : index
    %145 = vector.load %arg9[%c64, %c0_103] : memref<264x128xbf16, #tpu.memory_space<vmem>>, vector<192x128xbf16>
    %c7_104 = arith.constant 7 : index
    %c0_105 = arith.constant 0 : index
    %c0_106 = arith.constant 0 : index
    %146 = vector.load %arg4[%c7_104, %c0_105, %c0_106] : memref<9x128x128xbf16, #tpu.memory_space<vmem>>, vector<1x128x128xbf16>
    %147 = vector.shape_cast %146 : vector<1x128x128xbf16> to vector<128x128xbf16>
    %cst_107 = arith.constant dense<0.000000e+00> : vector<192x128xf32>
    %148 = tpu.matmul %145, %147, %cst_107 {dimension_numbers = #tpu.dot_dimension_numbers<[1], [0], [0], [1], [0, 0, 1, 1], [], []>} : vector<192x128xbf16>, vector<128x128xbf16>, vector<192x128xf32> -> vector<192x128xf32>
    %149 = arith.addf %144, %148 : vector<192x128xf32>
    %c65 = arith.constant 65 : index
    %c0_108 = arith.constant 0 : index
    %150 = vector.load %arg9[%c65, %c0_108] : memref<264x128xbf16, #tpu.memory_space<vmem>>, vector<192x128xbf16>
    %c8_109 = arith.constant 8 : index
    %c0_110 = arith.constant 0 : index
    %c0_111 = arith.constant 0 : index
    %151 = vector.load %arg4[%c8_109, %c0_110, %c0_111] : memref<9x128x128xbf16, #tpu.memory_space<vmem>>, vector<1x128x128xbf16>
    %152 = vector.shape_cast %151 : vector<1x128x128xbf16> to vector<128x128xbf16>
    %cst_112 = arith.constant dense<0.000000e+00> : vector<192x128xf32>
    %153 = tpu.matmul %150, %152, %cst_112 {dimension_numbers = #tpu.dot_dimension_numbers<[1], [0], [0], [1], [0, 0, 1, 1], [], []>} : vector<192x128xbf16>, vector<128x128xbf16>, vector<192x128xf32> -> vector<192x128xf32>
    %154 = arith.addf %149, %153 : vector<192x128xf32>
    %155 = vector.broadcast %16 : vector<1x128xf32> to vector<192x128xf32>
    %156 = arith.mulf %154, %155 : vector<192x128xf32>
    %157 = vector.broadcast %17 : vector<1x128xf32> to vector<192x128xf32>
    %158 = arith.addf %156, %157 : vector<192x128xf32>
    %cst_113 = arith.constant 0.000000e+00 : f32
    %159 = vector.broadcast %cst_113 : f32 to vector<192x128xf32>
    %160 = arith.maximumf %158, %159 : vector<192x128xf32>
    %161 = arith.truncf %160 : vector<192x128xf32> to vector<192x128xbf16>
    %c0_114 = arith.constant 0 : index
    %c0_115 = arith.constant 0 : index
    %c0_116 = arith.constant 0 : index
    %c0_117 = arith.constant 0 : index
    %162 = vector.load %arg7[%c0_114, %c0_115, %c0_116, %c0_117] : memref<1x1x192x128xbf16, #tpu.memory_space<vmem>>, vector<1x1x192x128xbf16>
    %163 = vector.shape_cast %162 : vector<1x1x192x128xbf16> to vector<192x128xbf16>
    %164 = vector.shape_cast %161 : vector<192x128xbf16> to vector<1x1x192x128xbf16>
    tpu.vector_store %arg7[%c0_114, %c0_115, %c0_116, %c0_117], %164 {strides = array<i32>} : memref<1x1x192x128xbf16, #tpu.memory_space<vmem>>, vector<1x1x192x128xbf16>,
    return
  }
  func.func @transform_1(%arg0: i32, %arg1: i32) -> (i32, i32, i32) {
    %c0_i32 = arith.constant 0 : i32
    %c0_i32_0 = arith.constant 0 : i32
    %c0_i32_1 = arith.constant 0 : i32
    %c0_i32_2 = arith.constant 0 : i32
    return %c0_i32, %c0_i32_0, %c0_i32_1 : i32, i32, i32
  }
  func.func @transform_2(%arg0: i32, %arg1: i32) -> (i32, i32, i32) {
    %c0_i32 = arith.constant 0 : i32
    %c0_i32_0 = arith.constant 0 : i32
    %c0_i32_1 = arith.constant 0 : i32
    %c0_i32_2 = arith.constant 0 : i32
    return %c0_i32, %c0_i32_0, %c0_i32_1 : i32, i32, i32
  }
  func.func @transform_3(%arg0: i32, %arg1: i32) -> (i32, i32) {
    %c0_i32 = arith.constant 0 : i32
    %c0_i32_0 = arith.constant 0 : i32
    %c0_i32_1 = arith.constant 0 : i32
    return %c0_i32, %c0_i32_0 : i32, i32
  }
  func.func @transform_4(%arg0: i32, %arg1: i32) -> (i32, i32) {
    %c0_i32 = arith.constant 0 : i32
    %c0_i32_0 = arith.constant 0 : i32
    %c0_i32_1 = arith.constant 0 : i32
    return %c0_i32, %c0_i32_0 : i32, i32
  }
  func.func @transform_5(%arg0: i32, %arg1: i32) -> (i32, i32, i32, i32) {
    %c0_i32 = arith.constant 0 : i32
    %c0_i32_0 = arith.constant 0 : i32
    %c0_i32_1 = arith.constant 0 : i32
    return %arg0, %arg1, %c0_i32, %c0_i32_0 : i32, i32, i32, i32
  }
}

</mosaic_0001>

<bundles_post_ra>
// kernel: tpu_custom_call.1
= control target key start
LH: loop header
LB: loop body
LE: loop exit
PB: predicated region body
PF: predicated region fallthrough
CT: control target
= control target key end

     0   :  { %s9919_s0 = inlined_call_operand.hbm [shape: bf16[2,488,128], index: 0, kind: input, shape index: {}]   ;;  %s9920_s1 = inlined_call_operand.hbm [shape: bf16[9,128,128], index: 1, kind: input, shape index: {}]   ;;  %s9921_s2 = inlined_call_operand.hbm [shape: bf16[9,128,128], index: 2, kind: input, shape index: {}]   ;;  %s9922_s3 = inlined_call_operand.vmem [shape: f32[2,128], index: 3, kind: input, shape index: {}]   ;;  %s9923_s4 = inlined_call_operand.hbm [shape: f32[2,128], index: 4, kind: input, shape index: {}]   ;;  %s9924_s5 = inlined_call_operand.hbm [shape: bf16[2,2,192,128], index: 5, kind: output, shape index: {}]  }
   0x1   :  { %9932 = sst [smem:[#allocation30_spill]] %s9920_s1 }
   0x2   :  { %9933 = sst [smem:[#allocation31_spill]] %s9921_s2 }
   0x3   :  { %9934 = sst [smem:[#allocation32_spill]] %s9923_s4 }
   0x4   :  { %10 = vsyncpa [#allocation6], 0 }
   0x5   :  { %11 = vsyncpa [#allocation9], 0 }
   0x6   :  { %12 = vsyncpa [#allocation7], 0 }
   0x7   :  { %14 = vsyncpa [#allocation7 + $0x1], 0  ;;  %s8493_s18 = smov 0   ;;  %s8495_s19 = smov 0  }
   0x8   :  { %s8497_s20 = smov 0   ;;  %s8499_s21 = smov 0  }
   0x9   :  { %s8501_s22 = smov 0   ;;  %s8503_s23 = smov 0  }
   0xa   :  { %s8505_s24 = smov 0   ;;  %s8507_s25 = smov 0  }
   0xb LB: > { %9935 = sst [smem:[#allocation22_spill]] %s8441_s23  ;;  %s6179_s26 = sadd.s32 4294967295, %s8449_s25   ;;  %s8449_s25 = sphi %s8507_s25, %s20_s25   ;;  %s8445_s24 = sphi %s8505_s24, %s9961_s24   ;;  %s8441_s23 = sphi %s8503_s23, %s9960_s23   ;;  %s8437_s22 = sphi %s8501_s22, %s9959_s22   ;;  %s8433_s21 = sphi %s8499_s21, %s9958_s21   ;;  %s8429_s20 = sphi %s8497_s20, %s9964_s20   ;;  %s8425_s19 = sphi %s8495_s19, %s9963_s19   ;;  %s8421_s18 = sphi %s8493_s18, %s9962_s18  }
   0xc   : > { %9936 = sst [smem:[#allocation23_spill]] %s8445_s24  ;;  %s6180_s27 = sadd.s32 4294967294, %s8449_s25  }
   0xd   : > { %s29_s28 = sadd.s32 1, %s8441_s23  ;;  %s32_s29 = sadd.s32 1, %s8445_s24 }
   0xe   : > { %p30_p0 = scmp.ge.s32.totalorder %s29_s28, 2  ;;  %s125_s30 = sadd.s32 1, %s8429_s20 }
   0xf   : > { %p135_p1 = scmp.ne.s32.totalorder %s8429_s20, %s8425_s19  ;;  %p136_p2 = scmp.eq.s32.totalorder %s6179_s26, 3 }
  0x10   : > { %s9966_s28 = smov (%p30_p0, %s29_s28), 0  ;;  %s9968_s29 = smov (!%p30_p0, %s32_s29), %s8445_s24 }
  0x11   : > { %9937 = sst [smem:[#allocation24_spill]] %s9966_s28  ;;  %s121_s6 = ssub.s32 %s8441_s23, %s9966_s28 }
  0x12   : > { %p8545_p3 = por %p136_p2, %p135_p1  ;;  %p34_p4 = scmp.ge.s32.totalorder %s9968_s29, 2 }
  0x13   : > { %p141_p5 = scmp.ne.s32.totalorder %s8425_s19, %s8421_s18  ;;  %p142_p6 = scmp.eq.s32.totalorder %s6180_s27, 3 }
  0x14   : > { %p6181_p7 = scmp.ge.s32.totalorder %s8449_s25, 1  ;;  %s9970_s29 = smov (%p34_p4, %s9968_s29), 0 }
  0x15   : > { %9939 = sst [smem:[#allocation25_spill]] %s9970_s29  ;;  %p8554_p8 = por %p142_p6, %p141_p5 }
  0x16   : > { %p149_p9 = scmp.lt.s32.totalorder %s8449_s25, 5  ;;  %s120_s9 = ssub.s32 %s8445_s24, %s9970_s29 }
  0x17   : > { %s122_s10 = sor.u32 %s121_s6, %s120_s9  ;;  %p8565_p12 = scmp.eq.s32.totalorder %s6179_s26, 0 }
  0x18   : > { %p8561_p10 = pnand %p6181_p7, %p149_p9  ;;  %p123_p11 = scmp.eq.s32.totalorder %s122_s10, 0 }
  0x19   : > { %s9945_s2 = sld [smem:[#allocation31_spill]]  ;;  %s8451_s26 = smov [#allocation8]  }
  0x1a   : > { %p8095_p13 = pneg %p8561_p10  ;;  %s176_s27 = sshll.u32 %s8451_s26, 4  ;;  %s177_s27 = int_to_ptr.vmem [resolvable:$true] %s176_s27 }
  0x1b   : > { %s8572_s13 = scalar_select %p123_p11, %s8429_s20, %s125_s30  }
  0x1c   : > { %p8576_p0 = pnand %p8565_p12, %p8095_p13  ;;  %s8452_s6 = smov 64  }
  0x1d   : > { %9943 = sst [smem:[#allocation26_spill]] %s8572_s13  ;;  %s8453_s9 = smov 4  }
  0x1e   : > { %s9946_s1 = sld [smem:[#allocation30_spill]]  ;;  %s8454_s28 = smov [#allocation5]  }
  0x1f   : > { %s174_s17 = sshll.u32 %s9945_s2, 4  ;;  %s162_s24 = sshll.u32 %s8454_s28, 4  ;;  %s175_s17 = int_to_ptr.hbm [resolvable:$true] %s174_s17  ;;  %s163_s24 = int_to_ptr.vmem [resolvable:$true] %s162_s24 }
  0x20   : > { %8101 = dma.hbm_to_vmem [thread:$0]  (!%p8576_p0), %s175_s17, 9216, %s177_s27, [#allocation9], %s8452_s6, %s8452_s6, %s8453_s9  }
  0x21   : > { %s9947_s4 = sld [smem:[#allocation32_spill]]  ;;  %s8455_s26 = smov [#allocation10]  }
  0x22   : > { %s194_s23 = sshll.u32 %s8455_s26, 4  ;;  %s195_s23 = int_to_ptr.vmem [resolvable:$true] %s194_s23 }
  0x24   : > { %s160_s29 = sshll.u32 %s9946_s1, 4  ;;  %207 = sbr.rel (%p8561_p10) target bundleno = 1802 (0x70a), region = 36  ;;  %s161_s29 = int_to_ptr.hbm [resolvable:$true] %s160_s29 }
  0x25   : > { %8098 = dma.hbm_to_vmem [thread:$0]  (!%p8576_p0), %s161_s29, 9216, %s163_s24, [#allocation6], %s8452_s6, %s8452_s6, %s8453_s9  }
  0x27   : > { %s192_s2 = sshll.u32 %s9947_s4, 4  ;;  %s193_s2 = int_to_ptr.hbm [resolvable:$true] %s192_s2 }
  0x28   : > { %8104 = dma.hbm_to_vmem [thread:$0]  (!%p8576_p0), %s193_s2, 32, %s195_s23, [#allocation9]  }
  0x29   : > { %8403 = dma.done.wait (%p8565_p12), [#allocation6], 9216  }
  0x2a   : > { %8405 = vsyncadd (%p8565_p12), [#allocation6], 4294958080 }
  0x2b   : > { %8407 = dma.done.wait (%p8565_p12), [#allocation9], 9248  }
  0x2c   : > { %8409 = vsyncadd (%p8565_p12), [#allocation9], 4294958048  ;;  %s9929_s2 = sand.u32 1, %s8425_s19   ;;  %p6189_p1 = scmp.ne.s32.totalorder %s8433_s21, 0 }
  0x2d   : > { %s8609_s23 = smul.u32 96, %s9929_s2  ;;  %p8115_p2 = scmp.eq.s32.totalorder %s8433_s21, 0 }
  0x2e   : > { %s7210_s24 = smul.u32 244, %s8437_s22  ;;  %s8456_s28 = smov [#allocation2]  }
  0x2f   : > { %s257_s29 = sshll.u32 %s8456_s28, 4  ;;  %s8617_s27 = sand.u32 1, %s8433_s21  ;;  %s258_s29 = int_to_ptr.vmem [resolvable:$true] %s257_s29 }
  0x30   : > { %s247_s14 = scalar_lea.hbm %s9919_s0, %s7210_s24  ;;  %s261_s6 = sadd.s32 1, %s8433_s21 }
  0x31   : > { %s255_s17 = sshll.u32 %s247_s14, 4  ;;  %s9930_s16 = scalar_lea.hbm %s9919_s0, 488  ;;  %s256_s17 = int_to_ptr.hbm [resolvable:$true] %s255_s17 }
  0x32   : > { %s8286_s9 = sshra.s32 %s256_s17, 4  ;;  %s8287_s9 = int_to_ptr.hbm [resolvable:$true] %s8286_s9 }
  0x33   : > { %s8288_s30 = scalar_lea.hbm %s8287_s9, 148  ;;  %p8293_p7 = scmp.lt.s32.totalorder %s8287_s9, %s9919_s0 }
  0x34   : > { %p8289_p4 = scmp.ne.s32.totalorder %s8287_s9, %s8288_s30  ;;  %p8294_p9 = scmp.lt.s32.totalorder %s9930_s16, %s8288_s30 }
  0x36   : > { %p8290_p5 = pnand %p8289_p4, %p8115_p2  ;;  %p8295_p10 = por %p8294_p9, %p8293_p7 }
  0x38   : > { %p8291_p6 = pneg %p8290_p5 }
  0x3a   : > { %p8296_p11 = pnand %p8295_p10, %p8291_p6 }
  0x3c   : > { %8299 = shalt.err (!%p8296_p11)  }
  0x3d   : > { %8090 = dma.hbm_to_vmem [thread:$0]  (%p8115_p2), %s256_s17, 2368, %s258_s29, [#allocation4] }
  0x3e   : > { %p8634_p12 = scmp.lt.s32.totalorder %s261_s6, 2  ;;  %s266_s14 = ssub.s32 1, %s8617_s27 }
  0x3f   : > { %s267_s9 = smul.u32 192, %s261_s6  ;;  %s277_s17 = scalar_lea.sflag [#allocation4], %s266_s14 }
  0x40   : > { %s270_s10 = smul.u32 61, %s8437_s22 }
  0x41   : > { %s268_s15 = sshra.s32 %s267_s9, 3  ;;  %s7211_s26 = smul.u32 148, %s266_s14 }
  0x42   : > { %s271_s30 = sadd.s32 %s270_s10, %s268_s15  ;;  %s7212_s28 = smul.u32 148, %s8617_s27 }
  0x43   : > { %s6192_s24 = sshll.u32 %s271_s30, 2  ;;  %s276_s1 = scalar_lea.vmem [#allocation2], %s7211_s26 }
  0x44   : > { %s273_s16 = scalar_lea.hbm %s9919_s0, %s6192_s24  ;;  %s287_s4 = sshll.u32 %s276_s1, 4  ;;  %s288_s4 = int_to_ptr.vmem [resolvable:$true] %s287_s4 }
  0x45   : > { %s285_s29 = sshll.u32 %s273_s16, 4  ;;  %s9949_s26 = scalar_lea.hbm %s9919_s0, 488  ;;  %s286_s29 = int_to_ptr.hbm [resolvable:$true] %s285_s29 }
  0x46   : > { %s8314_s13 = sshra.s32 %s286_s29, 4  ;;  %s8315_s13 = int_to_ptr.hbm [resolvable:$true] %s8314_s13 }
  0x47   : > { %s8316_s6 = scalar_lea.hbm %s8315_s13, 148  ;;  %p8321_p4 = scmp.lt.s32.totalorder %s8315_s13, %s9919_s0 }
  0x48   : > { %p8317_p13 = scmp.ne.s32.totalorder %s8315_s13, %s8316_s6  ;;  %p8322_p5 = scmp.lt.s32.totalorder %s9949_s26, %s8316_s6 }
  0x4a   : > { %p8318_p0 = pnand %p8317_p13, %p8634_p12  ;;  %p8323_p6 = por %p8322_p5, %p8321_p4 }
  0x4c   : > { %p8319_p2 = pneg %p8318_p0 }
  0x4e   : > { %p8324_p7 = pnand %p8323_p6, %p8319_p2 }
  0x50   : > { %8327 = shalt.err (!%p8324_p7)  }
  0x51   : > { %8092 = dma.hbm_to_vmem [thread:$0]  (%p8634_p12), %s286_s29, 2368, %s288_s4, %s277_s17 }
  0x52   : > { %s8656_s1 = scalar_lea.vmem [#allocation11], %s8609_s23  ;;  %s8658_s16 = scalar_lea.vmem [#allocation2], %s7212_s28 }
  0x53   : > { %s294_s14 = scalar_lea.sflag [#allocation4], %s8617_s27 }
  0x54   : > { %8410 = dma.done.wait %s294_s14, 2368 }
  0x55   : > { %8411 = vsyncadd %s294_s14, 4294964928  ;;  %v8457_v0 = vmov 0   ;;  %v8661_v1 = vld [vmem:[#allocation10] sm:$0x1]  ;;  %v8663_v2 = vld [vmem:[#allocation10 + $0x1] sm:$0x1] }
  0x56   : > { %3199 = vst [vmem:[#allocation3 + $0x4] sm:$0xf] %v8457_v0  ;;  %v7242_v3 = vld [vmem:[#allocation5 + $0x78] sm:$0xff]  ;;  %v7241_v5 = vld [vmem:[#allocation5 + $0x70] sm:$0xff]  ;;  %v7240_v7 = vld [vmem:[#allocation5 + $0x68] sm:$0xff]  ;;  %vm892_vm1 = vcmask 1046528  }
  0x57   : > { %3200 = vst [vmem:[#allocation3 + $0x80] sm:$0xf] %v8457_v0  ;;  %v7234_v4 = vld [vmem:[#allocation5 + $0x38] sm:$0xff]  ;;  %640 = vmatpush.bf16.msra.mxu0 %v7242_v3  ;;  %v7233_v6 = vld [vmem:[#allocation5 + $0x30] sm:$0xff]  ;;  %v7232_v8 = vld [vmem:[#allocation5 + $0x28] sm:$0xff] }
  0x58   : > { %9950 = vst [vmem:[#allocation27_spill] sm:$0xff] %v8661_v1  ;;  %787 = vmatpush.bf16.msra.mxu1 %v7234_v4  ;;  %8027 = vmatpush.bf16.msra.mxu3 %v7234_v4  ;;  %v7250_v9 = vld [vmem:[#allocation5 + $0xb8] sm:$0xff]  ;;  %v7239_v10 = vld [vmem:[#allocation5 + $0x60] sm:$0xff]  ;;  %v7237_v15 = vld [vmem:[#allocation5 + $0x50] sm:$0xff]  ;;  %vm452_vm0 = vsmask.f32 7424 }
  0x59   : > { %9951 = vst [vmem:[#allocation28_spill] sm:$0xff] %v8663_v2  ;;  %8035 = vmatpush.bf16.msra.mxu2 %v7250_v9  ;;  %v7231_v11 = vld [vmem:[#allocation5 + $0x20] sm:$0xff]  ;;  %v7238_v12 = vld [vmem:[#allocation5 + $0x58] sm:$0xff]  ;;  %v7249_v18 = vld [vmem:[#allocation5 + $0xb0] sm:$0xff] }
  0x5a   : > { %v7230_v13 = vld [vmem:[#allocation5 + $0x18] sm:$0xff]  ;;  %v7229_v19 = vld [vmem:[#allocation5 + $0x10] sm:$0xff]  ;;  %v7236_v20 = vld [vmem:[#allocation5 + $0x48] sm:$0xff] }
  0x5b   : > { %641 = vmatpush.bf16.msra.mxu0 %v7241_v5  ;;  %v7466_v14 = vld [vmem:[%s8658_s16] sm:$0xff]   ;;  %v8667_v16 = vld [vmem:[%s8658_s16 + $0x8] sm:$0xff]  ;;  %v8672_v30 = vld [vmem:[%s8658_s16 + $0x50] sm:$0xff] }
  0x5c   : > { %788 = vmatpush.bf16.msra.mxu1 %v7233_v6  ;;  %8028 = vmatpush.bf16.msra.mxu3 %v7233_v6  ;;  %v456_v17 = vshll.u32 %v7466_v14, 16  ;;  %v454_v21 = vshrl.u32 %v7466_v14, 16  ;;  %v461_v23 = vshll.u32 %v8667_v16, 16  ;;  %v7228_v24 = vld [vmem:[#allocation5 + $0x8] sm:$0xff]  ;;  %v7235_v25 = vld [vmem:[#allocation5 + $0x40] sm:$0xff]  ;;  %v465_v32 = vshrl.u32 %v8667_v16, 16 }
  0x5d   : > { %8036 = vmatpush.bf16.msra.mxu2 %v7249_v18  ;;  %v7227_v28 = vld [vmem:[#allocation5] sm:$0xff]  ;;  %v7273_v38 = vld [vmem:[#allocation5 + $0xf8] sm:$0xff]  ;;  %v7248_v40 = vld [vmem:[#allocation5 + $0xa8] sm:$0xff] }
  0x5e   : > { %v458_v22 = vrot.slane %v456_v17, 1  ;;  %v463_v27 = vrot.slane %v461_v23, 1  ;;  %v8676_v31 = vld [vmem:[%s8658_s16 + $0x10] sm:$0xff]  ;;  %v8682_v37 = vld [vmem:[%s8658_s16 + $0x58] sm:$0xff]  ;;  %v8693_v51 = vld [vmem:[%s8658_s16 + $0x60] sm:$0xff] }
  0x5f   : > { %642 = vmatpush.bf16.msra.mxu0 %v7240_v7  ;;  %v469_v33 = vshll.u32 %v8676_v31, 16  ;;  %v8687_v39 = vld [vmem:[%s8658_s16 + $0x18] sm:$0xff]  ;;  %v473_v43 = vshrl.u32 %v8676_v31, 16  ;;  %v7246_v46 = vld [vmem:[#allocation5 + $0x98] sm:$0xff] }
  0x60   : > { %789 = vmatpush.bf16.msra.mxu1 %v7232_v8  ;;  %8029 = vmatpush.bf16.msra.mxu3 %v7232_v8  ;;  %v459_v26 = vor.u32 %v458_v22, %v454_v21  ;;  %v467_v34 = vor.u32 %v465_v32, %v463_v27  ;;  %v7272_v41 = vld [vmem:[#allocation5 + $0xf0] sm:$0xff]  ;;  %v7247_v42 = vld [vmem:[#allocation5 + $0xa0] sm:$0xff]  ;;  %v477_v44 = vshll.u32 %v8687_v39, 16  ;;  %v7271_v45 = vld [vmem:[#allocation5 + $0xe8] sm:$0xff]  ;;  %v481_v59 = vshrl.u32 %v8687_v39, 16 }
  0x61   : > { %v471_v35 = vrot.slane %v469_v33, 1  ;;  %8037 = vmatpush.bf16.msra.mxu2 %v7248_v40  ;;  %v7270_v49 = vld [vmem:[#allocation5 + $0xe0] sm:$0xff]  ;;  %v7245_v52 = vld [vmem:[#allocation5 + $0x90] sm:$0xff]  ;;  %v7269_v53 = vld [vmem:[#allocation5 + $0xd8] sm:$0xff] }
  0x62   : > { %v464_v29 = vsel %vm452_vm0, %v459_v26, %v463_v27  ;;  %v479_v48 = vrot.slane %v477_v44, 1  ;;  %v8698_v54 = vld [vmem:[%s8658_s16 + $0x20] sm:$0xff]  ;;  %v8701_v57 = vld [vmem:[%s8658_s16 + $0x30] sm:$0xff]  ;;  %v8704_v58 = vld [vmem:[%s8658_s16 + $0x28] sm:$0xff] }
  0x63   : > { %643 = vmatpush.bf16.msra.mxu0 %v7239_v10  ;;  %v472_v36 = vsel %vm452_vm0, %v467_v34, %v471_v35  ;;  %v475_v47 = vor.u32 %v473_v43, %v471_v35  ;;  %v7244_v55 = vld [vmem:[#allocation5 + $0x88] sm:$0xff]  ;;  %v7268_v56 = vld [vmem:[#allocation5 + $0xd0] sm:$0xff]  ;;  %v485_v60 = vshll.u32 %v8698_v54, 16  ;;  %v7243_v61 = vld [vmem:[#allocation5 + $0x80] sm:$0xff]  ;;  %v902_v63 = vrot.slane %v8704_v58, 1 }
  0x64   : > { %790 = vmatpush.bf16.msra.mxu1 %v7231_v11  ;;  %8030 = vmatpush.bf16.msra.mxu3 %v7231_v11  ;;  %v7267_v62 = vld [vmem:[#allocation5 + $0xc8] sm:$0xff]  ;;  %v904_v0 = vrot.slane %v8701_v57, 1  ;;  %v483_v3 = vor.u32 %v481_v59, %v479_v48  ;;  %v7266_v6 = vld [vmem:[#allocation5 + $0xc0] sm:$0xff]  ;;  %v489_v10 = vshrl.u32 %v8698_v54, 16  ;;  %v493_v11 = vshll.u32 %v8704_v58, 16 }
  0x65   : > { %8038 = vmatpush.bf16.msra.mxu2 %v7247_v42  ;;  %v480_v50 = vsel %vm452_vm0, %v475_v47, %v479_v48  ;;  %v487_v4 = vrot.slane %v485_v60, 1  ;;  %v8715_v8 = vld [vmem:[%s8658_s16 + $0x68] sm:$0xff]  ;;  %v501_v21 = vshll.u32 %v8701_v57, 16  ;;  %v7253_v48 = vld [vmem:[%s8658_s16 + $0x1c] sm:$0xff] }
  0x66   : > { %v905_v5 = vsel %vm892_vm1, %v902_v63, %v904_v0  ;;  %v7251_v27 = vld [vmem:[%s8658_s16 + $0xc] sm:$0xff]  ;;  %v7254_v60 = vld [vmem:[%s8658_s16 + $0x24] sm:$0xff] }
  0x67   : > { %644 = vmatpush.bf16.msra.mxu0 %v7238_v12  ;;  %v488_v7 = vsel %vm452_vm0, %v483_v3, %v487_v4  ;;  %v8924_v1 = vld [vmem:[%s8658_s16 + $0x24] sm:$0xff] }
  0x68   : > { %791 = vmatpush.bf16.msra.mxu1 %v7230_v13  ;;  %8031 = vmatpush.bf16.msra.mxu3 %v7230_v13  ;;  %v491_v13 = vor.u32 %v489_v10, %v487_v4  ;;  %v916_v10 = vrot.slane %v8693_v51, 1 }
  0x69   : > { %8039 = vmatpush.bf16.msra.mxu2 %v7246_v46 }
  0x6b   : > { %645 = vmatpush.bf16.msra.mxu0 %v7237_v15 }
  0x6c   : > { %792 = vmatpush.bf16.msra.mxu1 %v7229_v19  ;;  %8032 = vmatpush.bf16.msra.mxu3 %v7229_v19  ;;  %v7220_v19 = vld [vmem:[%s8658_s16 + $0x40] sm:$0xff] }
  0x6d   : > { %8040 = vmatpush.bf16.msra.mxu2 %v7245_v52  ;;  %v908_v22 = vrot.slane %v7220_v19, 1 }
  0x6f   : > { %646 = vmatpush.bf16.msra.mxu0 %v7236_v20  ;;  %v497_v20 = vshrl.u32 %v8704_v58, 16 }
  0x70   : > { %793 = vmatpush.bf16.msra.mxu1 %v7228_v24  ;;  %8033 = vmatpush.bf16.msra.mxu3 %v7228_v24  ;;  %v503_v24 = vrot.slane %v501_v21, 1  ;;  %v537_v21 = vshrl.u32 %v8672_v30, 16 }
  0x71   : > { %8041 = vmatpush.bf16.msra.mxu2 %v7244_v55 }
  0x73   : > { %647 = vmatpush.bf16.msra.mxu0 %v7235_v25 }
  0x74   : > { %794 = vmatpush.bf16.msra.mxu1 %v7227_v28  ;;  %8034 = vmatpush.bf16.msra.mxu3 %v7227_v28  ;;  %v7221_v28 = vld [vmem:[%s8658_s16 + $0x48] sm:$0xff] }
  0x75   : > { %8042 = vmatpush.bf16.msra.mxu2 %v7243_v61  ;;  %v910_v33 = vrot.slane %v7221_v28, 1  ;;  %v529_v4 = vshrl.u32 %v7221_v28, 16 }
  0x76   : > { %648 = vmatmul.bf16.vlgmr.msra.gmra.mxu0 %v464_v29  ;;  %v505_v29 = vshrl.u32 %v8701_v57, 16 }
  0x77   : > { %987 = vmatpush.bf16.msrb.mxu0 %v7250_v9  ;;  %795 = vmatmul.bf16.vlgmr.msra.gmra.mxu1 %v7466_v14  ;;  %v7219_v9 = vld [vmem:[%s8658_s16 + $0x38] sm:$0xff]  ;;  %v495_v14 = vrot.slane %v493_v11, 1 }
  0x78   : > { %845 = vmatmul.bf16.vlgmr.msra.gmra.mxu3 %v8672_v30  ;;  %1020 = vmatmul.bf16.vlgmr.msra.gmra.mxu2 %v905_v5  ;;  %v906_v12 = vrot.slane %v7219_v9, 1  ;;  %v509_v32 = vshll.u32 %v7219_v9, 16  ;;  %v507_v34 = vor.u32 %v505_v29, %v503_v24  ;;  %v533_v5 = vshll.u32 %v8672_v30, 16 }
  0x79   : > { %1286 = vmatpush.bf16.msrb.mxu3 %v7273_v38  ;;  %v496_v17 = vsel %vm452_vm0, %v491_v13, %v495_v14  ;;  %v499_v23 = vor.u32 %v497_v20, %v495_v14 }
  0x7a   : > { %v907_v15 = vsel %vm892_vm1, %v904_v0, %v906_v12  ;;  %v909_v25 = vsel %vm892_vm1, %v906_v12, %v908_v22  ;;  %v511_v35 = vrot.slane %v509_v32, 1 }
  0x7b   : > { %988 = vmatpush.bf16.msrb.mxu0 %v7249_v18  ;;  %v8725_v18 = vld [vmem:[%s8658_s16 + $0x70] sm:$0xff]  ;;  %v504_v26 = vsel %vm452_vm0, %v499_v23, %v503_v24 }
  0x7c   : > { %v512_v38 = vsel %vm452_vm0, %v507_v34, %v511_v35 }
  0x7d   : > { %1287 = vmatpush.bf16.msrb.mxu3 %v7272_v41  ;;  %v513_v41 = vshrl.u32 %v7219_v9, 16 }
  0x7f   : > { %989 = vmatpush.bf16.msrb.mxu0 %v7248_v40  ;;  %v7252_v40 = vld [vmem:[%s8658_s16 + $0x14] sm:$0xff]  ;;  %v515_v43 = vor.u32 %v513_v41, %v511_v35 }
  0x81   : > { %1288 = vmatpush.bf16.msrb.mxu3 %v7271_v45  ;;  %v912_v45 = vrot.slane %v8672_v30, 1 }
  0x83   : > { %990 = vmatpush.bf16.msrb.mxu0 %v7247_v42  ;;  %v517_v42 = vshll.u32 %v7220_v19, 16 }
  0x85   : > { %1289 = vmatpush.bf16.msrb.mxu3 %v7270_v49  ;;  %v519_v44 = vrot.slane %v517_v42, 1  ;;  %v521_v49 = vshrl.u32 %v7220_v19, 16 }
  0x86   : > { %653 = vmatmul.bf16.gmra.mxu0 %v472_v36  ;;  %v911_v36 = vsel %vm892_vm1, %v908_v22, %v910_v33  ;;  %v541_v22 = vshll.u32 %v8682_v37, 16 }
  0x87   : > { %800 = vmatmul.bf16.gmra.mxu1 %v8667_v16  ;;  %991 = vmatpush.bf16.msrb.mxu0 %v7246_v46  ;;  %v913_v46 = vsel %vm892_vm1, %v910_v33, %v912_v45  ;;  %v520_v47 = vsel %vm452_vm0, %v515_v43, %v519_v44  ;;  %v7256_v33 = vld [vmem:[%s8658_s16 + $0x34] sm:$0xff] }
  0x88   : > { %850 = vmatmul.bf16.gmra.mxu3 %v8682_v37  ;;  %1025 = vmatmul.bf16.gmra.mxu2 %v907_v15  ;;  %v7255_v15 = vld [vmem:[%s8658_s16 + $0x2c] sm:$0xff] }
  0x89   : > { %1290 = vmatpush.bf16.msrb.mxu3 %v7269_v53 }
  0x8b   : > { %992 = vmatpush.bf16.msrb.mxu0 %v7245_v52  ;;  %v523_v52 = vor.u32 %v521_v49, %v519_v44  ;;  %v920_v44 = vrot.slane %v8725_v18, 1  ;;  %v7257_v49 = vld [vmem:[%s8658_s16 + $0x3c] sm:$0xff] }
  0x8d   : > { %1291 = vmatpush.bf16.msrb.mxu3 %v7268_v56 }
  0x8f   : > { %993 = vmatpush.bf16.msrb.mxu0 %v7244_v55  ;;  %v914_v55 = vrot.slane %v8682_v37, 1 }
  0x91   : > { %1292 = vmatpush.bf16.msrb.mxu3 %v7267_v62  ;;  %v915_v56 = vsel %vm892_vm1, %v912_v45, %v914_v55  ;;  %v917_v12 = vsel %vm892_vm1, %v914_v55, %v916_v10 }
  0x93   : > { %994 = vmatpush.bf16.msrb.mxu0 %v7243_v61 }
  0x95   : > { %1293 = vmatpush.bf16.msrb.mxu3 %v7266_v6 }
  0x96   : > { %658 = vmatmul.bf16.gmra.mxu0 %v480_v50  ;;  %v525_v50 = vshll.u32 %v7221_v28, 16 }
  0x97   : > { %805 = vmatmul.bf16.gmra.mxu1 %v8676_v31 }
  0x98   : > { %855 = vmatmul.bf16.gmra.mxu3 %v8693_v51  ;;  %1030 = vmatmul.bf16.gmra.mxu2 %v909_v25  ;;  %v527_v53 = vrot.slane %v525_v50, 1  ;;  %v543_v25 = vrot.slane %v541_v22, 1 }
  0x9a   : > { %v528_v59 = vsel %vm452_vm0, %v523_v52, %v527_v53 }
  0xa6   : > { %663 = vmatmul.bf16.gmra.mxu0 %v488_v7  ;;  %v531_v7 = vor.u32 %v529_v4, %v527_v53 }
  0xa7   : > { %810 = vmatmul.bf16.gmra.mxu1 %v8687_v39 }
  0xa8   : > { %860 = vmatmul.bf16.gmra.mxu3 %v8715_v8  ;;  %1035 = vmatmul.bf16.gmra.mxu2 %v911_v36 }
  0xb6   : > { %668 = vmatmul.bf16.gmra.mxu0 %v496_v17 }
  0xb7   : > { %815 = vmatmul.bf16.gmra.mxu1 %v8698_v54 }
  0xb8   : > { %865 = vmatmul.bf16.gmra.mxu3 %v8725_v18  ;;  %1040 = vmatmul.bf16.gmra.mxu2 %v913_v46 }
  0xc6   : > { %673 = vmatmul.bf16.gmra.mxu0 %v504_v26  ;;  %v918_v26 = vrot.slane %v8715_v8, 1 }
  0xc7   : > { %820 = vmatmul.bf16.gmra.mxu1 %v8704_v58  ;;  %v8904_v58 = vld [vmem:[%s8658_s16 + $0x20] sm:$0xff] }
  0xc8   : > { %1294 = vmatmul.bf16.vlgmr.msrb.gmra.mxu3 %v7251_v27  ;;  %1045 = vmatmul.bf16.gmra.mxu2 %v915_v56  ;;  %v919_v29 = vsel %vm892_vm1, %v916_v10, %v918_v26  ;;  %v921_v46 = vsel %vm892_vm1, %v918_v26, %v920_v44  ;;  %v553_v56 = vshrl.u32 %v8693_v51, 16  ;;  %9952 = vst [vmem:[#allocation29_spill] sm:$0xff] %v8904_v58 }
  0xd6   : > { %678 = vmatmul.bf16.gmra.mxu0 %v512_v38  ;;  %v545_v38 = vshrl.u32 %v8682_v37, 16 }
  0xd7   : > { %825 = vmatmul.bf16.gmra.mxu1 %v8701_v57 }
  0xd8   : > { %1299 = vmatmul.bf16.gmra.mxu3 %v7252_v40  ;;  %1050 = vmatmul.bf16.gmra.mxu2 %v917_v12  ;;  %v549_v40 = vshll.u32 %v8693_v51, 16  ;;  %v547_v42 = vor.u32 %v545_v38, %v543_v25 }
  0xda   : > { %v551_v43 = vrot.slane %v549_v40, 1 }
  0xe6   : > { %683 = vmatmul.bf16.gmra.mxu0 %v520_v47 }
  0xe7   : > { %830 = vmatmul.bf16.gmra.mxu1 %v7219_v9  ;;  %v535_v9 = vrot.slane %v533_v5, 1  ;;  %v555_v5 = vor.u32 %v553_v56, %v551_v43  ;;  %v7294_v56 = vld [vmem:[#allocation5 + $0x130] sm:$0xff] }
  0xe8   : > { %1304 = vmatmul.bf16.gmra.mxu3 %v7253_v48  ;;  %1055 = vmatmul.bf16.gmra.mxu2 %v919_v29  ;;  %v552_v48 = vsel %vm452_vm0, %v547_v42, %v551_v43 }
  0xe9   : > { %v536_v14 = vsel %vm452_vm0, %v531_v7, %v535_v9  ;;  %v539_v24 = vor.u32 %v537_v21, %v535_v9 }
  0xf3   : > { %v649_v57 = vpop.f32.mrf.mxu0 }
  0xf4   : > { %v796_v61 = vpop.f32.mrf.mxu1 }
  0xf5   : > { %v8750_v62 = vadd.f32 %v796_v61, %v649_v57  ;;  %v557_v57 = vshll.u32 %v8715_v8, 16 }
  0xf6   : > { %688 = vmatmul.bf16.gmra.mxu0 %v528_v59  ;;  %v356_v59 = vld [vmem:[%s8658_s16 + $0x78] sm:$0x1] }
  0xf7   : > { %835 = vmatmul.bf16.gmra.mxu1 %v7220_v19  ;;  %v435_v61 = vunpack.c.l.b16 %v356_v59  ;;  %v559_v7 = vrot.slane %v557_v57, 1 }
  0xf8   : > { %1309 = vmatmul.bf16.gmra.mxu3 %v7254_v60  ;;  %1060 = vmatmul.bf16.gmra.mxu2 %v921_v46  ;;  %v569_v46 = vshrl.u32 %v8725_v18, 16 }
  0xf9   : > { %v451_v4 = vpack.c.b16 %v435_v61, %v435_v61  ;;  %v7260_v61 = vld [vmem:[%s8658_s16 + $0x54] sm:$0xff] }
  0xfb   : > { %v846_v0 = vpop.f32.mrf.mxu3  ;;  %v8752_v3 = vpop.f32.mrf.mxu0  ;;  %v922_v9 = vrot.slane %v451_v4, 1 }
  0xfc   : > { %v8755_v6 = vpop.f32.mrf.mxu1  ;;  %v1021_v37 = vpop.f32.mrf.mxu2 }
  0xfd   : > { %v923_v12 = vsel %vm892_vm1, %v920_v44, %v922_v9  ;;  %v7749_v9 = vld [vmem:[%s8658_s16] sm:$0xe] }
 0x103   : > { %v8758_v11 = vpop.f32.mrf.mxu3  ;;  %v654_v13 = vpop.f32.mrf.mxu0 }
 0x104   : > { %v801_v17 = vpop.f32.mrf.mxu1  ;;  %v1023_v0 = vpop.f32.mrf.mxu2 }
 0x106   : > { %693 = vmatmul.bf16.gmra.mxu0 %v536_v14  ;;  %v560_v14 = vsel %vm452_vm0, %v555_v5, %v559_v7 }
 0x107   : > { %840 = vmatmul.bf16.gmra.mxu1 %v7221_v28  ;;  %v544_v28 = vsel %vm452_vm0, %v539_v24, %v543_v25  ;;  %v561_v24 = vshrl.u32 %v8715_v8, 16  ;;  %v565_v25 = vshll.u32 %v8725_v18, 16  ;;  %v7295_v8 = vld [vmem:[#allocation5 + $0x138] sm:$0xff] }
 0x108   : > { %1314 = vmatmul.bf16.gmra.mxu3 %v7255_v15  ;;  %v7258_v15 = vld [vmem:[%s8658_s16 + $0x44] sm:$0xff]  ;;  %1065 = vmatmul.bf16.gmra.mxu2 %v923_v12 }
 0x109   : > { %v563_v29 = vor.u32 %v561_v24, %v559_v7  ;;  %1713 = vmatpush.bf16.msra.mxu0 %v7295_v8  ;;  %v7748_v7 = vld [vmem:[%s8658_s16] sm:$0xf0] }
 0x10b   : > { %v8763_v19 = vpop.f32.mrf.mxu3  ;;  %v8765_v20 = vpop.f32.mrf.mxu0 }
 0x10c   : > { %v8769_v23 = vpop.f32.mrf.mxu1  ;;  %v1026_v17 = vpop.f32.mrf.mxu2 }
 0x10d   : > { %1714 = vmatpush.bf16.msra.mxu0 %v7294_v56  ;;  %v7326_v56 = vld [vmem:[#allocation5 + $0x1b8] sm:$0xff] }
 0x10e   : > { %2241 = vmatpush.bf16.msrb.mxu2 %v7326_v56 }
 0x113   : > { %v853_v27 = vpop.f32.mrf.mxu3  ;;  %v659_v32 = vpop.f32.mrf.mxu0 }
 0x114   : > { %v806_v34 = vpop.f32.mrf.mxu1  ;;  %v8809_v27 = vpop.f32.mrf.mxu2 }
 0x115   : > { %v8775_v35 = vadd.f32 %v806_v34, %v659_v32  ;;  %v567_v32 = vrot.slane %v565_v25, 1 }
 0x116   : > { %698 = vmatmul.bf16.gmra.mxu0 %v544_v28 }
 0x117   : > { %v568_v34 = vsel %vm452_vm0, %v563_v29, %v567_v32  ;;  %v894_v29 = vrot.slane %v8667_v16, 1 }
 0x118   : > { %1319 = vmatmul.bf16.gmra.mxu3 %v7256_v33 }
 0x11b   : > { %v8777_v30 = vpop.f32.mrf.mxu3  ;;  %v661_v36 = vpop.f32.mrf.mxu0 }
 0x11c   : > { %v808_v41 = vpop.f32.mrf.mxu1  ;;  %v7259_v36 = vld [vmem:[%s8658_s16 + $0x4c] sm:$0xff] }
 0x11d   : > { %v1031_v41 = vpop.f32.mrf.mxu2 }
 0x123   : > { %v8782_v45 = vpop.f32.mrf.mxu3  ;;  %v664_v47 = vpop.f32.mrf.mxu0 }
 0x124   : > { %v811_v50 = vpop.f32.mrf.mxu1 }
 0x125   : > { %v8787_v52 = vadd.f32 %v811_v50, %v664_v47  ;;  %v573_v47 = vshll.u32 %v451_v4, 16  ;;  %v571_v50 = vor.u32 %v569_v46, %v567_v32  ;;  %v7291_v46 = vld [vmem:[#allocation5 + $0x118] sm:$0xff] }
 0x126   : > { %703 = vmatmul.bf16.gmra.mxu0 %v552_v48 }
 0x128   : > { %1324 = vmatmul.bf16.gmra.mxu3 %v7257_v49  ;;  %v8818_v49 = vpop.f32.mrf.mxu2 }
 0x12b   : > { %v861_v53 = vpop.f32.mrf.mxu3  ;;  %v8789_v55 = vpop.f32.mrf.mxu0 }
 0x12c   : > { %v8794_v60 = vpop.f32.mrf.mxu1  ;;  %v575_v53 = vrot.slane %v573_v47, 1 }
 0x12e   : > { %v576_v59 = vsel %vm452_vm0, %v571_v50, %v575_v53  ;;  %v7262_v53 = vld [vmem:[%s8658_s16 + $0x64] sm:$0xff] }
 0x130   : > { %v1036_v18 = vpop.f32.mrf.mxu2 }
 0x133   : > { %v8796_v10 = vpop.f32.mrf.mxu3  ;;  %v669_v13 = vpop.f32.mrf.mxu0 }
 0x134   : > { %v816_v51 = vpop.f32.mrf.mxu1  ;;  %v7293_v13 = vld [vmem:[#allocation5 + $0x128] sm:$0xff] }
 0x135   : > { %1715 = vmatpush.bf16.msra.mxu0 %v7293_v13  ;;  %v7347_v13 = vld [vmem:[#allocation5 + $0x1f0] sm:$0xff] }
 0x136   : > { %708 = vmatmul.bf16.gmra.mxu0 %v560_v14 }
 0x138   : > { %1329 = vmatmul.bf16.gmra.mxu3 %v7258_v15  ;;  %v7750_v15 = vor.u32 %v7749_v9, %v7748_v7  ;;  %v1038_v24 = vpop.f32.mrf.mxu2  ;;  %v7290_v7 = vld [vmem:[#allocation5 + $0x110] sm:$0xff] }
 0x139   : > { %v7325_v9 = vld [vmem:[#allocation5 + $0x1b0] sm:$0xff] }
 0x13a   : > { %v893_v25 = vrot.slane %v7750_v15, 1  ;;  %2242 = vmatpush.bf16.msrb.mxu2 %v7325_v9 }
 0x13b   : > { %v8801_v21 = vpop.f32.mrf.mxu3  ;;  %v8803_v22 = vpop.f32.mrf.mxu0 }
 0x13c   : > { %v8807_v26 = vpop.f32.mrf.mxu1 }
 0x143   : > { %v868_v28 = vpop.f32.mrf.mxu3  ;;  %v674_v33 = vpop.f32.mrf.mxu0 }
 0x144   : > { %v821_v38 = vpop.f32.mrf.mxu1  ;;  %v895_v28 = vsel %vm892_vm1, %v893_v25, %v894_v29  ;;  %v7302_v25 = vld [vmem:[#allocation5 + $0x170] sm:$0xff] }
 0x145   : > { %v822_v40 = vadd.f32 %v821_v38, %v674_v33  ;;  %v7261_v33 = vld [vmem:[%s8658_s16 + $0x5c] sm:$0xff]  ;;  %v8837_v38 = vpop.f32.mrf.mxu2 }
 0x146   : > { %713 = vmatmul.bf16.gmra.mxu0 %v568_v34 }
 0x147   : > { %v8813_v42 = vadd.f32 %v1021_v37, %v822_v40 }
 0x148   : > { %1334 = vmatmul.bf16.gmra.mxu3 %v7259_v36  ;;  %v7292_v36 = vld [vmem:[#allocation5 + $0x120] sm:$0xff] }
 0x149   : > { %1716 = vmatpush.bf16.msra.mxu0 %v7292_v36 }
 0x14b   : > { %v8815_v43 = vpop.f32.mrf.mxu3  ;;  %v676_v44 = vpop.f32.mrf.mxu0 }
 0x14c   : > { %v823_v48 = vpop.f32.mrf.mxu1  ;;  %v896_v44 = vrot.slane %v8676_v31, 1  ;;  %v7303_v31 = vld [vmem:[#allocation5 + $0x178] sm:$0xff] }
 0x14d   : > { %v8845_v16 = vpop.f32.mrf.mxu2  ;;  %1717 = vmatpush.bf16.msra.mxu0 %v7291_v46  ;;  %1942 = vmatpush.bf16.msrb.mxu1 %v7303_v31  ;;  %v7289_v46 = vld [vmem:[#allocation5 + $0x108] sm:$0xff]  ;;  %v7299_v31 = vld [vmem:[#allocation5 + $0x158] sm:$0xff] }
 0x14e   : > { %v897_v50 = vsel %vm892_vm1, %v894_v29, %v896_v44  ;;  %v7324_v29 = vld [vmem:[#allocation5 + $0x1a8] sm:$0xff] }
 0x14f   : > { %2243 = vmatpush.bf16.msrb.mxu2 %v7324_v29  ;;  %v7320_v29 = vld [vmem:[#allocation5 + $0x188] sm:$0xff] }
 0x151   : > { %1718 = vmatpush.bf16.msra.mxu0 %v7290_v7  ;;  %1943 = vmatpush.bf16.msrb.mxu1 %v7302_v25  ;;  %v7298_v25 = vld [vmem:[#allocation5 + $0x150] sm:$0xff] }
 0x153   : > { %v8820_v37 = vpop.f32.mrf.mxu3  ;;  %v679_v57 = vpop.f32.mrf.mxu0 }
 0x154   : > { %v826_v0 = vpop.f32.mrf.mxu1 }
 0x155   : > { %v827_v5 = vadd.f32 %v826_v0, %v679_v57  ;;  %v7348_v0 = vld [vmem:[#allocation5 + $0x1f8] sm:$0xff]  ;;  %1719 = vmatpush.bf16.msra.mxu0 %v7289_v46  ;;  %v7319_v46 = vld [vmem:[#allocation5 + $0x180] sm:$0xff] }
 0x156   : > { %718 = vmatmul.bf16.gmra.mxu0 %v576_v59  ;;  %2668 = vmatpush.bf16.msra.mxu3 %v7348_v0  ;;  %v7344_v0 = vld [vmem:[#allocation5 + $0x1d8] sm:$0xff] }
 0x157   : > { %v8824_v4 = vadd.f32 %v1026_v17, %v827_v5 }
 0x158   : > { %1339 = vmatmul.bf16.gmra.mxu3 %v7260_v61  ;;  %v1046_v61 = vpop.f32.mrf.mxu2 }
 0x15a   : > { %2669 = vmatpush.bf16.msra.mxu3 %v7347_v13  ;;  %v7343_v13 = vld [vmem:[#allocation5 + $0x1d0] sm:$0xff] }
 0x15b   : > { %v1300_v12 = vpop.f32.mrf.mxu3  ;;  %v8828_v14 = vpop.f32.mrf.mxu0 }
 0x15c   : > { %v8830_v51 = vpop.f32.mrf.mxu1 }
 0x163   : > { %v8833_v32 = vpop.f32.mrf.mxu3  ;;  %v684_v17 = vpop.f32.mrf.mxu0 }
 0x164   : > { %v831_v34 = vpop.f32.mrf.mxu1  ;;  %v8854_v17 = vpop.f32.mrf.mxu2 }
 0x165   : > { %v7323_v34 = vld [vmem:[#allocation5 + $0x1a0] sm:$0xff] }
 0x166   : > { %995 = vmatmul.bf16.vlgmr.msrb.gmra.mxu0 %v895_v28  ;;  %v898_v28 = vrot.slane %v8687_v39, 1  ;;  %2244 = vmatpush.bf16.msrb.mxu2 %v7323_v34  ;;  %v7297_v34 = vld [vmem:[#allocation5 + $0x148] sm:$0xff] }
 0x168   : > { %1344 = vmatmul.bf16.gmra.mxu3 %v7261_v33  ;;  %v7301_v33 = vld [vmem:[#allocation5 + $0x168] sm:$0xff] }
 0x169   : > { %1944 = vmatpush.bf16.msrb.mxu1 %v7301_v33  ;;  %v900_v33 = vrot.slane %v8698_v54, 1  ;;  %v7296_v54 = vld [vmem:[#allocation5 + $0x140] sm:$0xff] }
 0x16b   : > { %v8839_v40 = vpop.f32.mrf.mxu3  ;;  %v8841_v41 = vpop.f32.mrf.mxu0 }
 0x16c   : > { %v8843_v8 = vpop.f32.mrf.mxu1  ;;  %v8861_v39 = vpop.f32.mrf.mxu2 }
 0x173   : > { %v1307_v47 = vpop.f32.mrf.mxu3  ;;  %v689_v48 = vpop.f32.mrf.mxu0 }
 0x174   : > { %v836_v57 = vpop.f32.mrf.mxu1  ;;  %v7345_v47 = vld [vmem:[#allocation5 + $0x1e0] sm:$0xff] }
 0x175   : > { %v837_v59 = vadd.f32 %v836_v57, %v689_v48  ;;  %v7300_v57 = vld [vmem:[#allocation5 + $0x160] sm:$0xff] }
 0x176   : > { %1000 = vmatmul.bf16.gmra.mxu0 %v897_v50  ;;  %v899_v50 = vsel %vm892_vm1, %v896_v44, %v898_v28  ;;  %1945 = vmatpush.bf16.msrb.mxu1 %v7300_v57  ;;  %v7321_v44 = vld [vmem:[#allocation5 + $0x190] sm:$0xff] }
 0x177   : > { %v8850_v5 = vadd.f32 %v1036_v18, %v837_v59  ;;  %v7346_v18 = vld [vmem:[#allocation5 + $0x1e8] sm:$0xff]  ;;  %v7322_v59 = vld [vmem:[#allocation5 + $0x198] sm:$0xff] }
 0x178   : > { %1349 = vmatmul.bf16.gmra.mxu3 %v7262_v53  ;;  %v7263_v53 = vld [vmem:[%s8658_s16 + $0x6c] sm:$0xff]  ;;  %2245 = vmatpush.bf16.msrb.mxu2 %v7322_v59  ;;  %v901_v59 = vsel %vm892_vm1, %v898_v28, %v900_v33 }
 0x179   : > { %2670 = vmatpush.bf16.msra.mxu3 %v7346_v18  ;;  %v1053_v18 = vpop.f32.mrf.mxu2 }
 0x17a   : > { %1946 = vmatpush.bf16.msrb.mxu1 %v7299_v31  ;;  %v8878_v31 = vld [vmem:[%s8658_s16 + $0x14] sm:$0xff] }
 0x17b   : > { %v8852_v12 = vpop.f32.mrf.mxu3  ;;  %v691_v15 = vpop.f32.mrf.mxu0 }
 0x17c   : > { %v838_v24 = vpop.f32.mrf.mxu1  ;;  %2246 = vmatpush.bf16.msrb.mxu2 %v7321_v44 }
 0x17d   : > { %2671 = vmatpush.bf16.msra.mxu3 %v7345_v47  ;;  %v7288_v24 = vld [vmem:[#allocation5 + $0x100] sm:$0xff] }
 0x17e   : > { %1720 = vmatpush.bf16.msra.mxu0 %v7288_v24  ;;  %1947 = vmatpush.bf16.msrb.mxu1 %v7298_v25  ;;  %v1400_v47 = vld [vmem:[%s8658_s16 + $0xc] sm:$0xff]  }
 0x17f   : > { %v7356_v24 = vld [vmem:[#allocation5 + $0x238] sm:$0xff] }
 0x180   : > { %2247 = vmatpush.bf16.msrb.mxu2 %v7320_v29 }
 0x181   : > { %2672 = vmatpush.bf16.msra.mxu3 %v7344_v0  ;;  %v7304_v0 = vld [vmem:[%s8658_s16 + $0x18] sm:$0xff] }
 0x182   : > { %1948 = vmatpush.bf16.msrb.mxu1 %v7297_v34  ;;  %2897 = vmatpush.bf16.msrb.mxu0 %v7356_v24  ;;  %v1529_v24 = vshll.u32 %v1400_v47, 16 }
 0x183   : > { %v8857_v36 = vpop.f32.mrf.mxu3  ;;  %v694_v48 = vpop.f32.mrf.mxu0 }
 0x184   : > { %v841_v56 = vpop.f32.mrf.mxu1  ;;  %2248 = vmatpush.bf16.msrb.mxu2 %v7319_v46 }
 0x185   : > { %v842_v61 = vadd.f32 %v841_v56, %v694_v48  ;;  %2673 = vmatpush.bf16.msra.mxu3 %v7343_v13  ;;  %v8416_v48 = vld [vmem:[%s8658_s16 + $0xc] sm:$0xf0]  ;;  %v1849_v13 = vrot.slane %v8878_v31, 1 }
 0x186   : > { %1005 = vmatmul.bf16.gmra.mxu0 %v899_v50  ;;  %v8417_v50 = vld [vmem:[%s8658_s16 + $0xc] sm:$0xe]  ;;  %1949 = vmatpush.bf16.msrb.mxu1 %v7296_v54 }
 0x187   : > { %v8864_v7 = vadd.f32 %v8837_v38, %v842_v61  ;;  %v7342_v38 = vld [vmem:[#allocation5 + $0x1c8] sm:$0xff]  ;;  %v7341_v56 = vld [vmem:[#allocation5 + $0x1c0] sm:$0xff]  ;;  %v8418_v44 = vor.u32 %v8417_v50, %v8416_v48  ;;  %2249 = vmatmul.bf16.vlgmr.msrb.gmra.mxu2 %v7304_v0  ;;  %v903_v50 = vsel %vm892_vm1, %v900_v33, %v902_v63 }
 0x188   : > { %1354 = vmatmul.bf16.gmra.mxu3 %v7263_v53  ;;  %v7264_v61 = vld [vmem:[%s8658_s16 + $0x74] sm:$0xff] }
 0x189   : > { %2674 = vmatpush.bf16.msra.mxu3 %v7342_v38  ;;  %v1848_v28 = vrot.slane %v8418_v44, 1  ;;  %v7751_v0 = vld [vmem:[%s8658_s16 + $0x18] sm:$0xff]  }
 0x18a   : > { %v2484_v63 = vshll.u32 %v7751_v0, 16 }
 0x18b   : > { %v1315_v9 = vpop.f32.mrf.mxu3  ;;  %v8866_v15 = vpop.f32.mrf.mxu0  ;;  %v1850_v25 = vsel %vm892_vm1, %v1848_v28, %v1849_v13 }
 0x18c   : > { %v1056_v9 = vpop.f32.mrf.mxu2  ;;  %1950 = vmatmul.bf16.vlgmr.msrb.gmra.mxu1 %v1850_v25 }
 0x18d   : > { %2675 = vmatpush.bf16.msra.mxu3 %v7341_v56  ;;  %v7265_v56 = vld [vmem:[%s8658_s16 + $0x7c] sm:$0xff] }
 0x193   : > { %v8872_v53 = vpop.f32.mrf.mxu3  ;;  %v699_v57 = vpop.f32.mrf.mxu0 }
 0x194   : > { %v8887_v34 = vpop.f32.mrf.mxu2  ;;  %v7305_v57 = vld [vmem:[%s8658_s16 + $0x20] sm:$0xff] }
 0x196   : > { %1010 = vmatmul.bf16.gmra.mxu0 %v901_v59 }
 0x197   : > { %2254 = vmatmul.bf16.gmra.mxu2 %v7305_v57  ;;  %v829_v57 = vadd.f32 %v8830_v51, %v8828_v14  ;;  %v7355_v51 = vld [vmem:[#allocation5 + $0x230] sm:$0xff] }
 0x198   : > { %1359 = vmatmul.bf16.gmra.mxu3 %v7264_v61  ;;  %v8896_v61 = vld [vmem:[%s8658_s16 + $0x1c] sm:$0xff]  ;;  %2898 = vmatpush.bf16.msrb.mxu0 %v7355_v51 }
 0x199   : > { %v1851_v44 = vrot.slane %v8896_v61, 1 }
 0x19b   : > { %v1320_v29 = vpop.f32.mrf.mxu3  ;;  %v8885_v18 = vpop.f32.mrf.mxu0  ;;  %v1852_v33 = vsel %vm892_vm1, %v1849_v13, %v1851_v44 }
 0x19c   : > { %v8883_v38 = vadd.f32 %v1320_v29, %v8813_v42  ;;  %v1061_v54 = vpop.f32.mrf.mxu2  ;;  %1955 = vmatmul.bf16.gmra.mxu1 %v1852_v33  ;;  %v1531_v29 = vrot.slane %v1529_v24, 1 }
 0x1a3   : > { %v1322_v46 = vpop.f32.mrf.mxu3  ;;  %v704_v48 = vpop.f32.mrf.mxu0 }
 0x1a4   : > { %v852_v59 = vadd.f32 %v8763_v19, %v704_v48  ;;  %v1534_v46 = vshll.u32 %v8878_v31, 16  ;;  %v2482_v48 = vshrl.u32 %v7751_v0, 16  ;;  %v8914_v13 = vpop.f32.mrf.mxu2 }
 0x1a6   : > { %v8900_v42 = vadd.f32 %v8861_v39, %v852_v59  ;;  %1015 = vmatmul.bf16.gmra.mxu0 %v903_v50  ;;  %v1527_v39 = vshrl.u32 %v1400_v47, 16  ;;  %v2486_v50 = vrot.slane %v2484_v63, 1  ;;  %v1536_v54 = vrot.slane %v1534_v46, 1  ;;  %v8930_v46 = vld [vmem:[%s8658_s16 + $0x28] sm:$0xff] }
 0x1a7   : > { %v1084_v47 = vadd.f32 %v8809_v27, %v829_v57  ;;  %v2497_v57 = vshll.u32 %v8930_v46, 16 }
 0x1a8   : > { %1364 = vmatmul.bf16.gmra.mxu3 %v7265_v56  ;;  %v2489_v56 = vshll.u32 %v8904_v58, 16  ;;  %v1532_v59 = vor.u32 %v1531_v29, %v1527_v39  ;;  %v1853_v29 = vrot.slane %v8924_v1, 1 }
 0x1aa   : > { %v2491_v33 = vrot.slane %v2489_v56, 1  ;;  %v1537_v63 = vsel %vm452_vm0, %v1532_v59, %v1536_v54  ;;  %v1538_v56 = vshrl.u32 %v8878_v31, 16  ;;  %v834_v59 = vadd.f32 %v8843_v8, %v8841_v41  ;;  %v8952_v8 = vld [vmem:[%s8658_s16 + $0x30] sm:$0xff] }
 0x1ab   : > { %v1325_v28 = vpop.f32.mrf.mxu3  ;;  %v706_v25 = vpop.f32.mrf.mxu0 }
 0x1ac   : > { %v8908_v19 = vadd.f32 %v1325_v28, %v8824_v4  ;;  %v2487_v4 = vor.u32 %v2486_v50, %v2482_v48  ;;  %v7306_v25 = vld [vmem:[%s8658_s16 + $0x28] sm:$0xff]  ;;  %v1066_v27 = vpop.f32.mrf.mxu2  ;;  %v1854_v48 = vsel %vm892_vm1, %v1851_v44, %v1853_v29 }
 0x1ad   : > { %2259 = vmatmul.bf16.gmra.mxu2 %v7306_v25  ;;  %1960 = vmatmul.bf16.gmra.mxu1 %v1854_v48  ;;  %v7307_v48 = vld [vmem:[%s8658_s16 + $0x30] sm:$0xff] }
 0x1ae   : > { %v2492_v14 = vsel %vm452_vm0, %v2487_v4, %v2491_v33 }
 0x1b3   : > { %v1327_v24 = vpop.f32.mrf.mxu3  ;;  %v709_v0 = vpop.f32.mrf.mxu0 }
 0x1b4   : > { %v8917_v28 = vadd.f32 %v1327_v24, %v1084_v47  ;;  %v857_v2 = vadd.f32 %v8777_v30, %v709_v0  ;;  %v1068_v4 = vpop.f32.mrf.mxu2  ;;  %v1540_v47 = vor.u32 %v1538_v56, %v1536_v54  ;;  %v2499_v0 = vrot.slane %v2497_v57, 1 }
 0x1b5   : > { %v2501_v57 = vshrl.u32 %v8930_v46, 16 }
 0x1b6   : > { %v8926_v39 = vadd.f32 %v1056_v9, %v857_v2  ;;  %1721 = vmatmul.bf16.vlgmr.msra.gmra.mxu0 %v1537_v63  ;;  %v1542_v2 = vshll.u32 %v8896_v61, 16  ;;  %v2493_v9 = vshrl.u32 %v8904_v58, 16  ;;  %v1086_v63 = vadd.f32 %v8818_v49, %v834_v59  ;;  %v8948_v58 = vld [vmem:[%s8658_s16 + $0x2c] sm:$0xff] }
 0x1b7   : > { %v1855_v41 = vrot.slane %v8948_v58, 1  ;;  %v2505_v59 = vshll.u32 %v8952_v8, 16 }
 0x1b8   : > { %2676 = vmatmul.bf16.vlgmr.msra.gmra.mxu3 %v2492_v14  ;;  %v1544_v44 = vrot.slane %v1542_v2, 1  ;;  %v2495_v24 = vor.u32 %v2493_v9, %v2491_v33  ;;  %v1546_v2 = vshrl.u32 %v8896_v61, 16  ;;  %v1550_v9 = vshll.u32 %v8924_v1, 16 }
 0x1b9   : > { %v1856_v49 = vsel %vm892_vm1, %v1853_v29, %v1855_v41  ;;  %v2503_v29 = vor.u32 %v2501_v57, %v2499_v0 }
 0x1ba   : > { %v1545_v51 = vsel %vm452_vm0, %v1540_v47, %v1544_v44  ;;  %v1548_v4 = vor.u32 %v1546_v2, %v1544_v44  ;;  %v1552_v47 = vrot.slane %v1550_v9, 1  ;;  %v843_v2 = vpop.f32.mrf.mxu1 }
 0x1bb   : > { %v1330_v50 = vpop.f32.mrf.mxu3  ;;  %v8933_v30 = vpop.f32.mrf.mxu0 }
 0x1bc   : > { %v2500_v50 = vsel %vm452_vm0, %v2495_v24, %v2499_v0  ;;  %v2507_v24 = vrot.slane %v2505_v59, 1  ;;  %v8975_v0 = vld [vmem:[%s8658_s16 + $0x38] sm:$0xff]  ;;  %v1558_v59 = vshll.u32 %v8948_v58, 16 }
 0x1bd   : > { %2264 = vmatmul.bf16.gmra.mxu2 %v7307_v48  ;;  %1965 = vmatmul.bf16.gmra.mxu1 %v1856_v49 }
 0x1be   : > { %v2508_v61 = vsel %vm452_vm0, %v2503_v29, %v2507_v24  ;;  %v2513_v29 = vshll.u32 %v8975_v0, 16 }
 0x1c3   : > { %v1332_v25 = vpop.f32.mrf.mxu3  ;;  %v714_v14 = vpop.f32.mrf.mxu0 }
 0x1c4   : > { %v8942_v31 = vadd.f32 %v1332_v25, %v1086_v63  ;;  %v7354_v14 = vld [vmem:[#allocation5 + $0x228] sm:$0xff] }
 0x1c5   : > { %2899 = vmatpush.bf16.msrb.mxu0 %v7354_v14  ;;  %v2515_v14 = vrot.slane %v2513_v29, 1  ;;  %v7353_v29 = vld [vmem:[#allocation5 + $0x220] sm:$0xff] }
 0x1c6   : > { %1726 = vmatmul.bf16.gmra.mxu0 %v1545_v51  ;;  %v7308_v51 = vld [vmem:[%s8658_s16 + $0x38] sm:$0xff] }
 0x1c8   : > { %2681 = vmatmul.bf16.gmra.mxu3 %v2500_v50  ;;  %v8969_v50 = vld [vmem:[%s8658_s16 + $0x34] sm:$0xff] }
 0x1c9   : > { %v1857_v44 = vrot.slane %v8969_v50, 1  ;;  %2900 = vmatpush.bf16.msrb.mxu0 %v7353_v29 }
 0x1cb   : > { %v1335_v54 = vpop.f32.mrf.mxu3  ;;  %v8958_v56 = vpop.f32.mrf.mxu0 }
 0x1cc   : > { %v8956_v33 = vadd.f32 %v1335_v54, %v8850_v5  ;;  %v1553_v5 = vsel %vm452_vm0, %v1548_v4, %v1552_v47  ;;  %v1858_v54 = vsel %vm892_vm1, %v1855_v41, %v1857_v44  ;;  %v2509_v4 = vshrl.u32 %v8952_v8, 16 }
 0x1cd   : > { %2269 = vmatmul.bf16.gmra.mxu2 %v7308_v51  ;;  %1970 = vmatmul.bf16.gmra.mxu1 %v1858_v54  ;;  %v7309_v54 = vld [vmem:[%s8658_s16 + $0x40] sm:$0xff] }
 0x1d3   : > { %v1337_v63 = vpop.f32.mrf.mxu3  ;;  %v719_v25 = vpop.f32.mrf.mxu0 }
 0x1d4   : > { %v867_v48 = vadd.f32 %v8801_v21, %v719_v25  ;;  %v844_v63 = vadd.f32 %v843_v2, %v8866_v15  ;;  %v1560_v25 = vrot.slane %v1558_v59, 1  ;;  %v8996_v15 = vld [vmem:[%s8658_s16 + $0x3c] sm:$0xff]  ;;  %v799_v2 = vadd.f32 %v8755_v6, %v8752_v3 }
 0x1d5   : > { %v1562_v59 = vshrl.u32 %v8948_v58, 16  ;;  %v1574_v29 = vshll.u32 %v8996_v15, 16 }
 0x1d6   : > { %v8971_v49 = vadd.f32 %v1066_v27, %v867_v48  ;;  %1731 = vmatmul.bf16.gmra.mxu0 %v1553_v5  ;;  %v1554_v27 = vshrl.u32 %v8924_v1, 16  ;;  %v2511_v5 = vor.u32 %v2509_v4, %v2507_v24  ;;  %v1566_v4 = vshll.u32 %v8969_v50, 16 }
 0x1d7   : > { %v1564_v3 = vor.u32 %v1562_v59, %v1560_v25 }
 0x1d8   : > { %2686 = vmatmul.bf16.gmra.mxu3 %v2508_v61  ;;  %v1556_v41 = vor.u32 %v1554_v27, %v1552_v47  ;;  %v1859_v47 = vrot.slane %v8996_v15, 1  ;;  %v1568_v6 = vrot.slane %v1566_v4, 1  ;;  %v1570_v4 = vshrl.u32 %v8969_v50, 16 }
 0x1da   : > { %v1561_v61 = vsel %vm452_vm0, %v1556_v41, %v1560_v25  ;;  %v1860_v24 = vsel %vm892_vm1, %v1857_v44, %v1859_v47  ;;  %v2517_v41 = vshrl.u32 %v8975_v0, 16  ;;  %v849_v44 = vadd.f32 %v8758_v11, %v8885_v18  ;;  %v9024_v18 = vld [vmem:[%s8658_s16 + $0x48] sm:$0xff] }
 0x1db   : > { %v1340_v9 = vpop.f32.mrf.mxu3  ;;  %v721_v57 = vpop.f32.mrf.mxu0  ;;  %v804_v25 = vadd.f32 %v8769_v23, %v8765_v20  ;;  %v1572_v20 = vor.u32 %v1570_v4, %v1568_v6  ;;  %v1576_v23 = vrot.slane %v1574_v29, 1  ;;  %v7352_v29 = vld [vmem:[#allocation5 + $0x218] sm:$0xff] }
 0x1dc   : > { %v8979_v21 = vadd.f32 %v1340_v9, %v8864_v7  ;;  %v1090_v7 = vadd.f32 %v8845_v16, %v844_v63  ;;  %v2516_v57 = vsel %vm452_vm0, %v2511_v5, %v2515_v14  ;;  %v9000_v16 = vld [vmem:[%s8658_s16 + $0x40] sm:$0xff]  ;;  %2901 = vmatpush.bf16.msrb.mxu0 %v7352_v29 }
 0x1dd   : > { %2274 = vmatmul.bf16.gmra.mxu2 %v7309_v54  ;;  %1975 = vmatmul.bf16.gmra.mxu1 %v1860_v24  ;;  %v2521_v5 = vshll.u32 %v9000_v16, 16  ;;  %v7310_v24 = vld [vmem:[%s8658_s16 + $0x48] sm:$0xff] }
 0x1df   : > { %v2523_v58 = vrot.slane %v2521_v5, 1  ;;  %v2525_v5 = vshrl.u32 %v9000_v16, 16 }
 0x1e3   : > { %v1342_v51 = vpop.f32.mrf.mxu3  ;;  %v996_v1 = vpop.f32.mrf.mxu0 }
 0x1e4   : > { %v8987_v48 = vadd.f32 %v1342_v51, %v1090_v7  ;;  %v8992_v9 = vadd.f32 %v996_v1, %v8750_v62  ;;  %v2519_v7 = vor.u32 %v2517_v41, %v2515_v14  ;;  %v1092_v51 = vadd.f32 %v8854_v17, %v849_v44 }
 0x1e5   : > { %v2527_v44 = vor.u32 %v2525_v5, %v2523_v58 }
 0x1e6   : > { %1736 = vmatmul.bf16.gmra.mxu0 %v1561_v61 }
 0x1e8   : > { %2691 = vmatmul.bf16.gmra.mxu3 %v2516_v57  ;;  %v1569_v57 = vsel %vm452_vm0, %v1564_v3, %v1568_v6  ;;  %v9049_v6 = vld [vmem:[%s8658_s16 + $0x50] sm:$0xff] }
 0x1e9   : > { %v2537_v4 = vshll.u32 %v9049_v6, 16  ;;  %v2541_v29 = vshrl.u32 %v9049_v6, 16 }
 0x1eb   : > { %v1345_v27 = vpop.f32.mrf.mxu3  ;;  %v998_v62 = vpop.f32.mrf.mxu0 }
 0x1ec   : > { %v9007_v63 = vadd.f32 %v998_v62, %v799_v2  ;;  %v2524_v2 = vsel %vm452_vm0, %v2519_v7, %v2523_v58  ;;  %v9020_v27 = vld [vmem:[%s8658_s16 + $0x44] sm:$0xff] }
 0x1ed   : > { %2279 = vmatmul.bf16.gmra.mxu2 %v7310_v24  ;;  %v1861_v11 = vrot.slane %v9020_v27, 1 }
 0x1ef   : > { %v1862_v17 = vsel %vm892_vm1, %v1859_v47, %v1861_v11  ;;  %v2529_v47 = vshll.u32 %v9024_v18, 16 }
 0x1f0   : > { %1980 = vmatmul.bf16.gmra.mxu1 %v1862_v17 }
 0x1f1   : > { %v2531_v3 = vrot.slane %v2529_v47, 1 }
 0x1f3   : > { %v1347_v1 = vpop.f32.mrf.mxu3  ;;  %v1001_v54 = vpop.f32.mrf.mxu0 }
 0x1f4   : > { %v9014_v61 = vadd.f32 %v1347_v1, %v1092_v51  ;;  %v1577_v51 = vsel %vm452_vm0, %v1572_v20, %v1576_v23  ;;  %v7311_v1 = vld [vmem:[%s8658_s16 + $0x50] sm:$0xff]  ;;  %v2532_v54 = vsel %vm452_vm0, %v2527_v44, %v2531_v3  ;;  %v2539_v20 = vrot.slane %v2537_v4, 1 }
 0x1f6   : > { %1741 = vmatmul.bf16.gmra.mxu0 %v1569_v57  ;;  %v9045_v57 = vld [vmem:[%s8658_s16 + $0x4c] sm:$0xff] }
 0x1f7   : > { %v1863_v24 = vrot.slane %v9045_v57, 1 }
 0x1f8   : > { %2696 = vmatmul.bf16.gmra.mxu3 %v2524_v2 }
 0x1f9   : > { %v1864_v58 = vsel %vm892_vm1, %v1861_v11, %v1863_v24  ;;  %v859_v11 = vadd.f32 %v8782_v45, %v8933_v30  ;;  %v9071_v30 = vld [vmem:[%s8658_s16 + $0x54] sm:$0xff] }
 0x1fb   : > { %v1350_v14 = vpop.f32.mrf.mxu3  ;;  %v1003_v59 = vpop.f32.mrf.mxu0 }
 0x1fc   : > { %v9030_v62 = vadd.f32 %v1350_v14, %v8900_v42  ;;  %v9034_v41 = vadd.f32 %v1003_v59, %v804_v25  ;;  %v1578_v25 = vshrl.u32 %v8996_v15, 16  ;;  %v1582_v14 = vshll.u32 %v9020_v27, 16 }
 0x1fd   : > { %2284 = vmatmul.bf16.gmra.mxu2 %v7311_v1  ;;  %v2533_v59 = vshrl.u32 %v9024_v18, 16  ;;  %v1096_v15 = vadd.f32 %v8887_v34, %v859_v11  ;;  %v7312_v1 = vld [vmem:[%s8658_s16 + $0x58] sm:$0xff]  ;;  %v864_v11 = vadd.f32 %v8796_v10, %v8958_v56 }
 0x1fe   : > { %v1580_v5 = vor.u32 %v1578_v25, %v1576_v23  ;;  %v1584_v47 = vrot.slane %v1582_v14, 1  ;;  %v1865_v23 = vrot.slane %v9071_v30, 1  ;;  %v1586_v14 = vshrl.u32 %v9020_v27, 16  ;;  %v9101_v56 = vld [vmem:[%s8658_s16 + $0x5c] sm:$0xff] }
 0x200   : > { %1985 = vmatmul.bf16.gmra.mxu1 %v1864_v58  ;;  %v1866_v58 = vsel %vm892_vm1, %v1863_v24, %v1865_v23 }
 0x203   : > { %v1352_v7 = vpop.f32.mrf.mxu3  ;;  %v1006_v42 = vpop.f32.mrf.mxu0 }
 0x204   : > { %v9041_v50 = vadd.f32 %v1006_v42, %v8775_v35 }
 0x206   : > { %1746 = vmatmul.bf16.gmra.mxu0 %v1577_v51  ;;  %v1585_v51 = vsel %vm452_vm0, %v1580_v5, %v1584_v47  ;;  %v1588_v5 = vor.u32 %v1586_v14, %v1584_v47  ;;  %v1867_v47 = vrot.slane %v9101_v56, 1 }
 0x208   : > { %2701 = vmatmul.bf16.gmra.mxu3 %v2532_v54 }
 0x209   : > { %v1951_v34 = vpop.f32.mrf.mxu1 }
 0x20b   : > { %v1355_v2 = vpop.f32.mrf.mxu3  ;;  %v1008_v35 = vpop.f32.mrf.mxu0 }
 0x20c   : > { %v9053_v17 = vadd.f32 %v1355_v2, %v8926_v39  ;;  %v2535_v39 = vor.u32 %v2533_v59, %v2531_v3  ;;  %v9075_v3 = vld [vmem:[%s8658_s16 + $0x58] sm:$0xff]  ;;  %v9078_v2 = vpop.f32.mrf.mxu2  ;;  %v1590_v59 = vshll.u32 %v9045_v57, 16 }
 0x20d   : > { %2289 = vmatmul.bf16.gmra.mxu2 %v7312_v1  ;;  %v2545_v24 = vshll.u32 %v9075_v3, 16 }
 0x20e   : > { %v2540_v45 = vsel %vm452_vm0, %v2535_v39, %v2539_v20  ;;  %v2543_v39 = vor.u32 %v2541_v29, %v2539_v20 }
 0x20f   : > { %v2547_v27 = vrot.slane %v2545_v24, 1  ;;  %v1594_v24 = vshrl.u32 %v9045_v57, 16 }
 0x210   : > { %1990 = vmatmul.bf16.gmra.mxu1 %v1866_v58  ;;  %v7313_v58 = vld [vmem:[%s8658_s16 + $0x60] sm:$0xff] }
 0x211   : > { %v2548_v10 = vsel %vm452_vm0, %v2543_v39, %v2547_v27  ;;  %v2549_v39 = vshrl.u32 %v9075_v3, 16 }
 0x213   : > { %v1357_v44 = vpop.f32.mrf.mxu3  ;;  %v1011_v42 = vpop.f32.mrf.mxu0 }
 0x214   : > { %v9062_v7 = vadd.f32 %v1357_v44, %v1096_v15  ;;  %v9067_v54 = vadd.f32 %v1011_v42, %v8787_v52  ;;  %v814_v52 = vadd.f32 %v8794_v60, %v8789_v55  ;;  %v1592_v55 = vrot.slane %v1590_v59, 1  ;;  %v9090_v60 = vpop.f32.mrf.mxu1  ;;  %v9093_v44 = vpop.f32.mrf.mxu2 }
 0x215   : > { %v1098_v15 = vadd.f32 %v8914_v13, %v864_v11  ;;  %v9105_v13 = vld [vmem:[%s8658_s16 + $0x60] sm:$0xff]  ;;  %v1598_v11 = vshll.u32 %v9071_v30, 16 }
 0x216   : > { %1751 = vmatmul.bf16.gmra.mxu0 %v1585_v51 }
 0x218   : > { %2706 = vmatmul.bf16.gmra.mxu3 %v2540_v45  ;;  %v1593_v45 = vsel %vm452_vm0, %v1588_v5, %v1592_v55 }
 0x21b   : > { %v1360_v35 = vpop.f32.mrf.mxu3  ;;  %v1013_v25 = vpop.f32.mrf.mxu0 }
 0x21c   : > { %v9084_v4 = vadd.f32 %v1013_v25, %v814_v52  ;;  %v1956_v20 = vpop.f32.mrf.mxu1  ;;  %v1868_v52 = vsel %vm892_vm1, %v1865_v23, %v1867_v47  ;;  %v2255_v35 = vpop.f32.mrf.mxu2  ;;  %v819_v25 = vadd.f32 %v8807_v26, %v8803_v22  ;;  %v2553_v23 = vshll.u32 %v9105_v13, 16 }
 0x21d   : > { %2294 = vmatmul.bf16.gmra.mxu2 %v7313_v58  ;;  %v1596_v22 = vor.u32 %v1594_v24, %v1592_v55  ;;  %v1600_v26 = vrot.slane %v1598_v11, 1  ;;  %v1370_v58 = vadd.f32 %v8815_v43, %v8992_v9  ;;  %v9129_v55 = vld [vmem:[%s8658_s16 + $0x64] sm:$0xff] }
 0x21e   : > { %v9136_v43 = vld [vmem:[%s8658_s16 + $0x68] sm:$0xff] }
 0x21f   : > { %v1601_v20 = vsel %vm452_vm0, %v1596_v22, %v1600_v26  ;;  %v1602_v22 = vshrl.u32 %v9071_v30, 16 }
 0x220   : > { %1995 = vmatmul.bf16.gmra.mxu1 %v1868_v52  ;;  %v7314_v52 = vld [vmem:[%s8658_s16 + $0x68] sm:$0xff] }
 0x223   : > { %v1362_v42 = vpop.f32.mrf.mxu3  ;;  %v1016_v1 = vpop.f32.mrf.mxu0 }
 0x224   : > { %v9095_v51 = vadd.f32 %v1362_v42, %v1098_v15  ;;  %v7351_v15 = vld [vmem:[#allocation5 + $0x210] sm:$0xff]  ;;  %v9119_v42 = vpop.f32.mrf.mxu1  ;;  %v2555_v1 = vrot.slane %v2553_v23, 1  ;;  %v1371_v23 = vadd.f32 %v8820_v37, %v9007_v63 }
 0x225   : > { %2902 = vmatpush.bf16.msrb.mxu0 %v7351_v15 }
 0x226   : > { %1756 = vmatmul.bf16.gmra.mxu0 %v1593_v45  ;;  %v9121_v45 = vpop.f32.mrf.mxu2 }
 0x228   : > { %2711 = vmatmul.bf16.gmra.mxu3 %v2548_v10 }
 0x22b   : > { %v1365_v14 = vpop.f32.mrf.mxu3  ;;  %v1018_v29 = vpop.f32.mrf.mxu0 }
 0x22c   : > { %v9111_v59 = vadd.f32 %v1365_v14, %v8971_v49  ;;  %v9115_v5 = vadd.f32 %v1018_v29, %v819_v25  ;;  %v2551_v49 = vor.u32 %v2549_v39, %v2547_v27  ;;  %v1869_v27 = vrot.slane %v9129_v55, 1  ;;  %v9132_v29 = vpop.f32.mrf.mxu1 }
 0x22d   : > { %2299 = vmatmul.bf16.gmra.mxu2 %v7314_v52 }
 0x22e   : > { %v2556_v25 = vsel %vm452_vm0, %v2551_v49, %v2555_v1  ;;  %v1870_v9 = vsel %vm892_vm1, %v1867_v47, %v1869_v27  ;;  %v1606_v49 = vshll.u32 %v9101_v56, 16  ;;  %v2561_v47 = vshll.u32 %v9136_v43, 16 }
 0x230   : > { %v9139_v11 = vpop.f32.mrf.mxu2  ;;  %2000 = vmatmul.bf16.gmra.mxu1 %v1870_v9 }
 0x233   : > { %v1367_v57 = vpop.f32.mrf.mxu3  ;;  %v1722_v10 = vpop.f32.mrf.mxu0 }
 0x234   : > { %v1797_v35 = vadd.f32 %v1722_v10, %v1370_v58  ;;  %v2557_v57 = vshrl.u32 %v9105_v13, 16  ;;  %v1604_v10 = vor.u32 %v1602_v22, %v1600_v26  ;;  %v1963_v37 = vpop.f32.mrf.mxu1  ;;  %v9163_v26 = vld [vmem:[%s8658_s16 + $0x70] sm:$0xff] }
 0x236   : > { %v2026_v14 = vadd.f32 %v1951_v34, %v1797_v35  ;;  %1761 = vmatmul.bf16.gmra.mxu0 %v1601_v20  ;;  %v1608_v20 = vrot.slane %v1606_v49, 1  ;;  %v2559_v52 = vor.u32 %v2557_v57, %v2555_v1  ;;  %v2563_v35 = vrot.slane %v2561_v47, 1 }
 0x237   : > { %v1610_v47 = vshrl.u32 %v9101_v56, 16 }
 0x238   : > { %2716 = vmatmul.bf16.gmra.mxu3 %v2556_v25  ;;  %v2325_v24 = vadd.f32 %v9078_v2, %v2026_v14  ;;  %v2262_v30 = vpop.f32.mrf.mxu2  ;;  %v1609_v9 = vsel %vm452_vm0, %v1604_v10, %v1608_v20  ;;  %v7350_v10 = vld [vmem:[#allocation5 + $0x208] sm:$0xff] }
 0x239   : > { %2903 = vmatpush.bf16.msrb.mxu0 %v7350_v10  ;;  %v1612_v30 = vor.u32 %v1610_v47, %v1608_v20  ;;  %v7316_v20 = vld [vmem:[%s8658_s16 + $0x78] sm:$0xff] }
 0x23a   : > { %v9188_v47 = vld [vmem:[%s8658_s16 + $0x74] sm:$0xff] }
 0x23b   : > { %v2677_v39 = vpop.f32.mrf.mxu3  ;;  %v1724_v15 = vpop.f32.mrf.mxu0 }
 0x23c   : > { %v9143_v34 = vadd.f32 %v2677_v39, %v2325_v24  ;;  %v1798_v2 = vadd.f32 %v1724_v15, %v1371_v23  ;;  %v7315_v39 = vld [vmem:[%s8658_s16 + $0x70] sm:$0xff]  ;;  %v2564_v23 = vsel %vm452_vm0, %v2559_v52, %v2563_v35  ;;  %v2569_v52 = vshll.u32 %v9163_v26, 16 }
 0x23d   : > { %v9157_v15 = vld [vmem:[%s8658_s16 + $0x6c] sm:$0xff]  ;;  %2304 = vmatmul.bf16.gmra.mxu2 %v7315_v39 }
 0x23e   : > { %v2027_v58 = vadd.f32 %v9090_v60, %v1798_v2  ;;  %v1871_v60 = vrot.slane %v9157_v15, 1  ;;  %v1373_v2 = vadd.f32 %v8833_v32, %v9034_v41 }
 0x240   : > { %v2326_v63 = vadd.f32 %v9093_v44, %v2027_v58  ;;  %v9160_v44 = vpop.f32.mrf.mxu1  ;;  %v1872_v1 = vsel %vm892_vm1, %v1869_v27, %v1871_v60  ;;  %v9166_v22 = vpop.f32.mrf.mxu2  ;;  %v1614_v58 = vshll.u32 %v9129_v55, 16 }
 0x241   : > { %2005 = vmatmul.bf16.gmra.mxu1 %v1872_v1 }
 0x243   : > { %v2679_v25 = vpop.f32.mrf.mxu3  ;;  %v1727_v24 = vpop.f32.mrf.mxu0 }
 0x244   : > { %v9151_v14 = vadd.f32 %v2679_v25, %v2326_v63  ;;  %v2565_v63 = vshrl.u32 %v9136_v43, 16  ;;  %v1616_v25 = vrot.slane %v1614_v58, 1  ;;  %v2571_v24 = vrot.slane %v2569_v52, 1 }
 0x246   : > { %1766 = vmatmul.bf16.gmra.mxu0 %v1609_v9  ;;  %v2567_v56 = vor.u32 %v2565_v63, %v2563_v35  ;;  %v1873_v35 = vrot.slane %v9188_v47, 1 }
 0x248   : > { %2721 = vmatmul.bf16.gmra.mxu3 %v2564_v23  ;;  %v9175_v32 = vpop.f32.mrf.mxu1  ;;  %v9178_v9 = vpop.f32.mrf.mxu2  ;;  %v1374_v23 = vadd.f32 %v8839_v40, %v9041_v50  ;;  %v9194_v50 = vld [vmem:[%s8658_s16 + $0x78] sm:$0xff]  ;;  %v1874_v10 = vsel %vm892_vm1, %v1871_v60, %v1873_v35 }
 0x24b   : > { %v2682_v49 = vpop.f32.mrf.mxu3  ;;  %v1729_v57 = vpop.f32.mrf.mxu0 }
 0x24c   : > { %v1800_v37 = vadd.f32 %v1729_v57, %v1373_v2  ;;  %v2572_v57 = vsel %vm452_vm0, %v2567_v56, %v2571_v24 }
 0x24d   : > { %2309 = vmatmul.bf16.gmra.mxu2 %v7316_v20 }
 0x24e   : > { %v2029_v27 = vadd.f32 %v9119_v42, %v1800_v37  ;;  %v1617_v42 = vsel %vm452_vm0, %v1612_v30, %v1616_v25  ;;  %v1622_v30 = vshll.u32 %v9157_v15, 16 }
 0x250   : > { %v2328_v41 = vadd.f32 %v9121_v45, %v2029_v27  ;;  %v1971_v58 = vpop.f32.mrf.mxu1  ;;  %v2270_v37 = vpop.f32.mrf.mxu2 }
 0x251   : > { %2010 = vmatmul.bf16.gmra.mxu1 %v1874_v10 }
 0x253   : > { %v2684_v39 = vpop.f32.mrf.mxu3  ;;  %v1732_v49 = vpop.f32.mrf.mxu0 }
 0x254   : > { %v9182_v1 = vadd.f32 %v2684_v39, %v2328_v41  ;;  %v1801_v2 = vadd.f32 %v1732_v49, %v1374_v23  ;;  %v2573_v41 = vshrl.u32 %v9163_v26, 16  ;;  %v1624_v39 = vrot.slane %v1622_v30, 1 }
 0x256   : > { %v2030_v45 = vadd.f32 %v9132_v29, %v1801_v2  ;;  %1771 = vmatmul.bf16.gmra.mxu0 %v1617_v42  ;;  %v1618_v29 = vshrl.u32 %v9129_v55, 16  ;;  %v2575_v60 = vor.u32 %v2573_v41, %v2571_v24  ;;  %v1376_v55 = vadd.f32 %v8852_v12, %v9067_v54  ;;  %v9221_v54 = vld [vmem:[%s8658_s16 + $0x80] sm:$0xff] }
 0x258   : > { %2726 = vmatmul.bf16.gmra.mxu3 %v2572_v57  ;;  %v2329_v40 = vadd.f32 %v9139_v11, %v2030_v45  ;;  %v2577_v11 = vshll.u32 %v9194_v50, 16  ;;  %v1620_v56 = vor.u32 %v1618_v29, %v1616_v25  ;;  %v9203_v23 = vpop.f32.mrf.mxu1  ;;  %v9205_v42 = vpop.f32.mrf.mxu2  ;;  %v7317_v45 = vld [vmem:[%s8658_s16 + $0x80] sm:$0xff] }
 0x259   : > { %v9213_v25 = vld [vmem:[%s8658_s16 + $0x7c] sm:$0xff] }
 0x25a   : > { %v2579_v49 = vrot.slane %v2577_v11, 1  ;;  %v1625_v57 = vsel %vm452_vm0, %v1620_v56, %v1624_v39  ;;  %v1875_v24 = vrot.slane %v9213_v25, 1  ;;  %v1626_v56 = vshrl.u32 %v9157_v15, 16 }
 0x25b   : > { %v2687_v63 = vpop.f32.mrf.mxu3  ;;  %v1734_v27 = vpop.f32.mrf.mxu0 }
 0x25c   : > { %v9197_v52 = vadd.f32 %v2687_v63, %v2329_v40  ;;  %v2580_v40 = vsel %vm452_vm0, %v2575_v60, %v2579_v49  ;;  %v1876_v63 = vsel %vm892_vm1, %v1873_v35, %v1875_v24  ;;  %v7349_v27 = vld [vmem:[#allocation5 + $0x200] sm:$0xff]  ;;  %v2585_v35 = vshll.u32 %v9221_v54, 16 }
 0x25d   : > { %2314 = vmatmul.bf16.gmra.mxu2 %v7317_v45  ;;  %2904 = vmatpush.bf16.msrb.mxu0 %v7349_v27 }
 0x260   : > { %v9217_v37 = vpop.f32.mrf.mxu1  ;;  %v9224_v29 = vpop.f32.mrf.mxu2 }
 0x261   : > { %2015 = vmatmul.bf16.gmra.mxu1 %v1876_v63 }
 0x263   : > { %v2689_v20 = vpop.f32.mrf.mxu3  ;;  %v1737_v2 = vpop.f32.mrf.mxu0 }
 0x264   : > { %v1803_v58 = vadd.f32 %v1737_v2, %v1376_v55  ;;  %v2581_v20 = vshrl.u32 %v9194_v50, 16  ;;  %v1430_v55 = vld [vmem:[%s8658_s16 + $0x84] sm:$0x1] }
 0x265   : > { %v1509_v15 = vunpack.c.l.b16 %v1430_v55  ;;  %v1634_v55 = vshrl.u32 %v9188_v47, 16 }
 0x266   : > { %v2032_v10 = vadd.f32 %v9160_v44, %v1803_v58  ;;  %1776 = vmatmul.bf16.gmra.mxu0 %v1625_v57  ;;  %v1377_v44 = vadd.f32 %v8857_v36, %v9084_v4  ;;  %v1628_v57 = vor.u32 %v1626_v56, %v1624_v39  ;;  %v2583_v58 = vor.u32 %v2581_v20, %v2579_v49  ;;  %v9243_v49 = vld [vmem:[%s8658_s16 + $0x88] sm:$0xff] }
 0x267   : > { %v1379_v20 = vadd.f32 %v8872_v53, %v9115_v5  ;;  %v2385_v5 = vld [vmem:[%s8658_s16 + $0x90] sm:$0x1] }
 0x268   : > { %2731 = vmatmul.bf16.gmra.mxu3 %v2580_v40  ;;  %v2331_v12 = vadd.f32 %v9166_v22, %v2032_v10  ;;  %v1630_v22 = vshll.u32 %v9188_v47, 16  ;;  %v1978_v4 = vpop.f32.mrf.mxu1  ;;  %v2587_v40 = vrot.slane %v2585_v35, 1  ;;  %v2277_v10 = vpop.f32.mrf.mxu2 }
 0x269   : > { %v2589_v4 = vshrl.u32 %v9221_v54, 16 }
 0x26a   : > { %v1632_v36 = vrot.slane %v1630_v22, 1 }
 0x26b   : > { %v2692_v30 = vpop.f32.mrf.mxu3  ;;  %v1739_v11 = vpop.f32.mrf.mxu0 }
 0x26c   : > { %v9228_v41 = vadd.f32 %v2692_v30, %v2331_v12  ;;  %v1804_v60 = vadd.f32 %v1739_v11, %v1377_v44  ;;  %v1633_v30 = vsel %vm452_vm0, %v1628_v57, %v1632_v36  ;;  %v7318_v44 = vld [vmem:[%s8658_s16 + $0x88] sm:$0xff]  ;;  %v2588_v11 = vsel %vm452_vm0, %v2583_v58, %v2587_v40 }
 0x26d   : > { %2319 = vmatmul.bf16.gmra.mxu2 %v7318_v44 }
 0x26e   : > { %v2033_v2 = vadd.f32 %v9175_v32, %v1804_v60  ;;  %v1525_v32 = vpack.c.b16 %v1509_v15, %v1509_v15 }
 0x270   : > { %v2332_v45 = vadd.f32 %v9178_v9, %v2033_v2  ;;  %v1877_v39 = vrot.slane %v1525_v32, 1  ;;  %v1981_v9 = vpop.f32.mrf.mxu1  ;;  %v2280_v22 = vpop.f32.mrf.mxu2  ;;  %v1638_v2 = vshll.u32 %v9213_v25, 16 }
 0x272   : > { %v1878_v56 = vsel %vm892_vm1, %v1875_v24, %v1877_v39  ;;  %v1636_v24 = vor.u32 %v1634_v55, %v1632_v36  ;;  %v1640_v15 = vrot.slane %v1638_v2, 1 }
 0x273   : > { %v2694_v12 = vpop.f32.mrf.mxu3  ;;  %v1742_v27 = vpop.f32.mrf.mxu0  ;;  %2020 = vmatmul.bf16.gmra.mxu1 %v1878_v56 }
 0x274   : > { %v9237_v63 = vadd.f32 %v2694_v12, %v2332_v45  ;;  %v2593_v45 = vshll.u32 %v9243_v49, 16  ;;  %v2591_v27 = vor.u32 %v2589_v4, %v2587_v40  ;;  %v1641_v39 = vsel %vm452_vm0, %v1636_v24, %v1640_v15 }
 0x275   : > { %v1642_v4 = vshrl.u32 %v9213_v25, 16 }
 0x276   : > { %1781 = vmatmul.bf16.gmra.mxu0 %v1633_v30  ;;  %v2595_v53 = vrot.slane %v2593_v45, 1  ;;  %v2597_v45 = vshrl.u32 %v9243_v49, 16 }
 0x278   : > { %2736 = vmatmul.bf16.gmra.mxu3 %v2588_v11  ;;  %v1983_v10 = vpop.f32.mrf.mxu1  ;;  %v2282_v30 = vpop.f32.mrf.mxu2 }
 0x27b   : > { %v2697_v60 = vpop.f32.mrf.mxu3  ;;  %v1744_v35 = vpop.f32.mrf.mxu0 }
 0x27c   : > { %v1806_v57 = vadd.f32 %v1744_v35, %v1379_v20  ;;  %v2596_v60 = vsel %vm452_vm0, %v2591_v27, %v2595_v53 }
 0x27e   : > { %v2035_v58 = vadd.f32 %v9203_v23, %v1806_v57  ;;  %v2464_v23 = vunpack.c.l.b16 %v2385_v5 }
 0x280   : > { %v2334_v12 = vadd.f32 %v9205_v42, %v2035_v58  ;;  %v1986_v42 = vpop.f32.mrf.mxu1  ;;  %v9262_v20 = vpack.c.b16 %v2464_v23, %v2464_v23  ;;  %v2285_v35 = vpop.f32.mrf.mxu2  ;;  %v7752_v23 = vld [vmem:[%s8658_s16 + $0x18] sm:$0xf0] }
 0x282   : > { %v2601_v58 = vshll.u32 %v9262_v20, 16 }
 0x283   : > { %v2699_v44 = vpop.f32.mrf.mxu3  ;;  %v1747_v11 = vpop.f32.mrf.mxu0 }
 0x284   : > { %v9255_v47 = vadd.f32 %v2699_v44, %v2334_v12  ;;  %v1807_v56 = vadd.f32 %v1747_v11, %v8883_v38  ;;  %v1646_v38 = vshll.u32 %v1525_v32, 16  ;;  %v2603_v27 = vrot.slane %v2601_v58, 1 }
 0x286   : > { %v2036_v36 = vadd.f32 %v9217_v37, %v1807_v56  ;;  %1786 = vmatmul.bf16.gmra.mxu0 %v1641_v39  ;;  %v1644_v37 = vor.u32 %v1642_v4, %v1640_v15  ;;  %v1648_v24 = vrot.slane %v1646_v38, 1 }
 0x288   : > { %2741 = vmatmul.bf16.gmra.mxu3 %v2596_v60  ;;  %v2335_v40 = vadd.f32 %v9224_v29, %v2036_v36  ;;  %v1988_v12 = vpop.f32.mrf.mxu1  ;;  %v2599_v29 = vor.u32 %v2597_v45, %v2595_v53  ;;  %v2287_v5 = vpop.f32.mrf.mxu2  ;;  %v1649_v39 = vsel %vm452_vm0, %v1644_v37, %v1648_v24  ;;  %v7753_v36 = vld [vmem:[%s8658_s16 + $0x18] sm:$0xe] }
 0x28a   : > { %v2604_v25 = vsel %vm452_vm0, %v2599_v29, %v2603_v27 }
 0x28b   : > { %v2702_v55 = vpop.f32.mrf.mxu3  ;;  %v1749_v57 = vpop.f32.mrf.mxu0 }
 0x28c   : > { %v9264_v2 = vadd.f32 %v2702_v55, %v2335_v40  ;;  %v7754_v55 = vor.u32 %v7753_v36, %v7752_v23 }
 0x28e   : > { %v2803_v38 = vrot.slane %v7754_v55, 1 }
 0x290   : > { %v1991_v60 = vpop.f32.mrf.mxu1  ;;  %v2290_v42 = vpop.f32.mrf.mxu2 }
 0x293   : > { %v2704_v44 = vpop.f32.mrf.mxu3  ;;  %v1752_v11 = vpop.f32.mrf.mxu0 }
 0x294   : > { %v1809_v56 = vadd.f32 %v1752_v11, %v8908_v19  ;;  %v9953_v19 = vld [vmem:[#allocation29_spill] sm:$0xff] }
 0x295   : > { %v2804_v45 = vrot.slane %v9953_v19, 1 }
 0x296   : > { %v2038_v32 = vadd.f32 %v1981_v9, %v1809_v56  ;;  %1791 = vmatmul.bf16.gmra.mxu0 %v1649_v39 }
 0x297   : > { %v2805_v27 = vsel %vm892_vm1, %v2803_v38, %v2804_v45 }
 0x298   : > { %2746 = vmatmul.bf16.gmra.mxu3 %v2604_v25  ;;  %v2337_v15 = vadd.f32 %v2280_v22, %v2038_v32  ;;  %v1993_v58 = vpop.f32.mrf.mxu1  ;;  %v2292_v37 = vpop.f32.mrf.mxu2  ;;  %v2806_v25 = vrot.slane %v8930_v46, 1 }
 0x29b   : > { %v2707_v40 = vpop.f32.mrf.mxu3  ;;  %v1754_v35 = vpop.f32.mrf.mxu0 }
 0x29c   : > { %v9274_v53 = vadd.f32 %v2707_v40, %v2337_v15  ;;  %v1810_v57 = vadd.f32 %v1754_v35, %v8917_v28  ;;  %v2807_v35 = vsel %vm892_vm1, %v2804_v45, %v2806_v25 }
 0x29e   : > { %v2039_v4 = vadd.f32 %v1983_v10, %v1810_v57 }
 0x2a0   : > { %v2338_v9 = vadd.f32 %v2282_v30, %v2039_v4  ;;  %v1996_v44 = vpop.f32.mrf.mxu1  ;;  %v2295_v11 = vpop.f32.mrf.mxu2 }
 0x2a3   : > { %v2709_v24 = vpop.f32.mrf.mxu3  ;;  %v1757_v22 = vpop.f32.mrf.mxu0 }
 0x2a4   : > { %v9278_v29 = vadd.f32 %v2709_v24, %v2338_v9 }
 0x2a6   : > { %2905 = vmatmul.bf16.vlgmr.msrb.gmra.mxu0 %v2805_v27 }
 0x2a8   : > { %v1998_v32 = vpop.f32.mrf.mxu1  ;;  %v2297_v30 = vpop.f32.mrf.mxu2 }
 0x2ab   : > { %v2712_v39 = vpop.f32.mrf.mxu3  ;;  %v1759_v56 = vpop.f32.mrf.mxu0 }
 0x2ac   : > { %v1812_v28 = vadd.f32 %v1759_v56, %v8942_v31 }
 0x2ae   : > { %v2041_v10 = vadd.f32 %v1988_v12, %v1812_v28 }
 0x2b0   : > { %v2340_v15 = vadd.f32 %v2287_v5, %v2041_v10  ;;  %v2001_v4 = vpop.f32.mrf.mxu1  ;;  %v2300_v19 = vpop.f32.mrf.mxu2  ;;  %v2808_v5 = vrot.slane %v8952_v8, 1 }
 0x2b2   : > { %v2809_v22 = vsel %vm892_vm1, %v2806_v25, %v2808_v5 }
 0x2b3   : > { %v2714_v23 = vpop.f32.mrf.mxu3  ;;  %v1762_v40 = vpop.f32.mrf.mxu0 }
 0x2b4   : > { %v9283_v36 = vadd.f32 %v2714_v23, %v2340_v15  ;;  %v1813_v55 = vadd.f32 %v1762_v40, %v8956_v33  ;;  %v2810_v15 = vrot.slane %v8975_v0, 1 }
 0x2b6   : > { %v2042_v57 = vadd.f32 %v1991_v60, %v1813_v55  ;;  %2910 = vmatmul.bf16.gmra.mxu0 %v2807_v35 }
 0x2b8   : > { %v2341_v38 = vadd.f32 %v2290_v42, %v2042_v57  ;;  %v2003_v58 = vpop.f32.mrf.mxu1  ;;  %v2302_v9 = vpop.f32.mrf.mxu2 }
 0x2bb   : > { %v2717_v31 = vpop.f32.mrf.mxu3  ;;  %v1764_v46 = vpop.f32.mrf.mxu0 }
 0x2bc   : > { %v9287_v12 = vadd.f32 %v2717_v31, %v2341_v38 }
 0x2c0   : > { %v2006_v60 = vpop.f32.mrf.mxu1  ;;  %v2305_v42 = vpop.f32.mrf.mxu2 }
 0x2c3   : > { %v2719_v37 = vpop.f32.mrf.mxu3  ;;  %v1767_v24 = vpop.f32.mrf.mxu0 }
 0x2c4   : > { %v1815_v45 = vadd.f32 %v1767_v24, %v8979_v21 }
 0x2c6   : > { %v2044_v33 = vadd.f32 %v1996_v44, %v1815_v45  ;;  %2915 = vmatmul.bf16.gmra.mxu0 %v2809_v22  ;;  %v2811_v44 = vsel %vm892_vm1, %v2808_v5, %v2810_v15 }
 0x2c8   : > { %v2343_v27 = vadd.f32 %v2295_v11, %v2044_v33  ;;  %v2008_v23 = vpop.f32.mrf.mxu1  ;;  %v2307_v35 = vpop.f32.mrf.mxu2 }
 0x2cb   : > { %v2722_v39 = vpop.f32.mrf.mxu3  ;;  %v1769_v28 = vpop.f32.mrf.mxu0 }
 0x2cc   : > { %v9292_v56 = vadd.f32 %v2722_v39, %v2343_v27  ;;  %v1816_v10 = vadd.f32 %v1769_v28, %v8987_v48 }
 0x2ce   : > { %v2045_v8 = vadd.f32 %v1998_v32, %v1816_v10  ;;  %v2812_v32 = vrot.slane %v9000_v16, 1 }
 0x2d0   : > { %v2344_v40 = vadd.f32 %v2297_v30, %v2045_v8  ;;  %v2011_v11 = vpop.f32.mrf.mxu1  ;;  %v2310_v57 = vpop.f32.mrf.mxu2  ;;  %v2813_v22 = vsel %vm892_vm1, %v2810_v15, %v2812_v32 }
 0x2d3   : > { %v2724_v25 = vpop.f32.mrf.mxu3  ;;  %v1772_v21 = vpop.f32.mrf.mxu0 }
 0x2d4   : > { %v9296_v55 = vadd.f32 %v2724_v25, %v2344_v40 }
 0x2d6   : > { %2920 = vmatmul.bf16.gmra.mxu0 %v2811_v44 }
 0x2d8   : > { %v2013_v0 = vpop.f32.mrf.mxu1  ;;  %v2312_v30 = vpop.f32.mrf.mxu2 }
 0x2db   : > { %v2727_v4 = vpop.f32.mrf.mxu3  ;;  %v1774_v38 = vpop.f32.mrf.mxu0 }
 0x2dc   : > { %v1818_v19 = vadd.f32 %v1774_v38, %v9014_v61  ;;  %v2816_v38 = vrot.slane %v9049_v6, 1 }
 0x2de   : > { %v2047_v48 = vadd.f32 %v2003_v58, %v1818_v19 }
 0x2e0   : > { %v2346_v31 = vadd.f32 %v2302_v9, %v2047_v48  ;;  %v2016_v33 = vpop.f32.mrf.mxu1  ;;  %v2315_v39 = vpop.f32.mrf.mxu2  ;;  %v2814_v9 = vrot.slane %v9024_v18, 1 }
 0x2e2   : > { %v2815_v40 = vsel %vm892_vm1, %v2812_v32, %v2814_v9 }
 0x2e3   : > { %v2729_v46 = vpop.f32.mrf.mxu3  ;;  %v1777_v24 = vpop.f32.mrf.mxu0 }
 0x2e4   : > { %v9301_v37 = vadd.f32 %v2729_v46, %v2346_v31  ;;  %v1819_v5 = vadd.f32 %v1777_v24, %v9030_v62 }
 0x2e6   : > { %v2048_v45 = vadd.f32 %v2006_v60, %v1819_v5  ;;  %2925 = vmatmul.bf16.gmra.mxu0 %v2813_v22 }
 0x2e8   : > { %v2347_v27 = vadd.f32 %v2305_v42, %v2048_v45  ;;  %v2018_v28 = vpop.f32.mrf.mxu1  ;;  %v2317_v10 = vpop.f32.mrf.mxu2 }
 0x2eb   : > { %v2732_v61 = vpop.f32.mrf.mxu3  ;;  %v1779_v16 = vpop.f32.mrf.mxu0 }
 0x2ec   : > { %v9305_v58 = vadd.f32 %v2732_v61, %v2347_v27 }
 0x2f0   : > { %v2021_v60 = vpop.f32.mrf.mxu1  ;;  %v2320_v42 = vpop.f32.mrf.mxu2 }
 0x2f3   : > { %v2734_v8 = vpop.f32.mrf.mxu3  ;;  %v1782_v23 = vpop.f32.mrf.mxu0 }
 0x2f4   : > { %v1821_v15 = vadd.f32 %v1782_v23, %v9053_v17 }
 0x2f6   : > { %v2050_v62 = vadd.f32 %v2011_v11, %v1821_v15  ;;  %2930 = vmatmul.bf16.gmra.mxu0 %v2815_v40  ;;  %v2817_v11 = vsel %vm892_vm1, %v2814_v9, %v2816_v38  ;;  %v9331_v40 = vld [vmem:[%s9922_s3] ss:$0 sm:$0xff]  ;;  %v9337_v15 = vld [vmem:[%s9922_s3 + $0x1] ss:$0 sm:$0xff] }
 0x2f8   : > { %v2349_v35 = vadd.f32 %v2310_v57, %v2050_v62  ;;  %v2023_v19 = vpop.f32.mrf.mxu1  ;;  %v2322_v31 = vpop.f32.mrf.mxu2 }
 0x2f9   : > { %v2824_v31 = vrot.slane %v9163_v26, 1 }
 0x2fb   : > { %v2737_v25 = vpop.f32.mrf.mxu3  ;;  %v1784_v44 = vpop.f32.mrf.mxu0 }
 0x2fc   : > { %v9310_v21 = vadd.f32 %v2737_v25, %v2349_v35  ;;  %v1822_v4 = vadd.f32 %v1784_v44, %v9062_v7  ;;  %v2818_v7 = vrot.slane %v9075_v3, 1  ;;  %v2822_v35 = vrot.slane %v9136_v43, 1 }
 0x2fd   : > { %v8458_v43 = vmov 0.0|0.0  }
 0x2fe   : > { %v2051_v18 = vadd.f32 %v2013_v0, %v1822_v4  ;;  %v2819_v33 = vsel %vm892_vm1, %v2816_v38, %v2818_v7 }
 0x300   : > { %v2350_v48 = vadd.f32 %v2312_v30, %v2051_v18 }
 0x303   : > { %v2739_v32 = vpop.f32.mrf.mxu3  ;;  %v1787_v17 = vpop.f32.mrf.mxu0 }
 0x304   : > { %v9314_v46 = vadd.f32 %v2739_v32, %v2350_v48  ;;  %v9349_v17 = vunpack.c.l.bf16 %v8458_v43 }
 0x306   : > { %2935 = vmatmul.bf16.gmra.mxu0 %v2817_v11 }
 0x30b   : > { %v2742_v57 = vpop.f32.mrf.mxu3  ;;  %v1789_v24 = vpop.f32.mrf.mxu0 }
 0x30c   : > { %v1824_v22 = vadd.f32 %v1789_v24, %v9095_v51  ;;  %v2820_v51 = vrot.slane %v9105_v13, 1  ;;  %v2825_v24 = vsel %vm892_vm1, %v2822_v35, %v2824_v31 }
 0x30e   : > { %v2053_v5 = vadd.f32 %v2018_v28, %v1824_v22  ;;  %v2823_v18 = vsel %vm892_vm1, %v2820_v51, %v2822_v35 }
 0x310   : > { %v2352_v0 = vadd.f32 %v2317_v10, %v2053_v5  ;;  %v2821_v10 = vsel %vm892_vm1, %v2818_v7, %v2820_v51 }
 0x313   : > { %v2744_v45 = vpop.f32.mrf.mxu3  ;;  %v1792_v30 = vpop.f32.mrf.mxu0 }
 0x314   : > { %v9319_v6 = vadd.f32 %v2744_v45, %v2352_v0  ;;  %v1825_v27 = vadd.f32 %v1792_v30, %v9111_v59  ;;  %v2826_v30 = vrot.slane %v9194_v50, 1 }
 0x316   : > { %v2054_v39 = vadd.f32 %v2021_v60, %v1825_v27  ;;  %2940 = vmatmul.bf16.gmra.mxu0 %v2819_v33  ;;  %v2827_v27 = vsel %vm892_vm1, %v2824_v31, %v2826_v30 }
 0x318   : > { %v2353_v61 = vadd.f32 %v2320_v42, %v2054_v39 }
 0x31b   : > { %v2747_v16 = vpop.f32.mrf.mxu3  ;;  %v1794_v8 = vpop.f32.mrf.mxu0 }
 0x31c   : > { %v9323_v9 = vadd.f32 %v2747_v16, %v2353_v61 }
 0x323   : > { %v2749_v28 = vpop.f32.mrf.mxu3  ;;  %v2906_v3 = vpop.f32.mrf.mxu0 }
 0x324   : > { %v2981_v23 = vadd.f32 %v2906_v3, %v9143_v34  ;;  %v2828_v28 = vrot.slane %v9221_v54, 1 }
 0x326   : > { %2945 = vmatmul.bf16.gmra.mxu0 %v2821_v10  ;;  %v3012_v59 = vmul.f32 %v9331_v40, %v2981_v23 }
 0x328   : > { %v3043_v60 = vadd.f32 %v9337_v15, %v3012_v59  ;;  %v2829_v59 = vsel %vm892_vm1, %v2826_v30, %v2828_v28 }
 0x32a   : > { %v3073_v25 = vmax.f32 %v3043_v60, 0.0  ;;  %v2830_v60 = vrot.slane %v9243_v49, 1 }
 0x32b   : > { %v2908_v13 = vpop.f32.mrf.mxu0 }
 0x32c   : > { %v2982_v62 = vadd.f32 %v2908_v13, %v9151_v14 }
 0x32e   : > { %v3013_v34 = vmul.f32 %v9331_v40, %v2982_v62 }
 0x330   : > { %v3044_v42 = vadd.f32 %v9337_v15, %v3013_v34 }
 0x332   : > { %v3074_v44 = vmax.f32 %v3044_v42, 0.0  ;;  %v2831_v42 = vsel %vm892_vm1, %v2828_v28, %v2830_v60 }
 0x333   : > { %v2911_v4 = vpop.f32.mrf.mxu0 }
 0x334   : > { %v7476_v38 = vpack.c.bf16 %v3074_v44, %v3073_v25 }
 0x336   : > { %7755 = vst [vmem:[#allocation3 + $0x8] sm:$0xff] %v7476_v38   ;;  %2950 = vmatmul.bf16.gmra.mxu0 %v2823_v18 }
 0x33b   : > { %v2913_v19 = vpop.f32.mrf.mxu0 }
 0x33c   : > { %v2984_v48 = vadd.f32 %v2913_v19, %v9182_v1  ;;  %v2832_v19 = vrot.slane %v9262_v20, 1 }
 0x33e   : > { %v3015_v14 = vmul.f32 %v9331_v40, %v2984_v48 }
 0x340   : > { %v3046_v32 = vadd.f32 %v9337_v15, %v3015_v14  ;;  %v2833_v14 = vsel %vm892_vm1, %v2830_v60, %v2832_v19 }
 0x342   : > { %v3076_v11 = vmax.f32 %v3046_v32, 0.0 }
 0x343   : > { %v2916_v57 = vpop.f32.mrf.mxu0 }
 0x344   : > { %v7481_v22 = vpack.c.bf16 %v3076_v11, %v9349_v17  ;;  %v2985_v5 = vadd.f32 %v2916_v57, %v9197_v52 }
 0x346   : > { %7756 = vst [vmem:[#allocation3 + $0x10] sm:$0xff] %v7481_v22   ;;  %v3016_v1 = vmul.f32 %v9331_v40, %v2985_v5  ;;  %2955 = vmatmul.bf16.gmra.mxu0 %v2825_v24 }
 0x348   : > { %v3047_v7 = vadd.f32 %v9337_v15, %v3016_v1 }
 0x34a   : > { %v3077_v26 = vmax.f32 %v3047_v7, 0.0 }
 0x34b   : > { %v2918_v0 = vpop.f32.mrf.mxu0 }
 0x34c   : > { %v7486_v45 = vpack.c.bf16 %v9349_v17, %v3077_v26 }
 0x34e   : > { %7757 = vst [vmem:[#allocation3 + $0x18] sm:$0xff] %v7486_v45  }
 0x353   : > { %v2921_v33 = vpop.f32.mrf.mxu0 }
 0x354   : > { %v2987_v39 = vadd.f32 %v2921_v33, %v9228_v41 }
 0x356   : > { %2960 = vmatmul.bf16.gmra.mxu0 %v2827_v27  ;;  %v3018_v52 = vmul.f32 %v9331_v40, %v2987_v39 }
 0x358   : > { %v3049_v8 = vadd.f32 %v9337_v15, %v3018_v52 }
 0x35a   : > { %v3079_v50 = vmax.f32 %v3049_v8, 0.0 }
 0x35b   : > { %v2923_v61 = vpop.f32.mrf.mxu0 }
 0x35c   : > { %v2988_v16 = vadd.f32 %v2923_v61, %v9237_v63 }
 0x35e   : > { %v3019_v51 = vmul.f32 %v9331_v40, %v2988_v16 }
 0x360   : > { %v3050_v3 = vadd.f32 %v9337_v15, %v3019_v51 }
 0x362   : > { %v3080_v10 = vmax.f32 %v3050_v3, 0.0 }
 0x363   : > { %v2926_v23 = vpop.f32.mrf.mxu0 }
 0x364   : > { %v7491_v41 = vpack.c.bf16 %v3080_v10, %v3079_v50 }
 0x366   : > { %7758 = vst [vmem:[#allocation3 + $0x20] sm:$0xff] %v7491_v41   ;;  %2965 = vmatmul.bf16.gmra.mxu0 %v2829_v59 }
 0x36b   : > { %v2928_v13 = vpop.f32.mrf.mxu0 }
 0x36c   : > { %v2990_v62 = vadd.f32 %v2928_v13, %v9255_v47 }
 0x36e   : > { %v3021_v63 = vmul.f32 %v9331_v40, %v2990_v62 }
 0x370   : > { %v3052_v34 = vadd.f32 %v9337_v15, %v3021_v63 }
 0x372   : > { %v3082_v54 = vmax.f32 %v3052_v34, 0.0 }
 0x373   : > { %v2931_v35 = vpop.f32.mrf.mxu0 }
 0x374   : > { %v7496_v25 = vpack.c.bf16 %v3082_v54, %v9349_v17  ;;  %v2991_v44 = vadd.f32 %v2931_v35, %v9264_v2 }
 0x376   : > { %7759 = vst [vmem:[#allocation3 + $0x28] sm:$0xff] %v7496_v25   ;;  %v3022_v4 = vmul.f32 %v9331_v40, %v2991_v44  ;;  %2970 = vmatmul.bf16.gmra.mxu0 %v2831_v42 }
 0x378   : > { %v3053_v47 = vadd.f32 %v9337_v15, %v3022_v4 }
 0x37a   : > { %v3083_v18 = vmax.f32 %v3053_v47, 0.0 }
 0x37b   : > { %v2933_v38 = vpop.f32.mrf.mxu0 }
 0x37c   : > { %v7501_v49 = vpack.c.bf16 %v9349_v17, %v3083_v18 }
 0x37e   : > { %7760 = vst [vmem:[#allocation3 + $0x30] sm:$0xff] %v7501_v49  }
 0x383   : > { %v2936_v48 = vpop.f32.mrf.mxu0 }
 0x384   : > { %v2993_v31 = vadd.f32 %v2936_v48, %v9274_v53 }
 0x386   : > { %2975 = vmatmul.bf16.gmra.mxu0 %v2833_v14  ;;  %v3024_v2 = vmul.f32 %v9331_v40, %v2993_v31 }
 0x388   : > { %v3055_v11 = vadd.f32 %v9337_v15, %v3024_v2 }
 0x38a   : > { %v3085_v22 = vmax.f32 %v3055_v11, 0.0 }
 0x38b   : > { %v2938_v32 = vpop.f32.mrf.mxu0 }
 0x38c   : > { %v2994_v43 = vadd.f32 %v2938_v32, %v9278_v29 }
 0x38e   : > { %v3025_v57 = vmul.f32 %v9331_v40, %v2994_v43 }
 0x390   : > { %v3056_v24 = vadd.f32 %v9337_v15, %v3025_v57 }
 0x392   : > { %v3086_v5 = vmax.f32 %v3056_v24, 0.0 }
 0x393   : > { %v2941_v20 = vpop.f32.mrf.mxu0 }
 0x394   : > { %v7506_v1 = vpack.c.bf16 %v3086_v5, %v3085_v22 }
 0x396   : > { %7761 = vst [vmem:[#allocation3 + $0x38] sm:$0xff] %v7506_v1  }
 0x39b   : > { %v2943_v7 = vpop.f32.mrf.mxu0 }
 0x39c   : > { %v2996_v53 = vadd.f32 %v2943_v7, %v9283_v36 }
 0x39e   : > { %v3027_v26 = vmul.f32 %v9331_v40, %v2996_v53 }
 0x3a0   : > { %v3058_v0 = vadd.f32 %v9337_v15, %v3027_v26 }
 0x3a2   : > { %v3088_v45 = vmax.f32 %v3058_v0, 0.0 }
 0x3a3   : > { %v2946_v29 = vpop.f32.mrf.mxu0 }
 0x3a4   : > { %v7511_v30 = vpack.c.bf16 %v3088_v45, %v9349_v17  ;;  %v2997_v33 = vadd.f32 %v2946_v29, %v9287_v12 }
 0x3a6   : > { %7762 = vst [vmem:[#allocation3 + $0x40] sm:$0xff] %v7511_v30   ;;  %v3028_v27 = vmul.f32 %v9331_v40, %v2997_v33 }
 0x3a8   : > { %v3059_v39 = vadd.f32 %v9337_v15, %v3028_v27 }
 0x3aa   : > { %v3089_v52 = vmax.f32 %v3059_v39, 0.0 }
 0x3ab   : > { %v2948_v61 = vpop.f32.mrf.mxu0 }
 0x3ac   : > { %v7516_v16 = vpack.c.bf16 %v9349_v17, %v3089_v52 }
 0x3ae   : > { %7763 = vst [vmem:[#allocation3 + $0x48] sm:$0xff] %v7516_v16  }
 0x3b3   : > { %v2951_v36 = vpop.f32.mrf.mxu0 }
 0x3b4   : > { %v2999_v8 = vadd.f32 %v2951_v36, %v9292_v56 }
 0x3b6   : > { %v3030_v51 = vmul.f32 %v9331_v40, %v2999_v8 }
 0x3b8   : > { %v3061_v12 = vadd.f32 %v9337_v15, %v3030_v51 }
 0x3ba   : > { %v3091_v23 = vmax.f32 %v3061_v12, 0.0 }
 0x3bb   : > { %v2953_v28 = vpop.f32.mrf.mxu0 }
 0x3bc   : > { %v3000_v3 = vadd.f32 %v2953_v28, %v9296_v55 }
 0x3be   : > { %v3031_v50 = vmul.f32 %v9331_v40, %v3000_v3 }
 0x3c0   : > { %v3062_v10 = vadd.f32 %v9337_v15, %v3031_v50 }
 0x3c2   : > { %v3092_v59 = vmax.f32 %v3062_v10, 0.0 }
 0x3c3   : > { %v2956_v41 = vpop.f32.mrf.mxu0 }
 0x3c4   : > { %v7521_v13 = vpack.c.bf16 %v3092_v59, %v3091_v23 }
 0x3c6   : > { %7764 = vst [vmem:[#allocation3 + $0x50] sm:$0xff] %v7521_v13  }
 0x3cb   : > { %v2958_v62 = vpop.f32.mrf.mxu0 }
 0x3cc   : > { %v3002_v63 = vadd.f32 %v2958_v62, %v9301_v37 }
 0x3ce   : > { %v3033_v56 = vmul.f32 %v9331_v40, %v3002_v63 }
 0x3d0   : > { %v3064_v60 = vadd.f32 %v9337_v15, %v3033_v56 }
 0x3d2   : > { %v3094_v34 = vmax.f32 %v3064_v60, 0.0 }
 0x3d3   : > { %v2961_v55 = vpop.f32.mrf.mxu0 }
 0x3d4   : > { %v7526_v54 = vpack.c.bf16 %v3094_v34, %v9349_v17  ;;  %v3003_v35 = vadd.f32 %v2961_v55, %v9305_v58 }
 0x3d6   : > { %7765 = vst [vmem:[#allocation3 + $0x58] sm:$0xff] %v7526_v54   ;;  %v3034_v42 = vmul.f32 %v9331_v40, %v3003_v35 }
 0x3d8   : > { %v3065_v25 = vadd.f32 %v9337_v15, %v3034_v42 }
 0x3da   : > { %v3095_v44 = vmax.f32 %v3065_v25, 0.0 }
 0x3db   : > { %v2963_v4 = vpop.f32.mrf.mxu0 }
 0x3dc   : > { %v7531_v47 = vpack.c.bf16 %v9349_v17, %v3095_v44 }
 0x3de   : > { %7766 = vst [vmem:[#allocation3 + $0x60] sm:$0xff] %v7531_v47  }
 0x3e3   : > { %v2966_v37 = vpop.f32.mrf.mxu0 }
 0x3e4   : > { %v3005_v18 = vadd.f32 %v2966_v37, %v9310_v21 }
 0x3e6   : > { %v3036_v38 = vmul.f32 %v9331_v40, %v3005_v18 }
 0x3e8   : > { %v3067_v58 = vadd.f32 %v9337_v15, %v3036_v38 }
 0x3ea   : > { %v3097_v31 = vmax.f32 %v3067_v58, 0.0 }
 0x3eb   : > { %v2968_v49 = vpop.f32.mrf.mxu0 }
 0x3ec   : > { %v3006_v19 = vadd.f32 %v2968_v49, %v9314_v46 }
 0x3ee   : > { %v3037_v48 = vmul.f32 %v9331_v40, %v3006_v19 }
 0x3f0   : > { %v3068_v14 = vadd.f32 %v9337_v15, %v3037_v48 }
 0x3f2   : > { %v3098_v2 = vmax.f32 %v3068_v14, 0.0 }
 0x3f3   : > { %v2971_v32 = vpop.f32.mrf.mxu0 }
 0x3f4   : > { %v7536_v43 = vpack.c.bf16 %v3098_v2, %v3097_v31 }
 0x3f6   : > { %7767 = vst [vmem:[#allocation3 + $0x68] sm:$0xff] %v7536_v43  }
 0x3fb   : > { %v2973_v11 = vpop.f32.mrf.mxu0 }
 0x3fc   : > { %v3008_v57 = vadd.f32 %v2973_v11, %v9319_v6 }
 0x3fe   : > { %v3039_v21 = vmul.f32 %v9331_v40, %v3008_v57 }
 0x400   : > { %v3070_v24 = vadd.f32 %v9337_v15, %v3039_v21 }
 0x402   : > { %v3100_v22 = vmax.f32 %v3070_v24, 0.0 }
 0x403   : > { %v2976_v46 = vpop.f32.mrf.mxu0 }
 0x404   : > { %v7541_v5 = vpack.c.bf16 %v3100_v22, %v9349_v17  ;;  %v3009_v20 = vadd.f32 %v2976_v46, %v9323_v9 }
 0x406   : > { %7768 = vst [vmem:[#allocation3 + $0x70] sm:$0xff] %v7541_v5   ;;  %v3040_v1 = vmul.f32 %v9331_v40, %v3009_v20 }
 0x408   : > { %v3071_v7 = vadd.f32 %v9337_v15, %v3040_v1 }
 0x40a   : > { %v3101_v53 = vmax.f32 %v3071_v7, 0.0  ;;  %3203 = sbr.rel (%p6189_p1) target bundleno = 1043 (0x413), region = 68 }
 0x40b   : > { %v2978_v26 = vpop.f32.mrf.mxu0 }
 0x40c   : > { %v7546_v0 = vpack.c.bf16 %v9349_v17, %v3101_v53 }
 0x40e   : > { %7769 = vst [vmem:[#allocation3 + $0x78] sm:$0xff] %v7546_v0  }
 0x40f   : > { %vm3206_vm2 = vcmask 1043456   ;;  %vm3207_vm3 = vsmask.f32 3328  ;;  %v3209_v6 = vld [vmem:[#allocation3 + $0x10] sm:$0xf]  ;;  %v8459_v45 = vmov 0  }
 0x410   : > { %3204 = vst [vmem:[#allocation3 + $0x8] sm:$0xf] %v8459_v45  ;;  %vm3208_vm4 = vmand %vm3206_vm2, %vm3207_vm3 }
 0x411   : > { %3205 = vst [vmem:[#allocation3 + $0xc] sm:$0xf] %v8459_v45  ;;  %v3210_v9 = vsel %vm3208_vm4, 0, %v3209_v6 }
 0x412   : > { %3211 = vst [vmem:[#allocation3 + $0x10] sm:$0xf] %v3210_v9 }
 0x413 PF: > { %p6772_p9 = scmp.ne.s32.totalorder %s8433_s21, 1 }
 0x415   : > { %3215 = sbr.rel (%p6772_p9) target bundleno = 1055 (0x41f), region = 72 }
 0x41a   : > { %vm3216_vm5 = vcmask 1043459   ;;  %vm3217_vm6 = vsmask.f32 7950  ;;  %v3219_v40 = vld [vmem:[#allocation3 + $0x70] sm:$0x8]  ;;  %v8460_v15 = vmov 0  }
 0x41b   : > { %vm3218_vm7 = vmand %vm3216_vm5, %vm3217_vm6  ;;  %3222 = vst [vmem:[#allocation3 + $0x74] sm:$0xf] %v8460_v15 }
 0x41c   : > { %v3220_v17 = vsel %vm3218_vm7, 0, %v3219_v40  ;;  %3223 = vst [vmem:[#allocation3 + $0x78] sm:$0xf] %v8460_v15 }
 0x41d   : > { %3221 = vst [vmem:[#allocation3 + $0x70] sm:$0x8] %v3220_v17 }
 0x41e   : > { %3224 = vst [vmem:[#allocation3 + $0x7c] sm:$0xf] %v8460_v15 }
 0x41f PF: > { %v7372_v29 = vld [vmem:[#allocation8 + $0x78] sm:$0xff]  ;;  %v7371_v27 = vld [vmem:[#allocation8 + $0x70] sm:$0xff]  ;;  %v7370_v61 = vld [vmem:[#allocation8 + $0x68] sm:$0xff]  ;;  %vm3487_vm8 = vsmask.f32 4352  ;;  %s8075_s12 = smul.u32 24, %s8433_s21 }
 0x420   : > { %v7364_v30 = vld [vmem:[#allocation8 + $0x38] sm:$0xff]  ;;  %3403 = vmatpush.bf16.msra.mxu1 %v7372_v29  ;;  %v7363_v39 = vld [vmem:[#allocation8 + $0x30] sm:$0xff]  ;;  %v7362_v16 = vld [vmem:[#allocation8 + $0x28] sm:$0xff]  ;;  %s8076_s30 = smul.u32 48, %s8437_s22  ;;  %s6056_s29 = sshll.u32 %s8656_s1, 4  ;;  %s6057_s29 = int_to_ptr.vmem [resolvable:$true] %s6056_s29 }
 0x421   : > { %v7392_v33 = vld [vmem:[#allocation8 + $0xb8] sm:$0xff]  ;;  %3664 = vmatpush.bf16.msra.mxu2 %v7364_v30  ;;  %v7391_v52 = vld [vmem:[#allocation8 + $0xb0] sm:$0xff]  ;;  %v7390_v36 = vld [vmem:[#allocation8 + $0xa8] sm:$0xff]  ;;  %s9956_s6 = sand.u32 1, %s8425_s19   ;;  %s8362_s16 = scalar_lea.hbm %s9924_s5, 384 }
 0x422   : > { %3998 = vmatpush.bf16.msrb.mxu3 %v7392_v33  ;;  %v7369_v8 = vld [vmem:[#allocation8 + $0x60] sm:$0xff]  ;;  %v7368_v50 = vld [vmem:[#allocation8 + $0x58] sm:$0xff]  ;;  %v7928_v23 = vld [vmem:[#allocation3 + $0xc] sm:$0xff]   ;;  %s6053_s28 = sadd.s32 %s8076_s30, %s8075_s12  ;;  %s6042_s9 = scalar_lea.sflag [#allocation7], %s9956_s6 }
 0x423   : > { %v7361_v51 = vld [vmem:[#allocation8 + $0x20] sm:$0xff]  ;;  %v7360_v10 = vld [vmem:[#allocation8 + $0x18] sm:$0xff]  ;;  %v7367_v62 = vld [vmem:[#allocation8 + $0x50] sm:$0xff]  ;;  %v3497_v34 = vshrl.u32 %v7928_v23, 16  ;;  %v3500_v55 = vshll.u32 %v7928_v23, 16  ;;  %s7205_s24 = sshll.u32 %s6053_s28, 2 }
 0x424   : > { %3404 = vmatpush.bf16.msra.mxu1 %v7371_v27  ;;  %v7389_v28 = vld [vmem:[#allocation8 + $0xa0] sm:$0xff]  ;;  %v7388_v41 = vld [vmem:[#allocation8 + $0x98] sm:$0xff]  ;;  %v7359_v63 = vld [vmem:[#allocation8 + $0x10] sm:$0xff]  ;;  %s6055_s11 = scalar_lea.hbm %s9924_s5, %s7205_s24 }
 0x425   : > { %3665 = vmatpush.bf16.msra.mxu2 %v7363_v39  ;;  %v7784_v3 = vld [vmem:[#allocation3 + $0x4] sm:$0x8]  ;;  %v7926_v12 = vld [vmem:[#allocation3 + $0x4] sm:$0xf0]   ;;  %v7387_v54 = vld [vmem:[#allocation8 + $0x90] sm:$0xff]  ;;  %v3499_v37 = vrot.slane %v3497_v34, 3 }
 0x426   : > { %3999 = vmatpush.bf16.msrb.mxu3 %v7391_v52  ;;  %v7785_v59 = vor.u32 %v7926_v12, %v7784_v3  ;;  %v7373_v13 = vld [vmem:[#allocation3 + $0x8] sm:$0xff]  ;;  %v7374_v35 = vld [vmem:[#allocation3 + $0x10] sm:$0xff]  ;;  %v3502_v18 = vrot.slane %v3500_v55, 4  ;;  %v7408_v57 = vld [vmem:[#allocation8 + $0x138] sm:$0xff]  ;;  %s6058_s17 = sshll.u32 %s6055_s11, 4  ;;  %s6059_s17 = int_to_ptr.hbm [resolvable:$true] %s6058_s17 }
 0x427   : > { %v3841_v42 = vshll.u32 %v7373_v13, 16  ;;  %v7366_v25 = vld [vmem:[#allocation8 + $0x48] sm:$0xff]  ;;  %v3839_v49 = vshrl.u32 %v7373_v13, 16  ;;  %v3846_v58 = vshll.u32 %v7374_v35, 16  ;;  %v7365_v48 = vld [vmem:[#allocation8 + $0x40] sm:$0xff]  ;;  %v7400_v21 = vld [vmem:[#allocation8 + $0xf8] sm:$0xff] }
 0x428   : > { %3405 = vmatpush.bf16.msra.mxu1 %v7370_v61  ;;  %v3489_v56 = vshrl.u32 %v7785_v59, 16  ;;  %v3492_v60 = vshll.u32 %v7785_v59, 16  ;;  %v7358_v44 = vld [vmem:[#allocation8 + $0x8] sm:$0xff]  ;;  %v7357_v14 = vld [vmem:[#allocation8] sm:$0xff]  ;;  %v3503_v2 = vor.u32 %v3502_v18, %v3499_v37  ;;  %v7930_v46 = vld [vmem:[#allocation3 + $0x14] sm:$0xff]   ;;  %v3850_v45 = vshrl.u32 %v7374_v35, 16 }
 0x429   : > { %3666 = vmatpush.bf16.msra.mxu2 %v7362_v16  ;;  %v7386_v38 = vld [vmem:[#allocation8 + $0x88] sm:$0xff]  ;;  %v3843_v19 = vrot.slane %v3841_v42, 1  ;;  %v7385_v32 = vld [vmem:[#allocation8 + $0x80] sm:$0xff]  ;;  %v3848_v11 = vrot.slane %v3846_v58, 1  ;;  %v7407_v20 = vld [vmem:[#allocation8 + $0x130] sm:$0xff]  ;;  %v3506_v7 = vshrl.u32 %v7930_v46, 16 }
 0x42a   : > { %4000 = vmatpush.bf16.msrb.mxu3 %v7390_v36  ;;  %v3491_v4 = vrot.slane %v3489_v56, 3  ;;  %v3494_v47 = vrot.slane %v3492_v60, 4  ;;  %v7770_v24 = vld [vmem:[#allocation3 + $0x8] sm:$0xff]   ;;  %v7399_v1 = vld [vmem:[#allocation8 + $0xf0] sm:$0xff]  ;;  %v3509_v53 = vshll.u32 %v7930_v46, 16  ;;  %v7932_v33 = vld [vmem:[#allocation3 + $0x1c] sm:$0xff]  }
 0x42b   : > { %v3844_v43 = vor.u32 %v3843_v19, %v3839_v49  ;;  %v7375_v26 = vld [vmem:[#allocation3 + $0x18] sm:$0xff]  ;;  %v3508_v0 = vrot.slane %v3506_v7, 3  ;;  %v3852_v15 = vor.u32 %v3850_v45, %v3848_v11  ;;  %v7771_v29 = vld [vmem:[#allocation3 + $0x10] sm:$0xff]   ;;  %v3515_v39 = vshrl.u32 %v7932_v33, 16  ;;  %v7376_v36 = vld [vmem:[#allocation3 + $0x20] sm:$0xff]  ;;  %s8356_s10 = sshra.s32 %s6059_s17, 4  ;;  %s8357_s10 = int_to_ptr.hbm [resolvable:$true] %s8356_s10 }
 0x42c   : > { %3406 = vmatpush.bf16.msra.mxu1 %v7369_v8  ;;  %v3495_v31 = vor.u32 %v3494_v47, %v3491_v4  ;;  %v3511_v6 = vrot.slane %v3509_v53, 4  ;;  %v3854_v9 = vshll.u32 %v7375_v26, 16  ;;  %v3518_v52 = vshll.u32 %v7932_v33, 16  ;;  %v7406_v61 = vld [vmem:[#allocation8 + $0x128] sm:$0xff]  ;;  %v9428_v23 = vld [vmem:[#allocation3 + $0x18] sm:$0xff]   ;;  %v7405_v56 = vld [vmem:[#allocation8 + $0x120] sm:$0xff]  ;;  %p8363_p12 = scmp.lt.s32.totalorder %s8357_s10, %s9924_s5 }
 0x42d   : > { %3667 = vmatpush.bf16.msra.mxu2 %v7361_v51  ;;  %v3849_v5 = vsel %vm452_vm0, %v3844_v43, %v3848_v11  ;;  %v7398_v16 = vld [vmem:[#allocation8 + $0xe8] sm:$0xff]  ;;  %v3517_v8 = vrot.slane %v3515_v39, 3  ;;  %v3862_v3 = vshll.u32 %v7376_v36, 16  ;;  %v7397_v60 = vld [vmem:[#allocation8 + $0xe0] sm:$0xff]  ;;  %v3866_v35 = vshrl.u32 %v7376_v36, 16  ;;  %v7379_v7 = vld [vmem:[#allocation3 + $0x38] sm:$0xff] }
 0x42e   : > { %4001 = vmatpush.bf16.msrb.mxu3 %v7389_v28  ;;  %v3504_v22 = vsel %vm3487_vm8, %v3495_v31, %v3503_v2  ;;  %v3512_v40 = vor.u32 %v3511_v6, %v3508_v0  ;;  %v3856_v17 = vrot.slane %v3854_v9, 1  ;;  %v3520_v51 = vrot.slane %v3518_v52, 4  ;;  %v7377_v34 = vld [vmem:[#allocation3 + $0x28] sm:$0xff]  ;;  %v9433_v47 = vld [vmem:[#allocation3 + $0x20] sm:$0xff]   ;;  %v7378_v58 = vld [vmem:[#allocation3 + $0x30] sm:$0xff]  ;;  %s8358_s15 = scalar_lea.hbm %s8357_s10, 96 }
 0x42f   : > { %v3858_v28 = vshrl.u32 %v7375_v26, 16  ;;  %v3870_v42 = vshll.u32 %v7377_v34, 16  ;;  %v7936_v18 = vld [vmem:[#allocation3 + $0x2c] sm:$0xff]   ;;  %v3874_v31 = vshrl.u32 %v7377_v34, 16  ;;  %v3882_v0 = vshrl.u32 %v7378_v58, 16  ;;  %v7403_v39 = vld [vmem:[#allocation8 + $0x110] sm:$0xff]  ;;  %p8359_p1 = scmp.ne.s32.totalorder %s8357_s10, %s8358_s15  ;;  %p8364_p13 = scmp.lt.s32.totalorder %s8362_s16, %s8358_s15 }
 0x430   : > { %3407 = vmatpush.bf16.msra.mxu1 %v7368_v50  ;;  %v3513_v30 = vsel %vm3487_vm8, %v3503_v2, %v3512_v40  ;;  %v3857_v27 = vsel %vm452_vm0, %v3852_v15, %v3856_v17  ;;  %v3521_v12 = vor.u32 %v3520_v51, %v3517_v8  ;;  %v3533_v49 = vshrl.u32 %v7936_v18, 16  ;;  %v9443_v15 = vld [vmem:[#allocation3 + $0x30] sm:$0xff]  }
 0x431   : > { %3668 = vmatpush.bf16.msra.mxu2 %v7360_v10  ;;  %v3860_v50 = vor.u32 %v3858_v28, %v3856_v17  ;;  %v3864_v10 = vrot.slane %v3862_v3, 1  ;;  %v3872_v4 = vrot.slane %v3870_v42, 1  ;;  %v3536_v19 = vshll.u32 %v7936_v18, 16  ;;  %v7395_v52 = vld [vmem:[#allocation8 + $0xd0] sm:$0xff]  ;;  %p8360_p10 = pnand %p8359_p1, %p8545_p3  ;;  %p8365_p0 = por %p8364_p13, %p8363_p12 }
 0x432   : > { %4002 = vmatpush.bf16.msrb.mxu3 %v7388_v41  ;;  %v3522_v59 = vsel %vm3487_vm8, %v3512_v40, %v3521_v12  ;;  %v7934_v41 = vld [vmem:[#allocation3 + $0x24] sm:$0xff]   ;;  %v3878_v2 = vshll.u32 %v7378_v58, 16  ;;  %v3886_v6 = vshll.u32 %v7379_v7, 16  ;;  %v3890_v8 = vshrl.u32 %v7379_v7, 16 }
 0x433   : > { %v3865_v13 = vsel %vm452_vm0, %v3860_v50, %v3864_v10  ;;  %v3876_v43 = vor.u32 %v3874_v31, %v3872_v4  ;;  %v9448_v50 = vld [vmem:[#allocation3 + $0x38] sm:$0xff]   ;;  %p8361_p11 = pneg %p8360_p10 }
 0x434   : > { %3408 = vmatpush.bf16.msra.mxu1 %v7367_v62  ;;  %v3524_v62 = vshrl.u32 %v7934_v41, 16  ;;  %v3880_v11 = vrot.slane %v3878_v2, 1  ;;  %v3888_v40 = vrot.slane %v3886_v6, 1  ;;  %v7394_v2 = vld [vmem:[#allocation8 + $0xc8] sm:$0xff] }
 0x435   : > { %3669 = vmatpush.bf16.msra.mxu2 %v7359_v63  ;;  %v3527_v63 = vshll.u32 %v7934_v41, 16  ;;  %p8366_p2 = pnand %p8365_p0, %p8361_p11 }
 0x436   : > { %4003 = vmatpush.bf16.msrb.mxu3 %v7387_v54  ;;  %v3526_v55 = vrot.slane %v3524_v62, 3  ;;  %v3884_v9 = vor.u32 %v3882_v0, %v3880_v11  ;;  %v3892_v3 = vor.u32 %v3890_v8, %v3888_v40 }
 0x437   : > { %v3529_v54 = vrot.slane %v3527_v63, 4  ;;  %v7381_v63 = vld [vmem:[#allocation3 + $0x48] sm:$0xff] }
 0x438   : > { %3409 = vmatpush.bf16.msra.mxu1 %v7366_v25 }
 0x439   : > { %3670 = vmatpush.bf16.msra.mxu2 %v7358_v44  ;;  %v3530_v25 = vor.u32 %v3529_v54, %v3526_v55  ;;  %v3868_v44 = vor.u32 %v3866_v35, %v3864_v10  ;;  %v3902_v55 = vshll.u32 %v7381_v63, 16 }
 0x43a   : > { %4004 = vmatpush.bf16.msrb.mxu3 %v7386_v38 }
 0x43b   : > { %v3531_v37 = vsel %vm3487_vm8, %v3521_v12, %v3530_v25  ;;  %v3873_v38 = vsel %vm452_vm0, %v3868_v44, %v3872_v4  ;;  %v3904_v42 = vrot.slane %v3902_v55, 1  ;;  %v7944_v4 = vld [vmem:[#allocation3 + $0x4c] sm:$0xff]  }
 0x43c   : > { %3410 = vmatpush.bf16.msra.mxu1 %v7365_v48  ;;  %v3535_v48 = vrot.slane %v3533_v49, 3  ;;  %v3569_v18 = vshrl.u32 %v7944_v4, 16  ;;  %v7402_v49 = vld [vmem:[#allocation8 + $0x108] sm:$0xff] }
 0x43d   : > { %3671 = vmatpush.bf16.msra.mxu2 %v7357_v14  ;;  %v3538_v14 = vrot.slane %v3536_v19, 4  ;;  %v7382_v19 = vld [vmem:[#allocation3 + $0x50] sm:$0xff] }
 0x43e   : > { %4005 = vmatpush.bf16.msrb.mxu3 %v7385_v32  ;;  %v3571_v58 = vrot.slane %v3569_v18, 3  ;;  %v3910_v31 = vshll.u32 %v7382_v19, 16  ;;  %v7423_v18 = vld [vmem:[#allocation8 + $0x150] sm:$0xff] }
 0x43f   : > { %3411 = vmatmul.bf16.vlgmr.msra.gmra.mxu1 %v7770_v24  ;;  %v3539_v32 = vor.u32 %v3538_v14, %v3535_v48  ;;  %v7938_v24 = vld [vmem:[#allocation3 + $0x34] sm:$0xff]   ;;  %v3906_v14 = vshrl.u32 %v7381_v63, 16  ;;  %v7393_v63 = vld [vmem:[#allocation8 + $0xc0] sm:$0xff] }
 0x440   : > { %4372 = vmatpush.bf16.msrb.mxu1 %v7400_v21  ;;  %3672 = vmatmul.bf16.vlgmr.msra.gmra.mxu2 %v3504_v22  ;;  %v3881_v22 = vsel %vm452_vm0, %v3876_v43, %v3880_v11  ;;  %v3542_v46 = vshrl.u32 %v7938_v24, 16  ;;  %v3912_v11 = vrot.slane %v3910_v31, 1  ;;  %v9489_v31 = vld [vmem:[#allocation8 + $0x1a0] sm:$0xff] }
 0x441   : > { %4554 = vmatpush.bf16.msrb.mxu2 %v7408_v57  ;;  %4006 = vmatmul.bf16.vlgmr.msrb.gmra.mxu3 %v3849_v5  ;;  %v9438_v57 = vld [vmem:[#allocation3 + $0x28] sm:$0xff]   ;;  %v3540_v21 = vsel %vm3487_vm8, %v3530_v25, %v3539_v32  ;;  %v3545_v5 = vshll.u32 %v7938_v24, 16  ;;  %v9453_v25 = vld [vmem:[#allocation3 + $0x40] sm:$0xff]   ;;  %v3908_v43 = vor.u32 %v3906_v14, %v3904_v42 }
 0x442   : > { %v3544_v53 = vrot.slane %v3542_v46, 3  ;;  %v9458_v24 = vld [vmem:[#allocation3 + $0x48] sm:$0xff]   ;;  %v7946_v46 = vld [vmem:[#allocation3 + $0x54] sm:$0xff]  }
 0x443   : > { %v3547_v26 = vrot.slane %v3545_v5, 4  ;;  %v3913_v5 = vsel %vm452_vm0, %v3908_v43, %v3912_v11  ;;  %v3581_v7 = vshll.u32 %v7946_v46, 16 }
 0x444   : > { %4373 = vmatpush.bf16.msrb.mxu1 %v7399_v1  ;;  %v7396_v1 = vld [vmem:[#allocation8 + $0xd8] sm:$0xff] }
 0x445   : > { %4555 = vmatpush.bf16.msrb.mxu2 %v7407_v20  ;;  %v7404_v20 = vld [vmem:[#allocation8 + $0x118] sm:$0xff]  ;;  %v3548_v45 = vor.u32 %v3547_v26, %v3544_v53 }
 0x446   : > { %v9463_v53 = vld [vmem:[#allocation3 + $0x58] sm:$0xff] }
 0x447   : > { %v3549_v17 = vsel %vm3487_vm8, %v3539_v32, %v3548_v45 }
 0x448   : > { %4374 = vmatpush.bf16.msrb.mxu1 %v7398_v16 }
 0x449   : > { %4556 = vmatpush.bf16.msrb.mxu2 %v7406_v61  ;;  %v7380_v61 = vld [vmem:[#allocation3 + $0x40] sm:$0xff] }
 0x44a   : > { %v3894_v51 = vshll.u32 %v7380_v61, 16  ;;  %v3898_v34 = vshrl.u32 %v7380_v61, 16 }
 0x44c   : > { %4375 = vmatpush.bf16.msrb.mxu1 %v7397_v60  ;;  %v3896_v12 = vrot.slane %v3894_v51, 1 }
 0x44d   : > { %4557 = vmatpush.bf16.msrb.mxu2 %v7405_v56 }
 0x44e   : > { %v3897_v41 = vsel %vm452_vm0, %v3892_v3, %v3896_v12  ;;  %v3900_v35 = vor.u32 %v3898_v34, %v3896_v12  ;;  %v7425_v3 = vld [vmem:[#allocation8 + $0x160] sm:$0xff] }
 0x44f   : > { %3416 = vmatmul.bf16.gmra.mxu1 %v7771_v29  ;;  %v7940_v29 = vld [vmem:[#allocation3 + $0x3c] sm:$0xff]  }
 0x450   : > { %3677 = vmatmul.bf16.gmra.mxu2 %v3513_v30  ;;  %4376 = vmatpush.bf16.msrb.mxu1 %v7396_v1  ;;  %v3889_v30 = vsel %vm452_vm0, %v3884_v9, %v3888_v40  ;;  %v3551_v33 = vshrl.u32 %v7940_v29, 16  ;;  %v3578_v1 = vshrl.u32 %v7946_v46, 16  ;;  %v9497_v46 = vld [vmem:[#allocation8 + $0x198] sm:$0xff] }
 0x451   : > { %4011 = vmatmul.bf16.gmra.mxu3 %v3857_v27  ;;  %4558 = vmatpush.bf16.msrb.mxu2 %v7404_v20  ;;  %v3554_v27 = vshll.u32 %v7940_v29, 16  ;;  %v7428_v20 = vld [vmem:[#allocation8 + $0x178] sm:$0xff] }
 0x452   : > { %v3553_v16 = vrot.slane %v3551_v33, 3  ;;  %4912 = vmatpush.bf16.msra.mxu3 %v7428_v20  ;;  %v3580_v40 = vrot.slane %v3578_v1, 3  ;;  %v3918_v33 = vshll.u32 %v9463_v53, 16 }
 0x453   : > { %v3556_v36 = vrot.slane %v3554_v27, 4  ;;  %v7401_v27 = vld [vmem:[#allocation8 + $0x100] sm:$0xff] }
 0x454   : > { %4377 = vmatpush.bf16.msrb.mxu1 %v7395_v52 }
 0x455   : > { %4559 = vmatpush.bf16.msrb.mxu2 %v7403_v39  ;;  %v3557_v28 = vor.u32 %v3556_v36, %v3553_v16  ;;  %v7426_v39 = vld [vmem:[#allocation8 + $0x168] sm:$0xff]  ;;  %v3920_v16 = vrot.slane %v3918_v33, 1  ;;  %v9468_v36 = vld [vmem:[#allocation8 + $0x1b8] sm:$0xff] }
 0x456   : > { %5286 = vmatpush.bf16.msra.mxu0 %v9468_v36 }
 0x457   : > { %v3558_v10 = vsel %vm3487_vm8, %v3548_v45, %v3557_v28  ;;  %v7427_v45 = vld [vmem:[#allocation8 + $0x170] sm:$0xff] }
 0x458   : > { %4378 = vmatpush.bf16.msrb.mxu1 %v7394_v2  ;;  %4913 = vmatpush.bf16.msra.mxu3 %v7427_v45  ;;  %v7422_v2 = vld [vmem:[#allocation8 + $0x148] sm:$0xff] }
 0x459   : > { %4560 = vmatpush.bf16.msrb.mxu2 %v7402_v49 }
 0x45c   : > { %4914 = vmatpush.bf16.msra.mxu3 %v7426_v39  ;;  %4379 = vmatpush.bf16.msrb.mxu1 %v7393_v63  ;;  %v7464_v39 = vld [vmem:[#allocation8 + $0x238] sm:$0xff] }
 0x45d   : > { %4561 = vmatpush.bf16.msrb.mxu2 %v7401_v27 }
 0x45f   : > { %3421 = vmatmul.bf16.gmra.mxu1 %v9428_v23 }
 0x460   : > { %3682 = vmatmul.bf16.gmra.mxu2 %v3522_v59  ;;  %v7942_v59 = vld [vmem:[#allocation3 + $0x44] sm:$0xff]   ;;  %4915 = vmatpush.bf16.msra.mxu3 %v7425_v3 }
 0x461   : > { %4016 = vmatmul.bf16.gmra.mxu3 %v3865_v13  ;;  %v3560_v13 = vshrl.u32 %v7942_v59, 16  ;;  %v3563_v62 = vshll.u32 %v7942_v59, 16  ;;  %5826 = vmatpush.bf16.msra.mxu2 %v7464_v39  ;;  %v8056_v39 = vld [vmem:[#allocation3 + $0x2c] sm:$0xff]  }
 0x463   : > { %v3562_v56 = vrot.slane %v3560_v13, 3  ;;  %v3565_v60 = vrot.slane %v3563_v62, 4 }
 0x465   : > { %v3566_v54 = vor.u32 %v3565_v60, %v3562_v56  ;;  %v9475_v56 = vld [vmem:[#allocation8 + $0x1b0] sm:$0xff]  ;;  %v7424_v60 = vld [vmem:[#allocation8 + $0x158] sm:$0xff] }
 0x466   : > { %5287 = vmatpush.bf16.msra.mxu0 %v9475_v56  ;;  %4916 = vmatpush.bf16.msra.mxu3 %v7424_v60 }
 0x467   : > { %v3567_v44 = vsel %vm3487_vm8, %v3557_v28, %v3566_v54 }
 0x46a   : > { %4917 = vmatpush.bf16.msra.mxu3 %v7423_v18  ;;  %v7444_v18 = vld [vmem:[#allocation8 + $0x1f8] sm:$0xff] }
 0x46b   : > { %5468 = vmatpush.bf16.msra.mxu1 %v7444_v18 }
 0x46e   : > { %4918 = vmatpush.bf16.msra.mxu3 %v7422_v2 }
 0x46f   : > { %3426 = vmatmul.bf16.gmra.mxu1 %v9433_v47 }
 0x470   : > { %3687 = vmatmul.bf16.gmra.mxu2 %v3531_v37  ;;  %v3905_v37 = vsel %vm452_vm0, %v3900_v35, %v3904_v42  ;;  %v9480_v35 = vld [vmem:[#allocation8 + $0x1a8] sm:$0xff] }
 0x471   : > { %4021 = vmatmul.bf16.gmra.mxu3 %v3873_v38  ;;  %v3572_v38 = vshll.u32 %v7944_v4, 16  ;;  %5288 = vmatpush.bf16.msra.mxu0 %v9480_v35 }
 0x473   : > { %v3574_v48 = vrot.slane %v3572_v38, 4 }
 0x475   : > { %v3575_v32 = vor.u32 %v3574_v48, %v3571_v58  ;;  %v3922_v48 = vshrl.u32 %v9463_v53, 16  ;;  %5289 = vmatpush.bf16.msra.mxu0 %v9489_v31  ;;  %v7421_v53 = vld [vmem:[#allocation8 + $0x140] sm:$0xff] }
 0x476   : > { %4919 = vmatpush.bf16.msra.mxu3 %v7421_v53 }
 0x479   : > { %5290 = vmatpush.bf16.msra.mxu0 %v9497_v46 }
 0x47a   : > { %8043 = vmatpush.bf16.msrb.mxu3 %v9468_v36 }
 0x47e   : > { %8044 = vmatpush.bf16.msrb.mxu3 %v9475_v56 }
 0x47f   : > { %3431 = vmatmul.bf16.gmra.mxu1 %v9438_v57 }
 0x480   : > { %3692 = vmatmul.bf16.gmra.mxu2 %v3540_v21 }
 0x481   : > { %4026 = vmatmul.bf16.gmra.mxu3 %v3881_v22  ;;  %v3576_v22 = vsel %vm3487_vm8, %v3566_v54, %v3575_v32  ;;  %v9477_v54 = vld [vmem:[#allocation3 + $0x60] sm:$0xff] }
 0x482   : > { %v3926_v14 = vshll.u32 %v9477_v54, 16  ;;  %8045 = vmatpush.bf16.msrb.mxu3 %v9480_v35 }
 0x486   : > { %8046 = vmatpush.bf16.msrb.mxu3 %v9489_v31  ;;  %v4205_v31 = vshrl.u32 %v9428_v23, 16 }
 0x48a   : > { %8047 = vmatpush.bf16.msrb.mxu3 %v9497_v46 }
 0x48f   : > { %3436 = vmatmul.bf16.gmra.mxu1 %v9443_v15 }
 0x490   : > { %3697 = vmatmul.bf16.gmra.mxu2 %v3549_v17  ;;  %v3583_v17 = vrot.slane %v3581_v7, 4 }
 0x491   : > { %4031 = vmatmul.bf16.gmra.mxu3 %v3889_v30  ;;  %v3914_v30 = vshrl.u32 %v7382_v19, 16 }
 0x492   : > { %v3584_v52 = vor.u32 %v3583_v17, %v3580_v40  ;;  %v9506_v17 = vld [vmem:[#allocation8 + $0x190] sm:$0xff] }
 0x493   : > { %v3916_v61 = vor.u32 %v3914_v30, %v3912_v11  ;;  %v3924_v11 = vor.u32 %v3922_v48, %v3920_v16  ;;  %5291 = vmatpush.bf16.msra.mxu0 %v9506_v17  ;;  %8048 = vmatpush.bf16.msrb.mxu3 %v9506_v17  ;;  %v7598_v17 = vunpack.c.l.b16 %v9428_v23 }
 0x494   : > { %v3585_v59 = vsel %vm3487_vm8, %v3575_v32, %v3584_v52 }
 0x495   : > { %v3921_v62 = vsel %vm452_vm0, %v3916_v61, %v3920_v16  ;;  %v8052_v61 = vld [vmem:[#allocation3 + $0x1c] sm:$0xf0]   ;;  %v9510_v16 = vld [vmem:[#allocation8 + $0x188] sm:$0xff] }
 0x497   : > { %5292 = vmatpush.bf16.msra.mxu0 %v9510_v16  ;;  %8049 = vmatpush.bf16.msrb.mxu3 %v9510_v16 }
 0x49f   : > { %3441 = vmatmul.bf16.gmra.mxu1 %v9448_v50 }
 0x4a0   : > { %3702 = vmatmul.bf16.gmra.mxu2 %v3558_v10  ;;  %v7779_v10 = vld [vmem:[#allocation3 + $0x50] sm:$0xff]  }
 0x4a1   : > { %4036 = vmatmul.bf16.gmra.mxu3 %v3897_v41  ;;  %v7947_v41 = vld [vmem:[#allocation3 + $0x5c] sm:$0xff]  }
 0x4a2   : > { %v3587_v34 = vshrl.u32 %v7947_v41, 16  ;;  %v3590_v55 = vshll.u32 %v7947_v41, 16 }
 0x4a4   : > { %v3589_v49 = vrot.slane %v3587_v34, 3  ;;  %v3592_v19 = vrot.slane %v3590_v55, 4  ;;  %v3930_v55 = vshrl.u32 %v9477_v54, 16 }
 0x4a6   : > { %v9492_v43 = vor.u32 %v3592_v19, %v3589_v49 }
 0x4af   : > { %3446 = vmatmul.bf16.gmra.mxu1 %v9453_v25 }
 0x4b0   : > { %3707 = vmatmul.bf16.gmra.mxu2 %v3567_v44 }
 0x4b1   : > { %4041 = vmatmul.bf16.gmra.mxu3 %v3905_v37  ;;  %v9482_v37 = vld [vmem:[#allocation3 + $0x60] sm:$0xff]  }
 0x4b2   : > { %v7595_v32 = vunpack.c.h.b16 %v9482_v37 }
 0x4b4   : > { %v3486_v20 = vpack.c.b16 %v7595_v32, %v7595_v32 }
 0x4b6   : > { %v3596_v30 = vshrl.u32 %v3486_v20, 16  ;;  %v3599_v33 = vshll.u32 %v3486_v20, 16 }
 0x4b8   : > { %v3598_v3 = vrot.slane %v3596_v30, 3  ;;  %v3601_v34 = vrot.slane %v3599_v33, 4  ;;  %v4208_v33 = vshll.u32 %v9428_v23, 16 }
 0x4ba   : > { %v3602_v32 = vor.u32 %v3601_v34, %v3598_v3 }
 0x4bc   : > { %v3412_v21 = vpop.f32.mrf.mxu1 }
 0x4bf   : > { %3451 = vmatmul.bf16.gmra.mxu1 %v9458_v24 }
 0x4c0   : > { %3712 = vmatmul.bf16.gmra.mxu2 %v3576_v22  ;;  %v3757_v22 = vld [vmem:[#allocation3 + $0x68] sm:$0x1] }
 0x4c1   : > { %4046 = vmatmul.bf16.gmra.mxu3 %v3913_v5  ;;  %v3824_v45 = vunpack.c.l.b16 %v3757_v22 }
 0x4c3   : > { %v3673_v26 = vpop.f32.mrf.mxu2  ;;  %v3837_v27 = vpack.c.b16 %v3824_v45, %v3824_v45 }
 0x4c4   : > { %v3674_v0 = vadd.f32 %v3673_v26, %v3412_v21  ;;  %v4007_v6 = vpop.f32.mrf.mxu3  ;;  %v3414_v9 = vpop.f32.mrf.mxu1  ;;  %v9494_v21 = vrot.slane %v3926_v14, 1 }
 0x4c6   : > { %v9465_v29 = vadd.f32 %v4007_v6, %v3674_v0  ;;  %v7780_v0 = vld [vmem:[#allocation3 + $0x58] sm:$0xff]   ;;  %v3594_v6 = vsel %vm3487_vm8, %v3584_v52, %v9492_v43  ;;  %v3929_v40 = vsel %vm452_vm0, %v3924_v11, %v9494_v21  ;;  %v3932_v22 = vor.u32 %v3930_v55, %v9494_v21 }
 0x4c7   : > { %v7970_v52 = vld [vmem:[#allocation3 + $0x1c] sm:$0x8] }
 0x4cb   : > { %v3675_v8 = vpop.f32.mrf.mxu2 }
 0x4cc   : > { %v3676_v51 = vadd.f32 %v3675_v8, %v3414_v9  ;;  %v4009_v28 = vpop.f32.mrf.mxu3  ;;  %v3417_v12 = vpop.f32.mrf.mxu1  ;;  %v8054_v8 = vld [vmem:[#allocation3 + $0x24] sm:$0xff]  }
 0x4cd   : > { %v5119_v63 = vshrl.u32 %v8054_v8, 16 }
 0x4ce   : > { %v9472_v13 = vadd.f32 %v4009_v28, %v3676_v51  ;;  %v7971_v51 = vor.u32 %v8052_v61, %v7970_v52 }
 0x4cf   : > { %3456 = vmatmul.bf16.gmra.mxu1 %v7779_v10  ;;  %v5121_v19 = vrot.slane %v5119_v63, 3 }
 0x4d0   : > { %3717 = vmatmul.bf16.gmra.mxu2 %v3585_v59  ;;  %v9513_v59 = vld [vmem:[#allocation3 + $0x14] sm:$0xf]  ;;  %v5111_v41 = vshrl.u32 %v7971_v51, 16 }
 0x4d1   : > { %4051 = vmatmul.bf16.gmra.mxu3 %v3921_v62  ;;  %v5114_v62 = vshll.u32 %v7971_v51, 16  ;;  %v4159_v14 = vunpack.c.l.b16 %v9513_v59  ;;  %v8058_v59 = vld [vmem:[#allocation3 + $0x34] sm:$0xff]  }
 0x4d2   : > { %v5113_v56 = vrot.slane %v5111_v41, 3 }
 0x4d3   : > { %v3678_v42 = vpop.f32.mrf.mxu2  ;;  %v5116_v49 = vrot.slane %v5114_v62, 4 }
 0x4d4   : > { %v3679_v44 = vadd.f32 %v3678_v42, %v3417_v12  ;;  %v4012_v4 = vpop.f32.mrf.mxu3  ;;  %v3419_v38 = vpop.f32.mrf.mxu1  ;;  %v4091_v12 = vld [vmem:[#allocation3 + $0x10] sm:$0x8]  ;;  %v3934_v42 = vshll.u32 %v3837_v27, 16 }
 0x4d5   : > { %v4158_v48 = vunpack.c.l.b16 %v4091_v12  ;;  %v5117_v54 = vor.u32 %v5116_v49, %v5113_v56  ;;  %v4207_v12 = vrot.slane %v4205_v31, 3 }
 0x4d6   : > { %v9484_v58 = vadd.f32 %v4012_v4, %v3679_v44  ;;  %v5122_v44 = vshll.u32 %v8054_v8, 16 }
 0x4d8   : > { %v5124_v2 = vrot.slane %v5122_v44, 4 }
 0x4da   : > { %v5125_v11 = vor.u32 %v5124_v2, %v5121_v19 }
 0x4db   : > { %v3680_v5 = vpop.f32.mrf.mxu2 }
 0x4dc   : > { %v3681_v1 = vadd.f32 %v3680_v5, %v3419_v38  ;;  %v4014_v7 = vpop.f32.mrf.mxu3  ;;  %v3422_v26 = vpop.f32.mrf.mxu1  ;;  %v9519_v38 = vld [vmem:[#allocation8 + $0x180] sm:$0xff]  ;;  %v3936_v5 = vrot.slane %v3934_v42, 1 }
 0x4dd   : > { %5293 = vmatpush.bf16.msra.mxu0 %v9519_v38  ;;  %8050 = vmatpush.bf16.msrb.mxu3 %v9519_v38  ;;  %v4217_v38 = vshll.u32 %v9433_v47, 16 }
 0x4de   : > { %v9501_v9 = vadd.f32 %v4014_v7, %v3681_v1  ;;  %v4183_v1 = vpack.c.b16 %v4159_v14, %v4158_v48  ;;  %v5126_v7 = vsel %vm3487_vm8, %v5117_v54, %v5125_v11  ;;  %v3937_v45 = vsel %vm452_vm0, %v3932_v22, %v3936_v5 }
 0x4df   : > { %3461 = vmatmul.bf16.gmra.mxu1 %v7780_v0  ;;  %v3603_v0 = vsel %vm3487_vm8, %v9492_v43, %v3602_v32  ;;  %v9538_v43 = vld [vmem:[#allocation3 + $0x1c] sm:$0xff]  ;;  %v4482_v32 = vpack.c.b16 %v7598_v17, %v4159_v14 }
 0x4e0   : > { %3722 = vmatmul.bf16.gmra.mxu2 %v3594_v6  ;;  %v7409_v6 = vld [vmem:[#allocation3 + $0x14] sm:$0xff]  ;;  %5294 = vmatmul.bf16.vlgmr.msra.gmra.mxu0 %v5126_v7  ;;  %v4200_v30 = vshll.u32 %v4183_v1, 16  ;;  %v4760_v63 = vshll.u32 %v9538_v43, 16 }
 0x4e1   : > { %4056 = vmatmul.bf16.gmra.mxu3 %v3929_v40  ;;  %v4197_v40 = vshrl.u32 %v4183_v1, 16  ;;  %v4755_v27 = vshll.u32 %v7409_v6, 16  ;;  %v7411_v1 = vld [vmem:[#allocation3 + $0x24] sm:$0xff] }
 0x4e2   : > { %v4202_v46 = vrot.slane %v4200_v30, 4  ;;  %v4762_v49 = vrot.slane %v4760_v63, 1  ;;  %v4768_v31 = vshll.u32 %v7411_v1, 16  ;;  %v7462_v63 = vld [vmem:[#allocation8 + $0x228] sm:$0xff] }
 0x4e3   : > { %v3683_v28 = vpop.f32.mrf.mxu2  ;;  %v4199_v61 = vrot.slane %v4197_v40, 3  ;;  %v4757_v41 = vrot.slane %v4755_v27, 1  ;;  %v4764_v40 = vshrl.u32 %v9538_v43, 16 }
 0x4e4   : > { %v3684_v36 = vadd.f32 %v3683_v28, %v3422_v26  ;;  %v4017_v10 = vpop.f32.mrf.mxu3  ;;  %v3424_v60 = vpop.f32.mrf.mxu1  ;;  %v5128_v28 = vshrl.u32 %v8056_v39, 16 }
 0x4e5   : > { %v4203_v44 = vor.u32 %v4202_v46, %v4199_v61  ;;  %v4770_v61 = vrot.slane %v4768_v31, 1  ;;  %v8062_v31 = vld [vmem:[#allocation3 + $0x44] sm:$0xff]  }
 0x4e6   : > { %v9516_v4 = vadd.f32 %v4017_v10, %v3684_v36  ;;  %v4210_v36 = vrot.slane %v4208_v33, 4  ;;  %v4753_v10 = vshrl.u32 %v7409_v6, 16  ;;  %v5130_v34 = vrot.slane %v5128_v28, 3 }
 0x4e8   : > { %v4211_v18 = vor.u32 %v4210_v36, %v4207_v12  ;;  %v4758_v56 = vor.u32 %v4757_v41, %v4753_v10  ;;  %v4223_v10 = vshrl.u32 %v9438_v57, 16  ;;  %v4226_v41 = vshll.u32 %v9438_v57, 16 }
 0x4ea   : > { %v4212_v16 = vsel %vm3487_vm8, %v4203_v44, %v4211_v18  ;;  %v4763_v5 = vsel %vm452_vm0, %v4758_v56, %v4762_v49 }
 0x4eb   : > { %v3685_v20 = vpop.f32.mrf.mxu2 }
 0x4ec   : > { %v3686_v53 = vadd.f32 %v3685_v20, %v3424_v60  ;;  %v4019_v26 = vpop.f32.mrf.mxu3  ;;  %v3427_v35 = vpop.f32.mrf.mxu1  ;;  %v7463_v60 = vld [vmem:[#allocation8 + $0x230] sm:$0xff] }
 0x4ed   : > { %5827 = vmatpush.bf16.msra.mxu2 %v7463_v60  ;;  %v7443_v20 = vld [vmem:[#allocation8 + $0x1f0] sm:$0xff]  ;;  %v7412_v60 = vld [vmem:[#allocation3 + $0x2c] sm:$0xff] }
 0x4ee   : > { %v9531_v21 = vadd.f32 %v4019_v26, %v3686_v53  ;;  %5469 = vmatpush.bf16.msra.mxu1 %v7443_v20  ;;  %v5137_v26 = vshrl.u32 %v8058_v59, 16 }
 0x4ef   : > { %3466 = vmatmul.bf16.gmra.mxu1 %v9482_v37  ;;  %v5131_v37 = vshll.u32 %v8056_v39, 16 }
 0x4f0   : > { %3727 = vmatmul.bf16.gmra.mxu2 %v3603_v0  ;;  %v5139_v33 = vrot.slane %v5137_v26, 3 }
 0x4f1   : > { %4061 = vmatmul.bf16.gmra.mxu3 %v3937_v45  ;;  %v5133_v55 = vrot.slane %v5131_v37, 4  ;;  %v4219_v45 = vrot.slane %v4217_v38, 4  ;;  %v7950_v37 = vld [vmem:[#allocation3 + $0x1c] sm:$0xff]   ;;  %5828 = vmatpush.bf16.msra.mxu2 %v7462_v63 }
 0x4f3   : > { %v3688_v52 = vpop.f32.mrf.mxu2  ;;  %v5134_v42 = vor.u32 %v5133_v55, %v5130_v34  ;;  %v8060_v34 = vld [vmem:[#allocation3 + $0x3c] sm:$0xff]  }
 0x4f4   : > { %v3689_v8 = vadd.f32 %v3688_v52, %v3427_v35  ;;  %v4022_v51 = vpop.f32.mrf.mxu3  ;;  %v3429_v3 = vpop.f32.mrf.mxu1  ;;  %v5140_v35 = vshll.u32 %v8058_v59, 16  ;;  %v4766_v52 = vor.u32 %v4764_v40, %v4762_v49  ;;  %v5146_v44 = vshrl.u32 %v8060_v34, 16  ;;  %v7413_v40 = vld [vmem:[#allocation3 + $0x34] sm:$0xff] }
 0x4f5   : > { %v5135_v19 = vsel %vm3487_vm8, %v5125_v11, %v5134_v42  ;;  %v4214_v11 = vshrl.u32 %v9433_v47, 16  ;;  %v4225_v49 = vrot.slane %v4223_v10, 3 }
 0x4f6   : > { %v9541_v62 = vadd.f32 %v4022_v51, %v3689_v8  ;;  %5299 = vmatmul.bf16.gmra.mxu0 %v5135_v19  ;;  %v5142_v27 = vrot.slane %v5140_v35, 4  ;;  %v4771_v36 = vsel %vm452_vm0, %v4766_v52, %v4770_v61  ;;  %v4228_v19 = vrot.slane %v4226_v41, 4 }
 0x4f7   : > { %v4216_v6 = vrot.slane %v4214_v11, 3  ;;  %v5155_v52 = vshrl.u32 %v8062_v31, 16 }
 0x4f8   : > { %v5143_v39 = vor.u32 %v5142_v27, %v5139_v33 }
 0x4f9   : > { %v4220_v47 = vor.u32 %v4219_v45, %v4216_v6  ;;  %v4232_v6 = vshrl.u32 %v9443_v15, 16  ;;  %v4235_v45 = vshll.u32 %v9443_v15, 16 }
 0x4fa   : > { %v5144_v8 = vsel %vm3487_vm8, %v5134_v42, %v5143_v39 }
 0x4fb   : > { %v3690_v48 = vpop.f32.mrf.mxu2  ;;  %v4221_v12 = vsel %vm3487_vm8, %v4211_v18, %v4220_v47  ;;  %v5149_v18 = vshll.u32 %v8060_v34, 16 }
 0x4fc   : > { %v3691_v2 = vadd.f32 %v3690_v48, %v3429_v3  ;;  %v4024_v54 = vpop.f32.mrf.mxu3  ;;  %v3432_v22 = vpop.f32.mrf.mxu1  ;;  %v4772_v48 = vshrl.u32 %v7411_v1, 16 }
 0x4fe   : > { %v9551_v23 = vadd.f32 %v4024_v54, %v3691_v2  ;;  %v4776_v54 = vshll.u32 %v7412_v60, 16  ;;  %v4774_v20 = vor.u32 %v4772_v48, %v4770_v61  ;;  %v5158_v61 = vshll.u32 %v8062_v31, 16 }
 0x4ff   : > { %4380 = vmatmul.bf16.vlgmr.msrb.gmra.mxu1 %v4212_v16  ;;  %v5151_v16 = vrot.slane %v5149_v18, 4  ;;  %v4241_v48 = vshrl.u32 %v9448_v50, 16 }
 0x500   : > { %4562 = vmatmul.bf16.vlgmr.msrb.gmra.mxu2 %v4482_v32  ;;  %v7442_v32 = vld [vmem:[#allocation8 + $0x1e8] sm:$0xff]  ;;  %v4778_v11 = vrot.slane %v4776_v54, 1  ;;  %v4244_v54 = vshll.u32 %v9448_v50, 16 }
 0x501   : > { %4920 = vmatmul.bf16.vlgmr.msra.gmra.mxu3 %v4763_v5  ;;  %5470 = vmatpush.bf16.msra.mxu1 %v7442_v32  ;;  %v4229_v5 = vor.u32 %v4228_v19, %v4225_v49  ;;  %v7441_v19 = vld [vmem:[#allocation8 + $0x1e0] sm:$0xff]  ;;  %v7414_v32 = vld [vmem:[#allocation3 + $0x3c] sm:$0xff] }
 0x503   : > { %v3693_v14 = vpop.f32.mrf.mxu2  ;;  %v4230_v1 = vsel %vm3487_vm8, %v4220_v47, %v4229_v5 }
 0x504   : > { %v3694_v7 = vadd.f32 %v3693_v14, %v3432_v22  ;;  %v4027_v53 = vpop.f32.mrf.mxu3  ;;  %v3434_v0 = vpop.f32.mrf.mxu1  ;;  %v5148_v22 = vrot.slane %v5146_v44, 3  ;;  %v7954_v44 = vld [vmem:[#allocation3 + $0x2c] sm:$0xff]  }
 0x505   : > { %5471 = vmatpush.bf16.msra.mxu1 %v7441_v19 }
 0x506   : > { %v9557_v30 = vadd.f32 %v4027_v53, %v3694_v7  ;;  %5304 = vmatmul.bf16.gmra.mxu0 %v5144_v8  ;;  %v5152_v57 = vor.u32 %v5151_v16, %v5148_v22  ;;  %v7952_v53 = vld [vmem:[#allocation3 + $0x24] sm:$0xff]   ;;  %v4234_v8 = vrot.slane %v4232_v6, 3  ;;  %v8064_v22 = vld [vmem:[#allocation3 + $0x4c] sm:$0xff]  }
 0x508   : > { %v5153_v38 = vsel %vm3487_vm8, %v5143_v39, %v5152_v57 }
 0x50b   : > { %v3695_v51 = vpop.f32.mrf.mxu2 }
 0x50c   : > { %v3696_v46 = vadd.f32 %v3695_v51, %v3434_v0  ;;  %v4029_v28 = vpop.f32.mrf.mxu3  ;;  %v3437_v3 = vpop.f32.mrf.mxu1  ;;  %v4779_v0 = vsel %vm452_vm0, %v4774_v20, %v4778_v11  ;;  %v4237_v51 = vrot.slane %v4235_v45, 4 }
 0x50e   : > { %v9561_v43 = vadd.f32 %v4029_v28, %v3696_v46  ;;  %v4780_v46 = vshrl.u32 %v7412_v60, 16  ;;  %v4238_v15 = vor.u32 %v4237_v51, %v4234_v8 }
 0x50f   : > { %4385 = vmatmul.bf16.gmra.mxu1 %v4221_v12  ;;  %v5157_v12 = vrot.slane %v5155_v52, 3 }
 0x510   : > { %4567 = vmatmul.bf16.gmra.mxu2 %v7950_v37  ;;  %v4784_v37 = vshll.u32 %v7413_v40, 16  ;;  %v4782_v41 = vor.u32 %v4780_v46, %v4778_v11  ;;  %v4239_v60 = vsel %vm3487_vm8, %v4229_v5, %v4238_v15  ;;  %v5164_v5 = vshrl.u32 %v8064_v22, 16 }
 0x511   : > { %4925 = vmatmul.bf16.gmra.mxu3 %v4771_v36  ;;  %v5160_v36 = vrot.slane %v5158_v61, 4  ;;  %v5167_v11 = vshll.u32 %v8064_v22, 16  ;;  %v7956_v61 = vld [vmem:[#allocation3 + $0x34] sm:$0xff]   ;;  %v4250_v46 = vshrl.u32 %v9453_v25, 16 }
 0x512   : > { %v4786_v63 = vrot.slane %v4784_v37, 1  ;;  %v4253_v37 = vshll.u32 %v9453_v25, 16 }
 0x513   : > { %v3698_v55 = vpop.f32.mrf.mxu2  ;;  %v5161_v10 = vor.u32 %v5160_v36, %v5157_v12  ;;  %v7415_v12 = vld [vmem:[#allocation3 + $0x44] sm:$0xff]  ;;  %v8066_v36 = vld [vmem:[#allocation3 + $0x54] sm:$0xff]  }
 0x514   : > { %v3699_v17 = vadd.f32 %v3698_v55, %v3437_v3  ;;  %v4032_v42 = vpop.f32.mrf.mxu3  ;;  %v3439_v56 = vpop.f32.mrf.mxu1  ;;  %v7461_v3 = vld [vmem:[#allocation8 + $0x220] sm:$0xff]  ;;  %v4787_v49 = vsel %vm452_vm0, %v4782_v41, %v4786_v63 }
 0x515   : > { %5829 = vmatpush.bf16.msra.mxu2 %v7461_v3  ;;  %v5162_v34 = vsel %vm3487_vm8, %v5152_v57, %v5161_v10  ;;  %v7460_v3 = vld [vmem:[#allocation8 + $0x218] sm:$0xff] }
 0x516   : > { %v9566_v2 = vadd.f32 %v4032_v42, %v3699_v17  ;;  %5309 = vmatmul.bf16.gmra.mxu0 %v5153_v38 }
 0x519   : > { %5830 = vmatpush.bf16.msra.mxu2 %v7460_v3 }
 0x51b   : > { %v3700_v59 = vpop.f32.mrf.mxu2 }
 0x51c   : > { %v3701_v14 = vadd.f32 %v3700_v59, %v3439_v56  ;;  %v4034_v7 = vpop.f32.mrf.mxu3  ;;  %v3442_v26 = vpop.f32.mrf.mxu1  ;;  %v4243_v59 = vrot.slane %v4241_v48, 3 }
 0x51e   : > { %v9570_v35 = vadd.f32 %v4034_v7, %v3701_v14  ;;  %v4246_v14 = vrot.slane %v4244_v54, 4  ;;  %v4788_v7 = vshrl.u32 %v7413_v40, 16 }
 0x51f   : > { %4390 = vmatmul.bf16.gmra.mxu1 %v4230_v1  ;;  %v5166_v1 = vrot.slane %v5164_v5, 3 }
 0x520   : > { %4572 = vmatmul.bf16.gmra.mxu2 %v7952_v53  ;;  %v4247_v45 = vor.u32 %v4246_v14, %v4243_v59  ;;  %v4790_v50 = vor.u32 %v4788_v7, %v4786_v63 }
 0x521   : > { %4930 = vmatmul.bf16.gmra.mxu3 %v4779_v0  ;;  %v5169_v0 = vrot.slane %v5167_v11, 4 }
 0x522   : > { %v4248_v8 = vsel %vm3487_vm8, %v4238_v15, %v4247_v45  ;;  %v5173_v15 = vshrl.u32 %v8066_v36, 16 }
 0x523   : > { %v3703_v33 = vpop.f32.mrf.mxu2  ;;  %v5170_v6 = vor.u32 %v5169_v0, %v5166_v1  ;;  %v4262_v1 = vshll.u32 %v9458_v24, 16  ;;  %v7416_v0 = vld [vmem:[#allocation3 + $0x4c] sm:$0xff] }
 0x524   : > { %v3704_v27 = vadd.f32 %v3703_v33, %v3442_v26  ;;  %v4037_v39 = vpop.f32.mrf.mxu3  ;;  %v3444_v47 = vpop.f32.mrf.mxu1  ;;  %v4792_v26 = vshll.u32 %v7414_v32, 16  ;;  %v5175_v19 = vrot.slane %v5173_v15, 3 }
 0x525   : > { %v5171_v33 = vsel %vm3487_vm8, %v5161_v10, %v5170_v6 }
 0x526   : > { %v9575_v28 = vadd.f32 %v4037_v39, %v3704_v27  ;;  %5314 = vmatmul.bf16.gmra.mxu0 %v5162_v34  ;;  %v4794_v31 = vrot.slane %v4792_v26, 1  ;;  %v5176_v34 = vshll.u32 %v8066_v36, 16  ;;  %v4259_v26 = vshrl.u32 %v9458_v24, 16 }
 0x528   : > { %v4795_v51 = vsel %vm452_vm0, %v4790_v50, %v4794_v31  ;;  %v5178_v48 = vrot.slane %v5176_v34, 4 }
 0x52a   : > { %v5179_v25 = vor.u32 %v5178_v48, %v5175_v19  ;;  %v7439_v19 = vld [vmem:[#allocation8 + $0x1d0] sm:$0xff] }
 0x52b   : > { %v3705_v55 = vpop.f32.mrf.mxu2 }
 0x52c   : > { %v3706_v17 = vadd.f32 %v3705_v55, %v3444_v47  ;;  %v4039_v42 = vpop.f32.mrf.mxu3  ;;  %v3447_v18 = vpop.f32.mrf.mxu1 }
 0x52e   : > { %v9579_v56 = vadd.f32 %v4039_v42, %v3706_v17  ;;  %v4252_v17 = vrot.slane %v4250_v46, 3  ;;  %v4255_v42 = vrot.slane %v4253_v37, 4  ;;  %v7459_v46 = vld [vmem:[#allocation8 + $0x210] sm:$0xff] }
 0x52f   : > { %4395 = vmatmul.bf16.gmra.mxu1 %v4239_v60  ;;  %v4800_v60 = vshll.u32 %v7415_v12, 16  ;;  %5831 = vmatpush.bf16.msra.mxu2 %v7459_v46 }
 0x530   : > { %4577 = vmatmul.bf16.gmra.mxu2 %v7954_v44  ;;  %v4796_v44 = vshrl.u32 %v7414_v32, 16  ;;  %v4256_v54 = vor.u32 %v4255_v42, %v4252_v17  ;;  %v7960_v17 = vld [vmem:[#allocation3 + $0x44] sm:$0xff]  }
 0x531   : > { %4935 = vmatmul.bf16.gmra.mxu3 %v4787_v49  ;;  %v7440_v49 = vld [vmem:[#allocation8 + $0x1d8] sm:$0xff] }
 0x532   : > { %5472 = vmatpush.bf16.msra.mxu1 %v7440_v49  ;;  %v4798_v22 = vor.u32 %v4796_v44, %v4794_v31  ;;  %v4257_v32 = vsel %vm3487_vm8, %v4247_v45, %v4256_v54  ;;  %v9609_v49 = vld [vmem:[#allocation3 + $0x50] sm:$0xff]  }
 0x533   : > { %v3708_v16 = vpop.f32.mrf.mxu2  ;;  %v4268_v48 = vshrl.u32 %v9609_v49, 16 }
 0x534   : > { %v3709_v57 = vadd.f32 %v3708_v16, %v3447_v18  ;;  %v4042_v20 = vpop.f32.mrf.mxu3  ;;  %v3449_v38 = vpop.f32.mrf.mxu1  ;;  %v4802_v16 = vrot.slane %v4800_v60, 1 }
 0x536   : > { %v9584_v53 = vadd.f32 %v4042_v20, %v3709_v57  ;;  %5319 = vmatmul.bf16.gmra.mxu0 %v5171_v33  ;;  %v5180_v57 = vsel %vm3487_vm8, %v5170_v6, %v5179_v25  ;;  %v4803_v7 = vsel %vm452_vm0, %v4798_v22, %v4802_v16  ;;  %v8068_v6 = vld [vmem:[#allocation3 + $0x5c] sm:$0xff]   ;;  %5473 = vmatpush.bf16.msra.mxu1 %v7439_v19  ;;  %v7417_v22 = vld [vmem:[#allocation3 + $0x54] sm:$0xff] }
 0x53b   : > { %v3710_v27 = vpop.f32.mrf.mxu2 }
 0x53c   : > { %v3711_v39 = vadd.f32 %v3710_v27, %v3449_v38  ;;  %v4044_v52 = vpop.f32.mrf.mxu3  ;;  %v3452_v47 = vpop.f32.mrf.mxu1  ;;  %v7958_v38 = vld [vmem:[#allocation3 + $0x3c] sm:$0xff]   ;;  %v5182_v27 = vshrl.u32 %v8068_v6, 16 }
 0x53e   : > { %v9588_v40 = vadd.f32 %v4044_v52, %v3711_v39  ;;  %v5185_v39 = vshll.u32 %v8068_v6, 16  ;;  %v4261_v52 = vrot.slane %v4259_v26, 3  ;;  %v5184_v37 = vrot.slane %v5182_v27, 3 }
 0x53f   : > { %4400 = vmatmul.bf16.gmra.mxu1 %v4248_v8 }
 0x540   : > { %4582 = vmatmul.bf16.gmra.mxu2 %v7956_v61  ;;  %v4264_v61 = vrot.slane %v4262_v1, 4  ;;  %v5187_v3 = vrot.slane %v5185_v39, 4  ;;  %v4816_v1 = vshll.u32 %v7417_v22, 16 }
 0x541   : > { %4940 = vmatmul.bf16.gmra.mxu3 %v4795_v51  ;;  %v4808_v51 = vshll.u32 %v7416_v0, 16 }
 0x542   : > { %v5188_v36 = vor.u32 %v5187_v3, %v5184_v37  ;;  %v4265_v24 = vor.u32 %v4264_v61, %v4261_v52  ;;  %v4818_v39 = vrot.slane %v4816_v1, 1 }
 0x543   : > { %v3713_v10 = vpop.f32.mrf.mxu2 }
 0x544   : > { %v3714_v41 = vadd.f32 %v3713_v10, %v3452_v47  ;;  %v4047_v63 = vpop.f32.mrf.mxu3  ;;  %v3454_v55 = vpop.f32.mrf.mxu1  ;;  %v4804_v47 = vshrl.u32 %v7415_v12, 16  ;;  %v4266_v12 = vsel %vm3487_vm8, %v4256_v54, %v4265_v24 }
 0x546   : > { %v9593_v18 = vadd.f32 %v4047_v63, %v3714_v41  ;;  %5324 = vmatmul.bf16.gmra.mxu0 %v5180_v57  ;;  %v4806_v10 = vor.u32 %v4804_v47, %v4802_v16  ;;  %v4810_v41 = vrot.slane %v4808_v51, 1  ;;  %v5189_v63 = vsel %vm3487_vm8, %v5179_v25, %v5188_v36  ;;  %v8070_v16 = vld [vmem:[#allocation3 + $0x64] sm:$0xff]   ;;  %v7962_v51 = vld [vmem:[#allocation3 + $0x4c] sm:$0xff]  }
 0x547   : > { %v4271_v25 = vshll.u32 %v9609_v49, 16 }
 0x548   : > { %v4811_v60 = vsel %vm452_vm0, %v4806_v10, %v4810_v41  ;;  %v9620_v10 = vld [vmem:[#allocation3 + $0x58] sm:$0xff]  }
 0x54b   : > { %v3715_v20 = vpop.f32.mrf.mxu2 }
 0x54c   : > { %v3716_v5 = vadd.f32 %v3715_v20, %v3454_v55  ;;  %v4049_v11 = vpop.f32.mrf.mxu3  ;;  %v3457_v59 = vpop.f32.mrf.mxu1 }
 0x54e   : > { %v9597_v14 = vadd.f32 %v4049_v11, %v3716_v5  ;;  %v5191_v5 = vshrl.u32 %v8070_v16, 16  ;;  %v5194_v11 = vshll.u32 %v8070_v16, 16 }
 0x54f   : > { %4405 = vmatmul.bf16.gmra.mxu1 %v4257_v32  ;;  %v4273_v32 = vrot.slane %v4271_v25, 4  ;;  %v4820_v25 = vshrl.u32 %v7417_v22, 16 }
 0x550   : > { %4587 = vmatmul.bf16.gmra.mxu2 %v7958_v38  ;;  %v5193_v6 = vrot.slane %v5191_v5, 3 }
 0x551   : > { %4945 = vmatmul.bf16.gmra.mxu3 %v4803_v7  ;;  %v4812_v7 = vshrl.u32 %v7416_v0, 16 }
 0x553   : > { %v3718_v50 = vpop.f32.mrf.mxu2  ;;  %v4814_v27 = vor.u32 %v4812_v7, %v4810_v41  ;;  %v4277_v41 = vshrl.u32 %v9620_v10, 16 }
 0x554   : > { %v3719_v31 = vadd.f32 %v3718_v50, %v3457_v59  ;;  %v4052_v33 = vpop.f32.mrf.mxu3  ;;  %v3459_v45 = vpop.f32.mrf.mxu1  ;;  %v4270_v59 = vrot.slane %v4268_v48, 3  ;;  %v5196_v50 = vrot.slane %v5194_v11, 4 }
 0x555   : > { %v4819_v3 = vsel %vm452_vm0, %v4814_v27, %v4818_v39  ;;  %v4279_v19 = vrot.slane %v4277_v41, 3  ;;  %v7964_v27 = vld [vmem:[#allocation3 + $0x54] sm:$0xff]  }
 0x556   : > { %v9602_v8 = vadd.f32 %v4052_v33, %v3719_v31  ;;  %5329 = vmatmul.bf16.gmra.mxu0 %v5189_v63  ;;  %v5197_v31 = vor.u32 %v5196_v50, %v5193_v6  ;;  %v4274_v33 = vor.u32 %v4273_v32, %v4270_v59  ;;  %v7458_v63 = vld [vmem:[#allocation8 + $0x208] sm:$0xff]  ;;  %v4822_v59 = vor.u32 %v4820_v25, %v4818_v39 }
 0x557   : > { %5832 = vmatpush.bf16.msra.mxu2 %v7458_v63 }
 0x558   : > { %v4275_v37 = vsel %vm3487_vm8, %v4265_v24, %v4274_v33 }
 0x55b   : > { %v3720_v15 = vpop.f32.mrf.mxu2 }
 0x55c   : > { %v3721_v34 = vadd.f32 %v3720_v15, %v3459_v45  ;;  %v4054_v55 = vpop.f32.mrf.mxu3  ;;  %v3462_v42 = vpop.f32.mrf.mxu1  ;;  %v5198_v45 = vsel %vm3487_vm8, %v5188_v36, %v5197_v31  ;;  %v4280_v36 = vshll.u32 %v9620_v10, 16  ;;  %v7418_v15 = vld [vmem:[#allocation3 + $0x5c] sm:$0xff] }
 0x55e   : > { %v9606_v44 = vadd.f32 %v4054_v55, %v3721_v34  ;;  %v8072_v34 = vld [vmem:[#allocation3 + $0x6c] sm:$0xff]   ;;  %v4282_v48 = vrot.slane %v4280_v36, 4 }
 0x55f   : > { %4410 = vmatmul.bf16.gmra.mxu1 %v4266_v12  ;;  %v5203_v12 = vshll.u32 %v8072_v34, 16 }
 0x560   : > { %4592 = vmatmul.bf16.gmra.mxu2 %v7960_v17 }
 0x561   : > { %4950 = vmatmul.bf16.gmra.mxu3 %v4811_v60  ;;  %v5205_v5 = vrot.slane %v5203_v12, 4 }
 0x563   : > { %v3723_v57 = vpop.f32.mrf.mxu2 }
 0x564   : > { %v3724_v54 = vadd.f32 %v3723_v57, %v3462_v42  ;;  %v4057_v20 = vpop.f32.mrf.mxu3  ;;  %v3464_v38 = vpop.f32.mrf.mxu1  ;;  %v5200_v42 = vshrl.u32 %v8072_v34, 16  ;;  %v4824_v57 = vshll.u32 %v7418_v15, 16 }
 0x566   : > { %v9613_v26 = vadd.f32 %v4057_v20, %v3724_v54  ;;  %5334 = vmatmul.bf16.gmra.mxu0 %v5198_v45  ;;  %v7438_v54 = vld [vmem:[#allocation8 + $0x1c8] sm:$0xff]  ;;  %v5202_v20 = vrot.slane %v5200_v42, 3  ;;  %v4826_v32 = vrot.slane %v4824_v57, 1 }
 0x567   : > { %5474 = vmatpush.bf16.msra.mxu1 %v7438_v54 }
 0x568   : > { %v5206_v11 = vor.u32 %v5205_v5, %v5202_v20 }
 0x56a   : > { %v5207_v7 = vsel %vm3487_vm8, %v5197_v31, %v5206_v11 }
 0x56b   : > { %v3725_v52 = vpop.f32.mrf.mxu2 }
 0x56c   : > { %v3726_v61 = vadd.f32 %v3725_v52, %v3464_v38  ;;  %v4059_v47 = vpop.f32.mrf.mxu3  ;;  %v3467_v46 = vpop.f32.mrf.mxu1  ;;  %v4283_v38 = vor.u32 %v4282_v48, %v4279_v19  ;;  %v7457_v48 = vld [vmem:[#allocation8 + $0x200] sm:$0xff] }
 0x56d   : > { %5833 = vmatpush.bf16.msra.mxu2 %v7457_v48 }
 0x56e   : > { %v9617_v0 = vadd.f32 %v4059_v47, %v3726_v61  ;;  %v4284_v22 = vsel %vm3487_vm8, %v4274_v33, %v4283_v38  ;;  %v4827_v47 = vsel %vm452_vm0, %v4822_v59, %v4826_v32 }
 0x56f   : > { %4415 = vmatmul.bf16.gmra.mxu1 %v4275_v37  ;;  %v8073_v37 = vld [vmem:[#allocation3 + $0x74] sm:$0xff]  }
 0x570   : > { %4597 = vmatmul.bf16.gmra.mxu2 %v7962_v51  ;;  %v9632_v51 = vld [vmem:[#allocation3 + $0x60] sm:$0xff]   ;;  %v5209_v36 = vshrl.u32 %v8073_v37, 16  ;;  %v5212_v63 = vshll.u32 %v8073_v37, 16 }
 0x571   : > { %4955 = vmatmul.bf16.gmra.mxu3 %v4819_v3  ;;  %v4286_v31 = vshrl.u32 %v9632_v51, 16  ;;  %v4289_v39 = vshll.u32 %v9632_v51, 16 }
 0x572   : > { %v5214_v19 = vrot.slane %v5212_v63, 4 }
 0x573   : > { %v3728_v55 = vpop.f32.mrf.mxu2 }
 0x574   : > { %v3729_v24 = vadd.f32 %v3728_v55, %v3467_v46  ;;  %v4062_v17 = vpop.f32.mrf.mxu3  ;;  %v3469_v60 = vpop.f32.mrf.mxu1  ;;  %v7419_v46 = vld [vmem:[#allocation3 + $0x64] sm:$0xff]  ;;  %v4291_v55 = vrot.slane %v4289_v39, 4 }
 0x576   : > { %v9624_v16 = vadd.f32 %v4062_v17, %v3729_v24  ;;  %5339 = vmatmul.bf16.gmra.mxu0 %v5207_v7  ;;  %v4828_v24 = vshrl.u32 %v7418_v15, 16  ;;  %v4832_v17 = vshll.u32 %v7419_v46, 16  ;;  %v7966_v15 = vld [vmem:[#allocation3 + $0x5c] sm:$0xff]  }
 0x578   : > { %v4830_v54 = vor.u32 %v4828_v24, %v4826_v32  ;;  %v4834_v20 = vrot.slane %v4832_v17, 1  ;;  %v9648_v32 = vld [vmem:[#allocation3 + $0x68] sm:$0xff]   ;;  %v4671_v17 = vld [vmem:[#allocation3 + $0x74] sm:$0x1] }
 0x57b   : > { %v3730_v1 = vpop.f32.mrf.mxu2 }
 0x57c   : > { %v3731_v6 = vadd.f32 %v3730_v1, %v3469_v60  ;;  %v4064_v50 = vpop.f32.mrf.mxu3  ;;  %v4381_v45 = vpop.f32.mrf.mxu1  ;;  %v5211_v60 = vrot.slane %v5209_v36, 3  ;;  %v4115_v36 = vld [vmem:[#allocation3 + $0x70] sm:$0xf] }
 0x57d   : > { %v4441_v61 = vadd.f32 %v4381_v45, %v9465_v29  ;;  %v4288_v29 = vrot.slane %v4286_v31, 3  ;;  %v4835_v45 = vsel %vm452_vm0, %v4830_v54, %v4834_v20 }
 0x57e   : > { %v9628_v52 = vadd.f32 %v4064_v50, %v3731_v6  ;;  %v9639_v25 = vor.u32 %v5214_v19, %v5211_v60  ;;  %v7967_v60 = vld [vmem:[#allocation3 + $0x64] sm:$0xff]  }
 0x57f   : > { %4420 = vmatmul.bf16.gmra.mxu1 %v4284_v22  ;;  %v4292_v57 = vor.u32 %v4291_v55, %v4288_v29  ;;  %v7437_v22 = vld [vmem:[#allocation8 + $0x1c0] sm:$0xff] }
 0x580   : > { %4602 = vmatmul.bf16.gmra.mxu2 %v7964_v27  ;;  %v5216_v5 = vsel %vm3487_vm8, %v5206_v11, %v9639_v25  ;;  %v4295_v11 = vshrl.u32 %v9648_v32, 16  ;;  %5475 = vmatpush.bf16.msra.mxu1 %v7437_v22 }
 0x581   : > { %4960 = vmatmul.bf16.gmra.mxu3 %v4827_v47  ;;  %v4293_v50 = vsel %vm3487_vm8, %v4283_v38, %v4292_v57  ;;  %v7420_v47 = vld [vmem:[#allocation3 + $0x6c] sm:$0xff] }
 0x582   : > { %v4297_v37 = vrot.slane %v4295_v11, 3  ;;  %v7639_v11 = vunpack.c.h.b16 %v9648_v32 }
 0x583   : > { %v4563_v3 = vpop.f32.mrf.mxu2 }
 0x584   : > { %v4623_v33 = vadd.f32 %v4563_v3, %v4441_v61  ;;  %v4921_v41 = vpop.f32.mrf.mxu3  ;;  %v4383_v34 = vpop.f32.mrf.mxu1  ;;  %v4298_v61 = vshll.u32 %v9648_v32, 16 }
 0x585   : > { %v4442_v12 = vadd.f32 %v4383_v34, %v9472_v13  ;;  %v4182_v34 = vunpack.c.l.b16 %v4115_v36 }
 0x586   : > { %v9636_v42 = vadd.f32 %v4921_v41, %v4623_v33  ;;  %5344 = vmatmul.bf16.gmra.mxu0 %v5216_v5  ;;  %v4836_v33 = vshrl.u32 %v7419_v46, 16  ;;  %v4840_v41 = vshll.u32 %v7420_v47, 16  ;;  %v4738_v46 = vunpack.c.l.b16 %v4671_v17 }
 0x587   : > { %v4195_v54 = vpack.c.b16 %v4182_v34, %v4182_v34 }
 0x588   : > { %v4838_v29 = vor.u32 %v4836_v33, %v4834_v20  ;;  %v4842_v55 = vrot.slane %v4840_v41, 1  ;;  %v4493_v33 = vpack.c.b16 %v4182_v34, %v7639_v11 }
 0x589   : > { %v4307_v20 = vshll.u32 %v4195_v54, 16 }
 0x58b   : > { %v4565_v59 = vpop.f32.mrf.mxu2 }
 0x58c   : > { %v4624_v7 = vadd.f32 %v4565_v59, %v4442_v12  ;;  %v4923_v1 = vpop.f32.mrf.mxu3  ;;  %v4386_v6 = vpop.f32.mrf.mxu1  ;;  %v4304_v59 = vshrl.u32 %v4195_v54, 16 }
 0x58d   : > { %v4443_v27 = vadd.f32 %v4386_v6, %v9484_v58  ;;  %v4300_v58 = vrot.slane %v4298_v61, 4 }
 0x58e   : > { %v9644_v13 = vadd.f32 %v4923_v1, %v4624_v7  ;;  %v4751_v7 = vpack.c.b16 %v4738_v46, %v4738_v46 }
 0x58f   : > { %4425 = vmatmul.bf16.gmra.mxu1 %v4293_v50  ;;  %v4301_v63 = vor.u32 %v4300_v58, %v4297_v37  ;;  %v4306_v50 = vrot.slane %v4304_v59, 3 }
 0x590   : > { %4607 = vmatmul.bf16.gmra.mxu2 %v7966_v15  ;;  %v4848_v22 = vshll.u32 %v4751_v7, 16 }
 0x591   : > { %4965 = vmatmul.bf16.gmra.mxu3 %v4835_v45  ;;  %v4302_v48 = vsel %vm3487_vm8, %v4292_v57, %v4301_v63  ;;  %v4844_v45 = vshrl.u32 %v7420_v47, 16 }
 0x593   : > { %v4568_v38 = vpop.f32.mrf.mxu2 }
 0x594   : > { %v9652_v31 = vadd.f32 %v4568_v38, %v4443_v27  ;;  %v4388_v39 = vpop.f32.mrf.mxu1  ;;  %v4309_v27 = vrot.slane %v4307_v20, 4  ;;  %v4846_v38 = vor.u32 %v4844_v45, %v4842_v55 }
 0x595   : > { %v4444_v3 = vadd.f32 %v4388_v39, %v9501_v9  ;;  %v4843_v9 = vsel %vm452_vm0, %v4838_v29, %v4842_v55  ;;  %v4850_v39 = vrot.slane %v4848_v22, 1  ;;  %v7445_v29 = vld [vmem:[#allocation3 + $0x20] sm:$0xff]  ;;  %v7446_v55 = vld [vmem:[#allocation3 + $0x28] sm:$0xff] }
 0x596   : > { %v4310_v61 = vor.u32 %v4309_v27, %v4306_v50  ;;  %v5669_v17 = vshll.u32 %v7445_v29, 16 }
 0x597   : > { %v4851_v47 = vsel %vm452_vm0, %v4846_v38, %v4850_v39 }
 0x598   : > { %v4311_v36 = vsel %vm3487_vm8, %v4301_v63, %v4310_v61  ;;  %v5674_v63 = vshll.u32 %v7446_v55, 16 }
 0x59a   : > { %v5676_v7 = vrot.slane %v5674_v63, 1 }
 0x59b   : > { %v4570_v24 = vpop.f32.mrf.mxu2 }
 0x59c   : > { %v9655_v12 = vadd.f32 %v4570_v24, %v4444_v3  ;;  %v4391_v19 = vpop.f32.mrf.mxu1 }
 0x59d   : > { %v4445_v5 = vadd.f32 %v4391_v19, %v9516_v4  ;;  %v9663_v4 = vld [vmem:[#allocation3 + $0x78] sm:$0xff]  }
 0x59e   : > { %v7687_v37 = vunpack.c.h.b16 %v9663_v4 }
 0x59f   : > { %4430 = vmatmul.bf16.gmra.mxu1 %v4302_v48 }
 0x5a0   : > { %4612 = vmatmul.bf16.gmra.mxu2 %v7967_v60  ;;  %v5109_v24 = vpack.c.b16 %v7687_v37, %v7687_v37  ;;  %v5678_v37 = vshrl.u32 %v7446_v55, 16 }
 0x5a1   : > { %4970 = vmatmul.bf16.gmra.mxu3 %v4843_v9  ;;  %v5671_v9 = vrot.slane %v5669_v17, 1  ;;  %v7448_v17 = vld [vmem:[#allocation3 + $0x38] sm:$0xff] }
 0x5a2   : > { %v5218_v60 = vshrl.u32 %v5109_v24, 16  ;;  %v5221_v19 = vshll.u32 %v5109_v24, 16 }
 0x5a3   : > { %v4573_v15 = vpop.f32.mrf.mxu2 }
 0x5a4   : > { %v9660_v1 = vadd.f32 %v4573_v15, %v4445_v5  ;;  %v4393_v6 = vpop.f32.mrf.mxu1  ;;  %v5667_v5 = vshrl.u32 %v7445_v29, 16  ;;  %v5223_v59 = vrot.slane %v5221_v19, 4 }
 0x5a5   : > { %v4446_v57 = vadd.f32 %v4393_v6, %v9531_v21 }
 0x5a6   : > { %v5672_v20 = vor.u32 %v5671_v9, %v5667_v5 }
 0x5a8   : > { %v5677_v45 = vsel %vm452_vm0, %v5672_v20, %v5676_v7 }
 0x5ab   : > { %v4575_v58 = vpop.f32.mrf.mxu2 }
 0x5ac   : > { %v9667_v3 = vadd.f32 %v4575_v58, %v4446_v57  ;;  %v4396_v41 = vpop.f32.mrf.mxu1  ;;  %v7902_v57 = vld [vmem:[#allocation3 + $0x20] sm:$0xff]  }
 0x5ad   : > { %v4447_v21 = vadd.f32 %v4396_v41, %v9541_v62  ;;  %v5220_v62 = vrot.slane %v5218_v60, 3  ;;  %v5680_v41 = vor.u32 %v5678_v37, %v5676_v7  ;;  %v7449_v7 = vld [vmem:[#allocation3 + $0x40] sm:$0xff]  ;;  %v7905_v37 = vld [vmem:[#allocation3 + $0x38] sm:$0xff]  }
 0x5af   : > { %4435 = vmatmul.bf16.gmra.mxu1 %v4311_v36  ;;  %v5224_v15 = vor.u32 %v5223_v59, %v5220_v62  ;;  %v7904_v59 = vld [vmem:[#allocation3 + $0x30] sm:$0xff]  }
 0x5b0   : > { %4617 = vmatmul.bf16.gmra.mxu2 %v4493_v33 }
 0x5b1   : > { %4975 = vmatmul.bf16.gmra.mxu3 %v4851_v47  ;;  %v5225_v11 = vsel %vm3487_vm8, %v9639_v25, %v5224_v15  ;;  %v7903_v47 = vld [vmem:[#allocation3 + $0x28] sm:$0xff]  }
 0x5b3   : > { %v4578_v48 = vpop.f32.mrf.mxu2 }
 0x5b4   : > { %v9672_v54 = vadd.f32 %v4578_v48, %v4447_v21  ;;  %v4398_v34 = vpop.f32.mrf.mxu1 }
 0x5b5   : > { %v4448_v46 = vadd.f32 %v4398_v34, %v9551_v23  ;;  %v7447_v23 = vld [vmem:[#allocation3 + $0x30] sm:$0xff] }
 0x5b6   : > { %v5682_v58 = vshll.u32 %v7447_v23, 16  ;;  %v5686_v48 = vshrl.u32 %v7447_v23, 16 }
 0x5b8   : > { %v5684_v36 = vrot.slane %v5682_v58, 1 }
 0x5ba   : > { %v5685_v25 = vsel %vm452_vm0, %v5680_v41, %v5684_v36  ;;  %v5688_v5 = vor.u32 %v5686_v48, %v5684_v36  ;;  %v7906_v48 = vld [vmem:[#allocation3 + $0x40] sm:$0xff]  }
 0x5bb   : > { %v4580_v6 = vpop.f32.mrf.mxu2 }
 0x5bc   : > { %v9675_v50 = vadd.f32 %v4580_v6, %v4448_v46  ;;  %v4401_v27 = vpop.f32.mrf.mxu1 }
 0x5bd   : > { %v4449_v22 = vadd.f32 %v4401_v27, %v9557_v30 }
 0x5bf   : > { %5476 = vmatmul.bf16.vlgmr.msra.gmra.mxu1 %v7902_v57  ;;  %v5694_v57 = vshrl.u32 %v7448_v17, 16 }
 0x5c0   : > { %5834 = vmatmul.bf16.vlgmr.msra.gmra.mxu2 %v5677_v45 }
 0x5c1   : > { %5349 = vmatmul.bf16.vlgmr.msrb.gmra.mxu3 %v5225_v11 }
 0x5c3   : > { %v4583_v61 = vpop.f32.mrf.mxu2 }
 0x5c4   : > { %v9681_v38 = vadd.f32 %v4583_v61, %v4449_v22  ;;  %v4403_v39 = vpop.f32.mrf.mxu1 }
 0x5c5   : > { %v4450_v33 = vadd.f32 %v4403_v39, %v9561_v43  ;;  %v5690_v43 = vshll.u32 %v7448_v17, 16 }
 0x5c7   : > { %v5692_v9 = vrot.slane %v5690_v43, 1 }
 0x5c9   : > { %v5696_v22 = vor.u32 %v5694_v57, %v5692_v9  ;;  %v7907_v57 = vld [vmem:[#allocation3 + $0x48] sm:$0xff]  }
 0x5cb   : > { %v4585_v29 = vpop.f32.mrf.mxu2 }
 0x5cc   : > { %v9684_v21 = vadd.f32 %v4585_v29, %v4450_v33  ;;  %v4406_v30 = vpop.f32.mrf.mxu1  ;;  %v7450_v33 = vld [vmem:[#allocation3 + $0x48] sm:$0xff] }
 0x5cd   : > { %v4451_v24 = vadd.f32 %v4406_v30, %v9566_v2  ;;  %v5693_v2 = vsel %vm452_vm0, %v5688_v5, %v5692_v9  ;;  %v5702_v30 = vshrl.u32 %v7449_v7, 16 }
 0x5cf   : > { %5481 = vmatmul.bf16.gmra.mxu1 %v7903_v47 }
 0x5d0   : > { %5839 = vmatmul.bf16.gmra.mxu2 %v5685_v25 }
 0x5d3   : > { %v4588_v60 = vpop.f32.mrf.mxu2 }
 0x5d4   : > { %v9688_v19 = vadd.f32 %v4588_v60, %v4451_v24  ;;  %v4408_v55 = vpop.f32.mrf.mxu1 }
 0x5d5   : > { %v4452_v34 = vadd.f32 %v4408_v55, %v9570_v35  ;;  %v5698_v35 = vshll.u32 %v7449_v7, 16 }
 0x5d7   : > { %v5700_v11 = vrot.slane %v5698_v35, 1 }
 0x5d9   : > { %v5704_v25 = vor.u32 %v5702_v30, %v5700_v11 }
 0x5db   : > { %v4590_v63 = vpop.f32.mrf.mxu2 }
 0x5dc   : > { %v9691_v46 = vadd.f32 %v4590_v63, %v4452_v34  ;;  %v4411_v62 = vpop.f32.mrf.mxu1  ;;  %v7451_v34 = vld [vmem:[#allocation3 + $0x50] sm:$0xff] }
 0x5dd   : > { %v4453_v20 = vadd.f32 %v4411_v62, %v9575_v28  ;;  %v5701_v28 = vsel %vm452_vm0, %v5696_v22, %v5700_v11  ;;  %v5710_v62 = vshrl.u32 %v7450_v33, 16  ;;  %v7452_v22 = vld [vmem:[#allocation3 + $0x58] sm:$0xff]  ;;  %v5295_v11 = vpop.f32.mrf.mxu0 }
 0x5df   : > { %5486 = vmatmul.bf16.gmra.mxu1 %v7904_v59 }
 0x5e0   : > { %5844 = vmatmul.bf16.gmra.mxu2 %v5693_v2 }
 0x5e3   : > { %v4593_v15 = vpop.f32.mrf.mxu2 }
 0x5e4   : > { %v9695_v6 = vadd.f32 %v4593_v15, %v4453_v20  ;;  %v4413_v27 = vpop.f32.mrf.mxu1 }
 0x5e5   : > { %v4454_v45 = vadd.f32 %v4413_v27, %v9579_v56  ;;  %v5706_v56 = vshll.u32 %v7450_v33, 16 }
 0x5e7   : > { %v5708_v24 = vrot.slane %v5706_v56, 1  ;;  %v5297_v56 = vpop.f32.mrf.mxu0 }
 0x5e9   : > { %v5712_v2 = vor.u32 %v5710_v62, %v5708_v24 }
 0x5eb   : > { %v4595_v23 = vpop.f32.mrf.mxu2 }
 0x5ec   : > { %v9698_v61 = vadd.f32 %v4595_v23, %v4454_v45  ;;  %v4416_v39 = vpop.f32.mrf.mxu1  ;;  %v9716_v45 = vpop.f32.mrf.mxu3 }
 0x5ed   : > { %v4455_v58 = vadd.f32 %v4416_v39, %v9584_v53  ;;  %v5709_v53 = vsel %vm452_vm0, %v5704_v25, %v5708_v24 }
 0x5ef   : > { %5491 = vmatmul.bf16.gmra.mxu1 %v7905_v37  ;;  %v5718_v37 = vshrl.u32 %v7451_v34, 16 }
 0x5f0   : > { %5849 = vmatmul.bf16.gmra.mxu2 %v5701_v28  ;;  %v5722_v28 = vshll.u32 %v7452_v22, 16 }
 0x5f3   : > { %v4598_v41 = vpop.f32.mrf.mxu2 }
 0x5f4   : > { %v9702_v36 = vadd.f32 %v4598_v41, %v4455_v58  ;;  %v4418_v29 = vpop.f32.mrf.mxu1  ;;  %v9721_v33 = vpop.f32.mrf.mxu3 }
 0x5f5   : > { %v4456_v47 = vadd.f32 %v4418_v29, %v9588_v40  ;;  %v5714_v40 = vshll.u32 %v7451_v34, 16  ;;  %v5724_v29 = vrot.slane %v5722_v28, 1 }
 0x5f7   : > { %v5716_v20 = vrot.slane %v5714_v40, 1 }
 0x5f9   : > { %v5720_v41 = vor.u32 %v5718_v37, %v5716_v20 }
 0x5fb   : > { %v4600_v17 = vpop.f32.mrf.mxu2  ;;  %v5725_v25 = vsel %vm452_vm0, %v5720_v41, %v5724_v29 }
 0x5fc   : > { %v9705_v60 = vadd.f32 %v4600_v17, %v4456_v47  ;;  %v4421_v55 = vpop.f32.mrf.mxu1  ;;  %v7453_v17 = vld [vmem:[#allocation3 + $0x60] sm:$0xff] }
 0x5fd   : > { %v4457_v43 = vadd.f32 %v4421_v55, %v9593_v18  ;;  %v5717_v18 = vsel %vm452_vm0, %v5712_v2, %v5716_v20  ;;  %v9728_v55 = vpop.f32.mrf.mxu3  ;;  %v5730_v34 = vshll.u32 %v7453_v17, 16 }
 0x5ff   : > { %5496 = vmatmul.bf16.gmra.mxu1 %v7906_v48  ;;  %v5732_v40 = vrot.slane %v5730_v34, 1 }
 0x600   : > { %5854 = vmatmul.bf16.gmra.mxu2 %v5709_v53 }
 0x603   : > { %v4603_v5 = vpop.f32.mrf.mxu2 }
 0x604   : > { %v9709_v9 = vadd.f32 %v4603_v5, %v4457_v43  ;;  %v4423_v63 = vpop.f32.mrf.mxu1  ;;  %v5726_v43 = vshrl.u32 %v7452_v22, 16  ;;  %v5734_v22 = vshrl.u32 %v7453_v17, 16 }
 0x605   : > { %v4458_v59 = vadd.f32 %v4423_v63, %v9597_v14  ;;  %v5300_v63 = vpop.f32.mrf.mxu0 }
 0x606   : > { %v5728_v62 = vor.u32 %v5726_v43, %v5724_v29  ;;  %v5736_v28 = vor.u32 %v5734_v22, %v5732_v40 }
 0x608   : > { %v5733_v20 = vsel %vm452_vm0, %v5728_v62, %v5732_v40  ;;  %v9954_v62 = vld [vmem:[#allocation27_spill] sm:$0xff] }
 0x609   : > { %v9757_v40 = vperm.slane %v9954_v62, 0 }
 0x60b   : > { %v4605_v7 = vpop.f32.mrf.mxu2 }
 0x60c   : > { %v9712_v15 = vadd.f32 %v4605_v7, %v4458_v59  ;;  %v4426_v27 = vpop.f32.mrf.mxu1 }
 0x60d   : > { %v4459_v35 = vadd.f32 %v4426_v27, %v9602_v8  ;;  %v5302_v27 = vpop.f32.mrf.mxu0 }
 0x60f   : > { %5501 = vmatmul.bf16.gmra.mxu1 %v7907_v57  ;;  %v7454_v57 = vld [vmem:[#allocation3 + $0x68] sm:$0xff] }
 0x610   : > { %5859 = vmatmul.bf16.gmra.mxu2 %v5717_v18  ;;  %v5742_v43 = vshrl.u32 %v7454_v57, 16 }
 0x613   : > { %v4608_v23 = vpop.f32.mrf.mxu2 }
 0x614   : > { %v9718_v39 = vadd.f32 %v4608_v23, %v4459_v35  ;;  %v4428_v14 = vpop.f32.mrf.mxu1  ;;  %v5738_v23 = vshll.u32 %v7454_v57, 16 }
 0x615   : > { %v4460_v58 = vadd.f32 %v4428_v14, %v9606_v44  ;;  %v9745_v41 = vpop.f32.mrf.mxu0 }
 0x61b   : > { %v4610_v30 = vpop.f32.mrf.mxu2 }
 0x61c   : > { %v9723_v8 = vadd.f32 %v4610_v30, %v4460_v58  ;;  %v4431_v47 = vpop.f32.mrf.mxu1  ;;  %v5740_v58 = vrot.slane %v5738_v23, 1 }
 0x61d   : > { %v4461_v24 = vadd.f32 %v4431_v47, %v9613_v26  ;;  %v9735_v26 = vpop.f32.mrf.mxu3 }
 0x61e   : > { %v5741_v30 = vsel %vm452_vm0, %v5736_v28, %v5740_v58 }
 0x61f   : > { %5506 = vmatmul.bf16.gmra.mxu1 %v9609_v49 }
 0x620   : > { %5864 = vmatmul.bf16.gmra.mxu2 %v5725_v25  ;;  %v7455_v25 = vld [vmem:[#allocation3 + $0x70] sm:$0xff] }
 0x621   : > { %v5746_v34 = vshll.u32 %v7455_v25, 16 }
 0x623   : > { %v4613_v44 = vpop.f32.mrf.mxu2 }
 0x624   : > { %v9730_v48 = vadd.f32 %v4613_v44, %v4461_v24  ;;  %v4433_v53 = vpop.f32.mrf.mxu1  ;;  %v9754_v44 = vpop.f32.mrf.mxu0 }
 0x625   : > { %v4462_v5 = vadd.f32 %v4433_v53, %v9617_v0  ;;  %v9743_v37 = vpop.f32.mrf.mxu3 }
 0x62b   : > { %v4615_v59 = vpop.f32.mrf.mxu2 }
 0x62c   : > { %v9733_v2 = vadd.f32 %v4615_v59, %v4462_v5  ;;  %v4436_v49 = vpop.f32.mrf.mxu1  ;;  %v5356_v59 = vadd.f32 %v5297_v56, %v9644_v13  ;;  %v9771_v28 = vpop.f32.mrf.mxu0 }
 0x62d   : > { %v4463_v7 = vadd.f32 %v4436_v49, %v9624_v16  ;;  %v9751_v47 = vpop.f32.mrf.mxu3  ;;  %v5748_v49 = vrot.slane %v5746_v34, 1  ;;  %v5750_v34 = vshrl.u32 %v7455_v25, 16  ;;  %v4985_v25 = vadd.f32 %v9728_v55, %v9660_v1 }
 0x62e   : > { %v4986_v1 = vadd.f32 %v9735_v26, %v9667_v3 }
 0x62f   : > { %5511 = vmatmul.bf16.gmra.mxu1 %v9620_v10 }
 0x630   : > { %5869 = vmatmul.bf16.gmra.mxu2 %v5733_v20 }
 0x633   : > { %v4618_v18 = vpop.f32.mrf.mxu2 }
 0x634   : > { %v9740_v0 = vadd.f32 %v4618_v18, %v4463_v7  ;;  %v4438_v35 = vpop.f32.mrf.mxu1  ;;  %v9955_v7 = vld [vmem:[#allocation28_spill] sm:$0xff] }
 0x635   : > { %v4464_v14 = vadd.f32 %v4438_v35, %v9628_v52  ;;  %v5355_v52 = vadd.f32 %v5295_v11, %v9636_v42  ;;  %v9762_v18 = vperm.slane %v9955_v7, 0  ;;  %v9764_v11 = vpop.f32.mrf.mxu3 }
 0x63b   : > { %v4620_v16 = vpop.f32.mrf.mxu2 }
 0x63c   : > { %v9747_v29 = vadd.f32 %v4620_v16, %v4464_v14  ;;  %v5477_v10 = vpop.f32.mrf.mxu1  ;;  %v4983_v14 = vadd.f32 %v9716_v45, %v9652_v31  ;;  %v7456_v16 = vld [vmem:[#allocation3 + $0x78] sm:$0xff]  ;;  %v4984_v31 = vadd.f32 %v9721_v33, %v9655_v12  ;;  %v7912_v33 = vld [vmem:[#allocation3 + $0x70] sm:$0xff]  }
 0x63d   : > { %v5537_v17 = vadd.f32 %v5477_v10, %v5355_v52 }
 0x63e   : > { %v5357_v10 = vadd.f32 %v5300_v63, %v4983_v14 }
 0x63f   : > { %5516 = vmatmul.bf16.gmra.mxu1 %v9632_v51  ;;  %v5744_v51 = vor.u32 %v5742_v43, %v5740_v58 }
 0x640   : > { %5874 = vmatmul.bf16.gmra.mxu2 %v5741_v30 }
 0x641   : > { %v5749_v23 = vsel %vm452_vm0, %v5744_v51, %v5748_v49  ;;  %v5752_v51 = vor.u32 %v5750_v34, %v5748_v49 }
 0x643   : > { %v5835_v24 = vpop.f32.mrf.mxu2 }
 0x644   : > { %v5479_v53 = vpop.f32.mrf.mxu1  ;;  %v5895_v5 = vadd.f32 %v5835_v24, %v5537_v17 }
 0x645   : > { %v5538_v42 = vadd.f32 %v5479_v53, %v5356_v59  ;;  %v9777_v53 = vpop.f32.mrf.mxu3  ;;  %v5358_v59 = vadd.f32 %v5302_v27, %v4984_v31 }
 0x646   : > { %v5920_v20 = vmul.f32 %v9757_v40, %v5895_v5  ;;  %v5754_v5 = vshll.u32 %v7456_v16, 16 }
 0x648   : > { %v5945_v13 = vadd.f32 %v9762_v18, %v5920_v20  ;;  %v5756_v20 = vrot.slane %v5754_v5, 1  ;;  %v5360_v5 = vadd.f32 %v9754_v44, %v4986_v1 }
 0x64a   : > { %v5969_v30 = vmax.f32 %v5945_v13, 0.0 }
 0x64b   : > { %v5837_v35 = vpop.f32.mrf.mxu2 }
 0x64c   : > { %v5896_v22 = vadd.f32 %v5837_v35, %v5538_v42  ;;  %v5482_v57 = vpop.f32.mrf.mxu1  ;;  %v5585_v42 = vld [vmem:[#allocation3 + $0x80] sm:$0x1] }
 0x64d   : > { %v5539_v17 = vadd.f32 %v5482_v57, %v5357_v10  ;;  %v5757_v57 = vsel %vm452_vm0, %v5752_v51, %v5756_v20  ;;  %v9786_v49 = vpop.f32.mrf.mxu3 }
 0x64e   : > { %v5921_v56 = vmul.f32 %v9757_v40, %v5896_v22 }
 0x64f   : > { %5521 = vmatmul.bf16.gmra.mxu1 %v9648_v32  ;;  %v5312_v32 = vpop.f32.mrf.mxu0 }
 0x650   : > { %v5946_v58 = vadd.f32 %v9762_v18, %v5921_v56  ;;  %5879 = vmatmul.bf16.gmra.mxu2 %v5749_v23  ;;  %v5652_v23 = vunpack.c.l.b16 %v5585_v42 }
 0x652   : > { %v5970_v52 = vmax.f32 %v5946_v58, 0.0  ;;  %v5665_v56 = vpack.c.b16 %v5652_v23, %v5652_v23  ;;  %v5359_v58 = vadd.f32 %v9745_v41, %v4985_v25 }
 0x653   : > { %v5840_v24 = vpop.f32.mrf.mxu2 }
 0x654   : > { %v7691_v45 = vpack.c.bf16 %v5970_v52, %v5969_v30  ;;  %v5484_v43 = vpop.f32.mrf.mxu1  ;;  %v5897_v62 = vadd.f32 %v5840_v24, %v5539_v17  ;;  %v5758_v17 = vshrl.u32 %v7456_v16, 16  ;;  %v4987_v16 = vadd.f32 %v9743_v37, %v9672_v54 }
 0x655   : > { %v5540_v7 = vadd.f32 %v5484_v43, %v5358_v59  ;;  %v5762_v43 = vshll.u32 %v5665_v56, 16 }
 0x656   : > { %7692 = vst [vmem:[%s8656_s1] sm:$0xff] %v7691_v45   ;;  %v5922_v63 = vmul.f32 %v9757_v40, %v5897_v62  ;;  %v9794_v62 = vpop.f32.mrf.mxu3  ;;  %v5760_v59 = vor.u32 %v5758_v17, %v5756_v20 }
 0x657   : > { %v5315_v52 = vpop.f32.mrf.mxu0  ;;  %v5764_v41 = vrot.slane %v5762_v43, 1 }
 0x658   : > { %v5947_v14 = vadd.f32 %v9762_v18, %v5922_v63 }
 0x659   : > { %v5765_v26 = vsel %vm452_vm0, %v5760_v59, %v5764_v41 }
 0x65a   : > { %v5971_v10 = vmax.f32 %v5947_v14, 0.0  ;;  %v4988_v14 = vadd.f32 %v9751_v47, %v9675_v50 }
 0x65b   : > { %v5842_v35 = vpop.f32.mrf.mxu2 }
 0x65c   : > { %v5898_v22 = vadd.f32 %v5842_v35, %v5540_v7  ;;  %v5487_v12 = vpop.f32.mrf.mxu1 }
 0x65d   : > { %v5541_v31 = vadd.f32 %v5487_v12, %v5359_v58  ;;  %v5361_v12 = vadd.f32 %v9771_v28, %v4987_v16  ;;  %v5362_v58 = vadd.f32 %v5312_v32, %v4988_v14 }
 0x65e   : > { %v5923_v27 = vmul.f32 %v9757_v40, %v5898_v22  ;;  %v4951_v23 = vpop.f32.mrf.mxu3 }
 0x65f   : > { %5526 = vmatmul.bf16.gmra.mxu1 %v7912_v33  ;;  %v5317_v35 = vpop.f32.mrf.mxu0 }
 0x660   : > { %v5948_v13 = vadd.f32 %v9762_v18, %v5923_v27  ;;  %5884 = vmatmul.bf16.gmra.mxu2 %v5757_v57 }
 0x662   : > { %v5972_v30 = vmax.f32 %v5948_v13, 0.0 }
 0x663   : > { %v5845_v24 = vpop.f32.mrf.mxu2 }
 0x664   : > { %v7696_v55 = vpack.c.bf16 %v5972_v30, %v5971_v10  ;;  %v5489_v45 = vpop.f32.mrf.mxu1  ;;  %v5899_v34 = vadd.f32 %v5845_v24, %v5541_v31 }
 0x665   : > { %v5542_v63 = vadd.f32 %v5489_v45, %v5360_v5  ;;  %v4990_v5 = vadd.f32 %v9777_v53, %v9684_v21 }
 0x666   : > { %7914 = vst [vmem:[%s8656_s1 + $0x8] sm:$0xff] %v7696_v55   ;;  %v5924_v51 = vmul.f32 %v9757_v40, %v5899_v34  ;;  %v4953_v28 = vpop.f32.mrf.mxu3  ;;  %v4989_v55 = vadd.f32 %v9764_v11, %v9681_v38 }
 0x667   : > { %v5320_v56 = vpop.f32.mrf.mxu0  ;;  %v5364_v11 = vadd.f32 %v5317_v35, %v4990_v5 }
 0x668   : > { %v5949_v22 = vadd.f32 %v9762_v18, %v5924_v51  ;;  %v5363_v17 = vadd.f32 %v5315_v52, %v4989_v55 }
 0x66a   : > { %v5973_v33 = vmax.f32 %v5949_v22, 0.0  ;;  %v4991_v22 = vadd.f32 %v9786_v49, %v9688_v19 }
 0x66b   : > { %v5847_v7 = vpop.f32.mrf.mxu2 }
 0x66c   : > { %v5900_v42 = vadd.f32 %v5847_v7, %v5542_v63  ;;  %v5492_v3 = vpop.f32.mrf.mxu1 }
 0x66d   : > { %v5543_v54 = vadd.f32 %v5492_v3, %v5361_v12  ;;  %v5365_v12 = vadd.f32 %v5320_v56, %v4991_v22 }
 0x66e   : > { %v5925_v44 = vmul.f32 %v9757_v40, %v5900_v42  ;;  %v4956_v38 = vpop.f32.mrf.mxu3 }
 0x66f   : > { %5531 = vmatmul.bf16.gmra.mxu1 %v9663_v4  ;;  %v5322_v45 = vpop.f32.mrf.mxu0 }
 0x670   : > { %v5950_v20 = vadd.f32 %v9762_v18, %v5925_v44  ;;  %5889 = vmatmul.bf16.gmra.mxu2 %v5765_v26 }
 0x672   : > { %v5974_v57 = vmax.f32 %v5950_v20, 0.0 }
 0x673   : > { %v5850_v25 = vpop.f32.mrf.mxu2 }
 0x674   : > { %v7701_v27 = vpack.c.bf16 %v5974_v57, %v5973_v33  ;;  %v5494_v37 = vpop.f32.mrf.mxu1  ;;  %v5901_v13 = vadd.f32 %v5850_v25, %v5543_v54  ;;  %v4992_v25 = vadd.f32 %v9794_v62, %v9691_v46 }
 0x675   : > { %v5544_v4 = vadd.f32 %v5494_v37, %v5362_v58 }
 0x676   : > { %7915 = vst [vmem:[%s8656_s1 + $0x10] sm:$0xff] %v7701_v27   ;;  %v5926_v10 = vmul.f32 %v9757_v40, %v5901_v13  ;;  %v4958_v20 = vpop.f32.mrf.mxu3  ;;  %v5366_v49 = vadd.f32 %v5322_v45, %v4992_v25 }
 0x677   : > { %v5325_v3 = vpop.f32.mrf.mxu0 }
 0x678   : > { %v5951_v50 = vadd.f32 %v9762_v18, %v5926_v10 }
 0x67a   : > { %v5975_v32 = vmax.f32 %v5951_v50, 0.0 }
 0x67b   : > { %v5852_v30 = vpop.f32.mrf.mxu2 }
 0x67c   : > { %v5902_v24 = vadd.f32 %v5852_v30, %v5544_v4  ;;  %v5497_v1 = vpop.f32.mrf.mxu1 }
 0x67d   : > { %v5545_v41 = vadd.f32 %v5497_v1, %v5363_v17  ;;  %v4994_v17 = vadd.f32 %v4953_v28, %v9698_v61 }
 0x67e   : > { %v5927_v47 = vmul.f32 %v9757_v40, %v5902_v24  ;;  %v4961_v10 = vpop.f32.mrf.mxu3  ;;  %v4993_v24 = vadd.f32 %v4951_v23, %v9695_v6 }
 0x67f   : > { %v5327_v54 = vpop.f32.mrf.mxu0 }
 0x680   : > { %v5952_v31 = vadd.f32 %v9762_v18, %v5927_v47  ;;  %v5367_v50 = vadd.f32 %v5325_v3, %v4993_v24  ;;  %v5368_v6 = vadd.f32 %v5327_v54, %v4994_v17 }
 0x682   : > { %v5976_v43 = vmax.f32 %v5952_v31, 0.0 }
 0x683   : > { %v5855_v34 = vpop.f32.mrf.mxu2 }
 0x684   : > { %v7706_v59 = vpack.c.bf16 %v5976_v43, %v5975_v32  ;;  %v5499_v51 = vpop.f32.mrf.mxu1  ;;  %v5903_v63 = vadd.f32 %v5855_v34, %v5545_v41 }
 0x685   : > { %v5546_v42 = vadd.f32 %v5499_v51, %v5364_v11 }
 0x686   : > { %7916 = vst [vmem:[%s8656_s1 + $0x18] sm:$0xff] %v7706_v59   ;;  %v5928_v7 = vmul.f32 %v9757_v40, %v5903_v63  ;;  %v4963_v34 = vpop.f32.mrf.mxu3 }
 0x687   : > { %v5330_v62 = vpop.f32.mrf.mxu0 }
 0x688   : > { %v5953_v21 = vadd.f32 %v9762_v18, %v5928_v7 }
 0x68a   : > { %v5977_v35 = vmax.f32 %v5953_v21, 0.0 }
 0x68b   : > { %v5857_v26 = vpop.f32.mrf.mxu2 }
 0x68c   : > { %v5904_v16 = vadd.f32 %v5857_v26, %v5546_v42  ;;  %v5502_v52 = vpop.f32.mrf.mxu1  ;;  %v4995_v42 = vadd.f32 %v4956_v38, %v9702_v36 }
 0x68d   : > { %v5547_v27 = vadd.f32 %v5502_v52, %v5365_v12 }
 0x68e   : > { %v5929_v53 = vmul.f32 %v9757_v40, %v5904_v16  ;;  %v4966_v28 = vpop.f32.mrf.mxu3  ;;  %v5369_v16 = vadd.f32 %v5330_v62, %v4995_v42 }
 0x68f   : > { %v5332_v23 = vpop.f32.mrf.mxu0 }
 0x690   : > { %v5954_v44 = vadd.f32 %v9762_v18, %v5929_v53 }
 0x692   : > { %v5978_v33 = vmax.f32 %v5954_v44, 0.0  ;;  %v4996_v44 = vadd.f32 %v4958_v20, %v9705_v60 }
 0x693   : > { %v5860_v57 = vpop.f32.mrf.mxu2 }
 0x694   : > { %v7711_v14 = vpack.c.bf16 %v5978_v33, %v5977_v35  ;;  %v5504_v37 = vpop.f32.mrf.mxu1  ;;  %v5905_v19 = vadd.f32 %v5860_v57, %v5547_v27  ;;  %v5370_v36 = vadd.f32 %v5332_v23, %v4996_v44 }
 0x695   : > { %v5548_v58 = vadd.f32 %v5504_v37, %v5366_v49  ;;  %v4997_v49 = vadd.f32 %v4961_v10, %v9709_v9 }
 0x696   : > { %7917 = vst [vmem:[%s8656_s1 + $0x20] sm:$0xff] %v7711_v14   ;;  %v5930_v13 = vmul.f32 %v9757_v40, %v5905_v19  ;;  %v4968_v38 = vpop.f32.mrf.mxu3 }
 0x697   : > { %v5335_v21 = vpop.f32.mrf.mxu0 }
 0x698   : > { %v5955_v1 = vadd.f32 %v9762_v18, %v5930_v13 }
 0x69a   : > { %v5979_v47 = vmax.f32 %v5955_v1, 0.0  ;;  %v4998_v1 = vadd.f32 %v4963_v34, %v9712_v15 }
 0x69b   : > { %v5862_v4 = vpop.f32.mrf.mxu2 }
 0x69c   : > { %v5906_v30 = vadd.f32 %v5862_v4, %v5548_v58  ;;  %v5507_v56 = vpop.f32.mrf.mxu1  ;;  %v5371_v58 = vadd.f32 %v5335_v21, %v4997_v49 }
 0x69d   : > { %v5549_v43 = vadd.f32 %v5507_v56, %v5367_v50 }
 0x69e   : > { %v5931_v46 = vmul.f32 %v9757_v40, %v5906_v30  ;;  %v4971_v56 = vpop.f32.mrf.mxu3 }
 0x69f   : > { %v5337_v37 = vpop.f32.mrf.mxu0  ;;  %v5001_v44 = vadd.f32 %v4971_v56, %v9730_v48 }
 0x6a0   : > { %v5956_v55 = vadd.f32 %v9762_v18, %v5931_v46  ;;  %v5372_v9 = vadd.f32 %v5337_v37, %v4998_v1 }
 0x6a2   : > { %v5980_v31 = vmax.f32 %v5956_v55, 0.0 }
 0x6a3   : > { %v5865_v45 = vpop.f32.mrf.mxu2 }
 0x6a4   : > { %v7716_v32 = vpack.c.bf16 %v5980_v31, %v5979_v47  ;;  %v5509_v5 = vpop.f32.mrf.mxu1  ;;  %v5907_v59 = vadd.f32 %v5865_v45, %v5549_v43 }
 0x6a5   : > { %v5550_v51 = vadd.f32 %v5509_v5, %v5368_v6  ;;  %v4999_v5 = vadd.f32 %v4966_v28, %v9718_v39 }
 0x6a6   : > { %7918 = vst [vmem:[%s8656_s1 + $0x28] sm:$0xff] %v7716_v32   ;;  %v5932_v41 = vmul.f32 %v9757_v40, %v5907_v59  ;;  %v4973_v32 = vpop.f32.mrf.mxu3 }
 0x6a7   : > { %v5340_v47 = vpop.f32.mrf.mxu0 }
 0x6a8   : > { %v5957_v3 = vadd.f32 %v9762_v18, %v5932_v41  ;;  %v5373_v23 = vadd.f32 %v5340_v47, %v4999_v5 }
 0x6aa   : > { %v5981_v52 = vmax.f32 %v5957_v3, 0.0 }
 0x6ab   : > { %v5867_v63 = vpop.f32.mrf.mxu2 }
 0x6ac   : > { %v5908_v11 = vadd.f32 %v5867_v63, %v5550_v51  ;;  %v5512_v7 = vpop.f32.mrf.mxu1 }
 0x6ad   : > { %v5551_v35 = vadd.f32 %v5512_v7, %v5369_v16 }
 0x6ae   : > { %v5933_v61 = vmul.f32 %v9757_v40, %v5908_v11  ;;  %v5000_v11 = vadd.f32 %v4968_v38, %v9723_v8 }
 0x6af   : > { %v5342_v6 = vpop.f32.mrf.mxu0 }
 0x6b0   : > { %v5958_v26 = vadd.f32 %v9762_v18, %v5933_v61  ;;  %v5374_v39 = vadd.f32 %v5342_v6, %v5000_v11 }
 0x6b2   : > { %v5982_v22 = vmax.f32 %v5958_v26, 0.0  ;;  %v4976_v26 = vpop.f32.mrf.mxu3 }
 0x6b3   : > { %v5870_v53 = vpop.f32.mrf.mxu2 }
 0x6b4   : > { %v7721_v12 = vpack.c.bf16 %v5982_v22, %v5981_v52  ;;  %v5514_v33 = vpop.f32.mrf.mxu1  ;;  %v5909_v57 = vadd.f32 %v5870_v53, %v5551_v35 }
 0x6b5   : > { %v5552_v14 = vadd.f32 %v5514_v33, %v5370_v36 }
 0x6b6   : > { %7919 = vst [vmem:[%s8656_s1 + $0x30] sm:$0xff] %v7721_v12   ;;  %v5934_v25 = vmul.f32 %v9757_v40, %v5909_v57 }
 0x6b7   : > { %v5345_v52 = vpop.f32.mrf.mxu0 }
 0x6b8   : > { %v5959_v13 = vadd.f32 %v9762_v18, %v5934_v25  ;;  %v5375_v57 = vadd.f32 %v5345_v52, %v5001_v44 }
 0x6ba   : > { %v5983_v4 = vmax.f32 %v5959_v13, 0.0  ;;  %v4978_v33 = vpop.f32.mrf.mxu3 }
 0x6bb   : > { %v5872_v27 = vpop.f32.mrf.mxu2 }
 0x6bc   : > { %v5910_v54 = vadd.f32 %v5872_v27, %v5552_v14  ;;  %v5517_v19 = vpop.f32.mrf.mxu1  ;;  %v5002_v14 = vadd.f32 %v4973_v32, %v9733_v2 }
 0x6bd   : > { %v5553_v62 = vadd.f32 %v5517_v19, %v5371_v58 }
 0x6be   : > { %v5935_v60 = vmul.f32 %v9757_v40, %v5910_v54 }
 0x6bf   : > { %v5347_v37 = vpop.f32.mrf.mxu0 }
 0x6c0   : > { %v5960_v20 = vadd.f32 %v9762_v18, %v5935_v60  ;;  %v5376_v49 = vadd.f32 %v5347_v37, %v5002_v14 }
 0x6c2   : > { %v5984_v30 = vmax.f32 %v5960_v20, 0.0  ;;  %v5350_v20 = vpop.f32.mrf.mxu3 }
 0x6c3   : > { %v5875_v24 = vpop.f32.mrf.mxu2 }
 0x6c4   : > { %v7726_v46 = vpack.c.bf16 %v5984_v30, %v5983_v4  ;;  %v5519_v55 = vpop.f32.mrf.mxu1  ;;  %v5911_v50 = vadd.f32 %v5875_v24, %v5553_v62  ;;  %v5003_v24 = vadd.f32 %v4976_v26, %v9740_v0 }
 0x6c5   : > { %v5554_v31 = vadd.f32 %v5519_v55, %v5372_v9 }
 0x6c6   : > { %7920 = vst [vmem:[%s8656_s1 + $0x38] sm:$0xff] %v7726_v46   ;;  %v5936_v10 = vmul.f32 %v9757_v40, %v5911_v50  ;;  %v5377_v46 = vadd.f32 %v5350_v20, %v5003_v24 }
 0x6c8   : > { %v5961_v59 = vadd.f32 %v9762_v18, %v5936_v10 }
 0x6ca   : > { %v5985_v41 = vmax.f32 %v5961_v59, 0.0  ;;  %v5352_v10 = vpop.f32.mrf.mxu3 }
 0x6cb   : > { %v5877_v45 = vpop.f32.mrf.mxu2 }
 0x6cc   : > { %v5912_v17 = vadd.f32 %v5877_v45, %v5554_v31  ;;  %v5522_v43 = vpop.f32.mrf.mxu1  ;;  %v5004_v31 = vadd.f32 %v4978_v33, %v9747_v29 }
 0x6cd   : > { %v5555_v42 = vadd.f32 %v5522_v43, %v5373_v23 }
 0x6ce   : > { %v5937_v15 = vmul.f32 %v9757_v40, %v5912_v17  ;;  %v5378_v32 = vadd.f32 %v5352_v10, %v5004_v31 }
 0x6d0   : > { %v5962_v34 = vadd.f32 %v9762_v18, %v5937_v15 }
 0x6d2   : > { %v5986_v51 = vmax.f32 %v5962_v34, 0.0 }
 0x6d3   : > { %v5880_v63 = vpop.f32.mrf.mxu2 }
 0x6d4   : > { %v7731_v7 = vpack.c.bf16 %v5986_v51, %v5985_v41  ;;  %v5524_v3 = vpop.f32.mrf.mxu1  ;;  %v5913_v61 = vadd.f32 %v5880_v63, %v5555_v42 }
 0x6d5   : > { %v5556_v16 = vadd.f32 %v5524_v3, %v5374_v39 }
 0x6d6   : > { %7921 = vst [vmem:[%s8656_s1 + $0x40] sm:$0xff] %v7731_v7   ;;  %v5938_v28 = vmul.f32 %v9757_v40, %v5913_v61 }
 0x6d8   : > { %v5963_v12 = vadd.f32 %v9762_v18, %v5938_v28 }
 0x6da   : > { %v5987_v36 = vmax.f32 %v5963_v12, 0.0 }
 0x6db   : > { %v5882_v22 = vpop.f32.mrf.mxu2 }
 0x6dc   : > { %v5914_v21 = vadd.f32 %v5882_v22, %v5556_v16  ;;  %v5527_v53 = vpop.f32.mrf.mxu1 }
 0x6dd   : > { %v5557_v54 = vadd.f32 %v5527_v53, %v5375_v57 }
 0x6de   : > { %v5939_v8 = vmul.f32 %v9757_v40, %v5914_v21 }
 0x6e0   : > { %v5964_v35 = vadd.f32 %v9762_v18, %v5939_v8 }
 0x6e2   : > { %v5988_v38 = vmax.f32 %v5964_v35, 0.0 }
 0x6e3   : > { %v5885_v25 = vpop.f32.mrf.mxu2 }
 0x6e4   : > { %v7736_v27 = vpack.c.bf16 %v5988_v38, %v5987_v36  ;;  %v5529_v19 = vpop.f32.mrf.mxu1  ;;  %v5915_v48 = vadd.f32 %v5885_v25, %v5557_v54 }
 0x6e5   : > { %v5558_v60 = vadd.f32 %v5529_v19, %v5376_v49 }
 0x6e6   : > { %7922 = vst [vmem:[%s8656_s1 + $0x48] sm:$0xff] %v7736_v27   ;;  %v5940_v13 = vmul.f32 %v9757_v40, %v5915_v48 }
 0x6e8   : > { %v5965_v56 = vadd.f32 %v9762_v18, %v5940_v13 }
 0x6ea   : > { %v5989_v62 = vmax.f32 %v5965_v56, 0.0 }
 0x6eb   : > { %v5887_v58 = vpop.f32.mrf.mxu2 }
 0x6ec   : > { %v5916_v4 = vadd.f32 %v5887_v58, %v5558_v60  ;;  %v5532_v30 = vpop.f32.mrf.mxu1 }
 0x6ed   : > { %v5559_v9 = vadd.f32 %v5532_v30, %v5377_v46 }
 0x6ee   : > { %v5941_v2 = vmul.f32 %v9757_v40, %v5916_v4 }
 0x6f0   : > { %v5966_v1 = vadd.f32 %v9762_v18, %v5941_v2 }
 0x6f2   : > { %v5990_v55 = vmax.f32 %v5966_v1, 0.0 }
 0x6f3   : > { %v5890_v50 = vpop.f32.mrf.mxu2 }
 0x6f4   : > { %v7741_v47 = vpack.c.bf16 %v5990_v55, %v5989_v62  ;;  %v5917_v45 = vadd.f32 %v5890_v50, %v5559_v9  ;;  %v5534_v17 = vpop.f32.mrf.mxu1 }
 0x6f5   : > { %v5560_v43 = vadd.f32 %v5534_v17, %v5378_v32 }
 0x6f6   : > { %7923 = vst [vmem:[%s8656_s1 + $0x50] sm:$0xff] %v7741_v47   ;;  %v5942_v0 = vmul.f32 %v9757_v40, %v5917_v45 }
 0x6f8   : > { %v5967_v15 = vadd.f32 %v9762_v18, %v5942_v0 }
 0x6fa   : > { %v5991_v6 = vmax.f32 %v5967_v15, 0.0 }
 0x6fb   : > { %v5892_v5 = vpop.f32.mrf.mxu2 }
 0x6fc   : > { %v5918_v59 = vadd.f32 %v5892_v5, %v5560_v43 }
 0x6fe   : > { %v5943_v29 = vmul.f32 %v9757_v40, %v5918_v59 }
 0x700   : > { %v5968_v34 = vadd.f32 %v9762_v18, %v5943_v29 }
 0x702   : > { %v5992_v23 = vmax.f32 %v5968_v34, 0.0 }
 0x704   : > { %v7746_v41 = vpack.c.bf16 %v5992_v23, %v5991_v6 }
 0x706   : > { %7924 = vst [vmem:[%s8656_s1 + $0x58] sm:$0xff] %v7746_v41  }
 0x707   : > { %8369 = shalt.err (!%p8366_p2)
}
 0x708   : > { %s8461_s1 = smov 64   ;;  %s8462_s13 = smov 4  }
 0x709   : > { %8093 = dma.vmem_to_hbm [thread:$0]  (%p8545_p3), %s6057_s29, 1536, %s6059_s17, %s6042_s9, %s8461_s1, %s8461_s1, %s8462_s13  }
 0x70a PF: > { %p8117_p4 = scmp.ge.s32.totalorder %s8449_s25, 2  ;;  %s6073_s23 = sand.u32 1, %s8421_s18  }
 0x70b   : > { %s6074_s27 = scalar_lea.sflag [#allocation7], %s6073_s23 }
 0x70c   : > { %p8106_p5 = pnand %p8117_p4, %p8554_p8 }
 0x70e   : > { %p8107_p6 = pneg %p8106_p5 }
 0x710   : > { %8413 = dma.done.wait (%p8107_p6), %s6074_s27, 1536  }
 0x711   : > { %8415 = vsyncadd (%p8107_p6), %s6074_s27, 4294965760  ;;  %s20_s25 = sadd.s32 1, %s8449_s25   ;;  %s9957_s12 = sld [smem:[#allocation26_spill]] }
 0x712   : > { %p17_p7 = scmp.ge.s32.totalorder %s20_s25, 6   ;;  %s9958_s21 = sld [smem:[#allocation22_spill]] }
 0x713   : > { %s9959_s22 = sld [smem:[#allocation23_spill]]  ;;  %s9962_s18 = smov %s8425_s19 }
 0x714   : > { %s9960_s23 = sld [smem:[#allocation24_spill]]  ;;  %s9963_s19 = smov %s8429_s20 }
 0x715   : > { %s9961_s24 = sld [smem:[#allocation25_spill]]  ;;  %19 = sbr.rel (!%p17_p7) target bundleno = 11 (0xb), region = 128 }
 0x717   : > { %s9964_s20 = smov %s9957_s12 }
 0x71a   :  { %6080 = vsyncpa [#allocation6], 1 }
 0x71b   :  { %6082 = vsyncpa [#allocation6 + $0x1], 1 }
 0x71c   :  { %6083 = vsyncpa [#allocation9], 1 }
 0x71d   :  { %6084 = vsyncpa [#allocation7], 1 }
 0x71e   :  { %6086 = vsyncpa [#allocation7 + $0x1], 1 }
 0x71f   :  { %6087 = vsyncmov [#allocation4] }
 0x722   :  { %s6088_s7 = vpop.sfrf %6087 }
 0x723   :  { %p7208_p3 = scmp.ne.s32.totalorder %s6088_s7, 0 }
 0x725   :  { %6092 = shalt.err (%p7208_p3)  }
 0x726   :  { %6094 = vsyncmov [#allocation4 + $0x1] }
 0x729   :  { %s6095_s8 = vpop.sfrf %6094 }
 0x72a   :  { %p7209_p8 = scmp.ne.s32.totalorder %s6095_s8, 0 }
 0x72c   :  { %6099 = shalt.err (%p7209_p8)  }

</bundles_post_ra>
